<compile_context>
chip_gen: v6e
topology: v6e:2x2x1
jax: 0.10.0
libtpu: 0.0.40
codegen_flags: <defaults>
</compile_context>

<pallas_src>
import jax
import jax.numpy as jnp
from jax.experimental import pallas as pl
from jax.experimental.pallas import tpu as pltpu

LANES = 128       # lane-padded channel width for every layer
K1 = 75           # conv1 im2col depth = 5*5*3
GRP1 = 16         # rows per pooling cohort inside a conv1 block (14 used + 2 pad)
BLK1 = 4 * GRP1   # p1 rows per (sample, pooled output row)
P1ROWS = 256      # pooled1 scratch rows: 14*16 data + zero pad (slabs read to 228)


# ------------------------------ fused kernel --------------------------------

def _lenet5_kernel(p1_ref, w1_ref, b1_ref, w2_ref, b2_ref,
                   wf1_ref, bf1_ref, wf2_ref, bf2_ref, wf3_ref, bf3_ref,
                   out_ref, pooled1_ref):
    f32, bf16 = jnp.float32, jnp.bfloat16

    # ---- conv1 (im2col matmul, M=128 per dot) + 2x2 maxpool + bias + ReLU ---
    w1 = w1_ref[...]
    b1 = b1_ref[...]
    # Zero the scratch tail once per sample so conv2 slab reads are defined.
    pooled1_ref[14 * GRP1:P1ROWS, :] = jnp.zeros((P1ROWS - 14 * GRP1, LANES), f32)
    for r in range(7):                       # 2 pooled output rows per dot
        blk = jnp.dot(p1_ref[0, r * 128:(r + 1) * 128, :], w1,
                      preferred_element_type=f32)          # (128, 128) f32
        q = blk.reshape(2, 4, GRP1, LANES)                 # [i_loc, 2x2-pos, j, c]
        pooled = jnp.maximum(jnp.maximum(q[:, 0], q[:, 1]),
                             jnp.maximum(q[:, 2], q[:, 3]))  # (2, 16, 128)
        # maxpool commutes with (+bias, relu); cols j=14,15 hold harmless junk.
        pooled1_ref[r * 32:(r + 1) * 32, :] = jnp.maximum(
            pooled.reshape(32, LANES) + b1, 0.0)

    # ---- conv2: 25 shifted-slab dots into one (160,128) f32 accumulator -----
    # pooled1 row = i*16 + j  ->  tap (dy,dx) is a pure row offset dy*16 + dx.
    acc2 = jnp.zeros((160, LANES), f32)
    for k in range(25):
        dy, dx = divmod(k, 5)
        start = dy * GRP1 + dx
        a = pooled1_ref[start:start + 160, :].astype(bf16)    # (160, 128)
        acc2 = acc2 + jnp.dot(a, w2_ref[k], preferred_element_type=f32)
    # Valid conv2 outputs live at acc2 rows oi*16 + oj (oi, oj in 0..9).

    # ---- conv2 2x2 maxpool + bias + ReLU, then lane-pack pooled2 for fc1 ----
    b2 = b2_ref[...]
    a4 = acc2.reshape(5, 2, GRP1, LANES)                   # [pi, row parity, oj, c]
    m_r = jnp.maximum(a4[:, 0], a4[:, 1])                  # (5, 16, 128) row-pair max
    p2 = jnp.maximum(m_r + b2, 0.0)                        # bias+ReLU (commutes w/ max)
    fc1_in = None
    for pj in range(5):
        col = jnp.maximum(p2[:, 2 * pj, :], p2[:, 2 * pj + 1, :])  # (5, 128)
        if pj:                                  # lanes >=16 are exact zeros, so a
            col = pltpu.roll(col, shift=16 * pj, axis=1)    # roll acts as lane concat
        fc1_in = col if fc1_in is None else fc1_in + col    # (5, 128) packed rows
    fc1_row = jnp.concatenate([fc1_in[i:i + 1, :] for i in range(5)],
                              axis=1)                       # (1, 640) lane-dense

    # ---- MLP head: fc1 -> relu -> fc2 -> relu -> fc3 (one dot each) ---------
    h1 = jnp.maximum(jnp.dot(fc1_row.astype(bf16), wf1_ref[...],
                             preferred_element_type=f32) + bf1_ref[...], 0.0)
    h2 = jnp.maximum(jnp.dot(h1.astype(bf16), wf2_ref[...],
                             preferred_element_type=f32) + bf2_ref[...], 0.0)
    logits = jnp.dot(h2.astype(bf16), wf3_ref[...],
                     preferred_element_type=f32) + bf3_ref[...]
    out_ref[0] = jnp.broadcast_to(logits, (8, LANES))


# ------------------------------ host-side glue -------------------------------

def _conv1_patches(x_nhwc):
    # TODO(synk): conv1's im2col (+ pool-cohort row grouping) stays in XLA; a
    # fully in-kernel version needs tiled-dim reshapes Mosaic does not support.
    n = x_nhwc.shape[0]
    cols = []
    for dy in range(5):
        for dx in range(5):
            cols.append(x_nhwc[:, dy:dy + 28, dx:dx + 28, :])
    p = jnp.concatenate(cols, axis=-1)                       # (N, 28, 28, 75)
    # (n, oh, ow, K) -> (n, i, a, b, j, K) with oh = 2i+a, ow = 2j+b so each
    # (n, i) block stores its 4 pooling cohorts as contiguous 16-row groups.
    p = p.reshape(n, 14, 2, 14, 2, K1).transpose(0, 1, 2, 4, 3, 5)
    p = jnp.pad(p, ((0, 0), (0, 0), (0, 0), (0, 0), (0, GRP1 - 14), (0, 0)))
    p = p.reshape(n, 14 * BLK1, K1)
    p = jnp.pad(p, ((0, 0), (0, 0), (0, LANES - K1)))        # K: 75 -> 128
    return p.astype(jnp.bfloat16)


def pack_lenet5_params(params):
    """One-time weight repacking: pad to 128 lanes, permute, cast to bf16."""
    f32, bf16 = jnp.float32, jnp.bfloat16

    def pad2(a, rows, cols):
        return jnp.zeros((rows, cols), f32).at[:a.shape[0], :a.shape[1]].set(a)

    # conv1: (OC, C, KH, KW) -> (KH*KW*C, OC), matching the im2col K ordering.
    w1 = jnp.transpose(params["w_conv1"], (2, 3, 1, 0)).reshape(K1, 6)
    # conv2: per-tap (Cin, OC) matrices, tap index k = dy*5 + dx.
    w2 = jnp.transpose(params["w_conv2"], (2, 3, 1, 0)).reshape(25, 6, 16)

    # fc1: packed for the in-kernel lane-packed pooled2 row.  Packed-row lane
    # index = pi*128 + 16*pj + c  <->  torch fc1 input index c*25 + pi*5 + pj.
    wf1_t = jnp.transpose(params["w_fc1"].reshape(120, 16, 5, 5),
                          (2, 3, 1, 0))                       # [h, w, c, o]
    wf1p = jnp.zeros((5, LANES, LANES), f32)
    for pj in range(5):
        w_pj = wf1_t[:, pj, :, :]                             # (5, 16, 120)
        wf1p = wf1p.at[:, 16 * pj:16 * pj + 16, :120].set(w_pj)
        if pj:
            # Mirror copy so the kernel is correct for either pltpu.roll
            # direction convention; the unused copy multiplies exact zeros.
            wf1p = wf1p.at[:, LANES - 16 * pj:LANES - 16 * pj + 16, :120].set(w_pj)

    return {
        "w1": pad2(w1, LANES, LANES).astype(bf16),
        "b1": jnp.zeros((1, LANES), f32).at[0, :6].set(params["b_conv1"]),
        "w2": jnp.zeros((25, LANES, LANES), f32).at[:, :6, :16].set(w2).astype(bf16),
        "b2": jnp.zeros((1, LANES), f32).at[0, :16].set(params["b_conv2"]),
        "wf1": wf1p.reshape(5 * LANES, LANES).astype(bf16),
        "bf1": jnp.zeros((1, LANES), f32).at[0, :120].set(params["b_fc1"]),
        "wf2": pad2(params["w_fc2"].T, LANES, LANES).astype(bf16),
        "bf2": jnp.zeros((1, LANES), f32).at[0, :84].set(params["b_fc2"]),
        "wf3": pad2(params["w_fc3"].T, LANES, LANES).astype(bf16),
        "bf3": jnp.zeros((1, LANES), f32).at[0, :10].set(params["b_fc3"]),
    }


@jax.jit
def lenet5_forward(x_nchw, packed):
    n = x_nchw.shape[0]
    x = jnp.transpose(x_nchw, (0, 2, 3, 1)).astype(jnp.float32)   # NCHW -> NHWC
    p1 = _conv1_patches(x)                                        # (n, 896, 128)

    grid_spec = pltpu.PrefetchScalarGridSpec(
        num_scalar_prefetch=0,
        grid=(n,),
        in_specs=[
            pl.BlockSpec((1, 14 * BLK1, LANES), lambda i: (i, 0, 0)),  # p1 per sample
            pl.BlockSpec((LANES, LANES), lambda i: (0, 0)),            # w1 (resident)
            pl.BlockSpec((1, LANES), lambda i: (0, 0)),                # b1
            pl.BlockSpec((25, LANES, LANES), lambda i: (0, 0, 0)),     # w2
            pl.BlockSpec((1, LANES), lambda i: (0, 0)),                # b2
            pl.BlockSpec((5 * LANES, LANES), lambda i: (0, 0)),        # wf1 (640,128)
            pl.BlockSpec((1, LANES), lambda i: (0, 0)),                # bf1
            pl.BlockSpec((LANES, LANES), lambda i: (0, 0)),            # wf2
            pl.BlockSpec((1, LANES), lambda i: (0, 0)),                # bf2
            pl.BlockSpec((LANES, LANES), lambda i: (0, 0)),            # wf3
            pl.BlockSpec((1, LANES), lambda i: (0, 0)),                # bf3
        ],
        out_specs=pl.BlockSpec((1, 8, LANES), lambda i: (i, 0, 0)),
        scratch_shapes=[pltpu.VMEM((P1ROWS, LANES), jnp.float32)],     # pooled conv1
    )
    out = pl.pallas_call(
        _lenet5_kernel,
        out_shape=jax.ShapeDtypeStruct((n, 8, LANES), jnp.float32),
        grid_spec=grid_spec,
        compiler_params=pltpu.CompilerParams(
            dimension_semantics=("parallel",)),
    )(p1, packed["w1"], packed["b1"], packed["w2"], packed["b2"],
      packed["wf1"], packed["bf1"], packed["wf2"], packed["bf2"],
      packed["wf3"], packed["bf3"])
    return out[:, 0, :10]                                   # drop sublane/lane padding


# ------------------------------ reference & test -----------------------------

def init_lenet5_params(key):
    # Deterministic init mimicking PyTorch's default U(-1/sqrt(fan_in), +...).
    def uniform(k, shape, fan_in):
        bound = 1.0 / (fan_in ** 0.5)
        return jax.random.uniform(k, shape, jnp.float32, -bound, bound)

    ks = jax.random.split(key, 10)
    return {
        "w_conv1": uniform(ks[0], (6, 3, 5, 5), 3 * 5 * 5),
        "b_conv1": uniform(ks[1], (6,), 3 * 5 * 5),
        "w_conv2": uniform(ks[2], (16, 6, 5, 5), 6 * 5 * 5),
        "b_conv2": uniform(ks[3], (16,), 6 * 5 * 5),
        "w_fc1": uniform(ks[4], (120, 400), 400),
        "b_fc1": uniform(ks[5], (120,), 400),
        "w_fc2": uniform(ks[6], (84, 120), 120),
        "b_fc2": uniform(ks[7], (84,), 120),
        "w_fc3": uniform(ks[8], (10, 84), 84),
        "b_fc3": uniform(ks[9], (10,), 84),
    }


def lenet5_reference(x_nchw, params):
    hi = jax.lax.Precision.HIGHEST

    def conv(x, w, b):
        y = jax.lax.conv_general_dilated(
            x, w, window_strides=(1, 1), padding="VALID",
            dimension_numbers=("NCHW", "OIHW", "NCHW"), precision=hi)
        return y + b[None, :, None, None]

    def pool(x):
        return jax.lax.reduce_window(x, -jnp.inf, jax.lax.max,
                                     (1, 1, 2, 2), (1, 1, 2, 2), "VALID")

    y = pool(jax.nn.relu(conv(x_nchw, params["w_conv1"], params["b_conv1"])))
    y = pool(jax.nn.relu(conv(y, params["w_conv2"], params["b_conv2"])))
    y = y.reshape(y.shape[0], -1)
    y = jax.nn.relu(y @ params["w_fc1"].T + params["b_fc1"])
    y = jax.nn.relu(y @ params["w_fc2"].T + params["b_fc2"])
    return y @ params["w_fc3"].T + params["b_fc3"]


if __name__ == "__main__":
    key = jax.random.PRNGKey(0)
    k_params, k_x = jax.random.split(key)
    params = init_lenet5_params(k_params)
    packed = pack_lenet5_params(params)       # one-time packing, outside forward
    # LeNet5's fc1 (400 = 16*5*5) implies 32x32 spatial input; batch = 2.
    x = jax.random.normal(k_x, (2, 3, 32, 32), dtype=jnp.float32)

    out = lenet5_forward(x, packed)
    out = jax.block_until_ready(out)

    assert out.shape == (2, 10), out.shape
    assert bool(jnp.all(jnp.isfinite(out)))

    ref = lenet5_reference(x, params)
    max_err = float(jnp.max(jnp.abs(out - ref)))
    assert max_err < 8e-2, f"max abs error vs reference: {max_err}"
    print("KERNEL_OK")
</pallas_src>

<mosaic_0001>
module attributes {stable_mosaic.version = 11 : i64} {
  func.func @_lenet5_kernel(%arg0: i32, %arg1: memref<1x896x128xbf16, #tpu.memory_space<vmem>>, %arg2: memref<128x128xbf16, #tpu.memory_space<vmem>>, %arg3: memref<1x128xf32, #tpu.memory_space<vmem>>, %arg4: memref<25x128x128xbf16, #tpu.memory_space<vmem>>, %arg5: memref<1x128xf32, #tpu.memory_space<vmem>>, %arg6: memref<640x128xbf16, #tpu.memory_space<vmem>>, %arg7: memref<1x128xf32, #tpu.memory_space<vmem>>, %arg8: memref<128x128xbf16, #tpu.memory_space<vmem>>, %arg9: memref<1x128xf32, #tpu.memory_space<vmem>>, %arg10: memref<128x128xbf16, #tpu.memory_space<vmem>>, %arg11: memref<1x128xf32, #tpu.memory_space<vmem>>, %arg12: memref<1x8x128xf32, #tpu.memory_space<vmem>>, %arg13: memref<256x128xf32, #tpu.memory_space<vmem>>) attributes {dimension_semantics = [#tpu.dimension_semantics<parallel>], iteration_bounds = array<i64: 2>, scalar_prefetch = 0 : i64, scratch_operands = 1 : i64, tpu.core_type = #tpu.core_type<tc>, window_params = [{transform_indices = @transform_0, window_bounds = array<i64: 1, 896, 128>}, {pipeline_mode = #tpu.pipeline_mode<synchronous>, transform_indices = @transform_1, window_bounds = array<i64: 128, 128>}, {pipeline_mode = #tpu.pipeline_mode<synchronous>, transform_indices = @transform_2, window_bounds = array<i64: 1, 128>}, {pipeline_mode = #tpu.pipeline_mode<synchronous>, transform_indices = @transform_3, window_bounds = array<i64: 25, 128, 128>}, {pipeline_mode = #tpu.pipeline_mode<synchronous>, transform_indices = @transform_4, window_bounds = array<i64: 1, 128>}, {pipeline_mode = #tpu.pipeline_mode<synchronous>, transform_indices = @transform_5, window_bounds = array<i64: 640, 128>}, {pipeline_mode = #tpu.pipeline_mode<synchronous>, transform_indices = @transform_6, window_bounds = array<i64: 1, 128>}, {pipeline_mode = #tpu.pipeline_mode<synchronous>, transform_indices = @transform_7, window_bounds = array<i64: 128, 128>}, {pipeline_mode = #tpu.pipeline_mode<synchronous>, transform_indices = @transform_8, window_bounds = array<i64: 1, 128>}, {pipeline_mode = #tpu.pipeline_mode<synchronous>, transform_indices = @transform_9, window_bounds = array<i64: 128, 128>}, {pipeline_mode = #tpu.pipeline_mode<synchronous>, transform_indices = @transform_10, window_bounds = array<i64: 1, 128>}, {transform_indices = @transform_11, window_bounds = array<i64: 1, 8, 128>}]} {
    %c0 = arith.constant 0 : index
    %c0_0 = arith.constant 0 : index
    %0 = vector.load %arg2[%c0, %c0_0] : memref<128x128xbf16, #tpu.memory_space<vmem>>, vector<128x128xbf16>
    %c0_1 = arith.constant 0 : index
    %c0_2 = arith.constant 0 : index
    %1 = vector.load %arg3[%c0_1, %c0_2] : memref<1x128xf32, #tpu.memory_space<vmem>>, vector<1x128xf32>
    %cst = arith.constant 0.000000e+00 : f32
    %2 = vector.broadcast %cst : f32 to vector<32x128xf32>
    %c224 = arith.constant 224 : index
    %c0_3 = arith.constant 0 : index
    %3 = vector.load %arg13[%c224, %c0_3] : memref<256x128xf32, #tpu.memory_space<vmem>>, vector<32x128xf32>
    tpu.vector_store %arg13[%c224, %c0_3], %2 {strides = array<i32>} : memref<256x128xf32, #tpu.memory_space<vmem>>, vector<32x128xf32>,
    %c0_4 = arith.constant 0 : index
    %c0_5 = arith.constant 0 : index
    %c0_6 = arith.constant 0 : index
    %4 = vector.load %arg1[%c0_4, %c0_5, %c0_6] : memref<1x896x128xbf16, #tpu.memory_space<vmem>>, vector<1x128x128xbf16>
    %5 = vector.shape_cast %4 : vector<1x128x128xbf16> to vector<128x128xbf16>
    %cst_7 = arith.constant dense<0.000000e+00> : vector<128x128xf32>
    %6 = tpu.matmul %5, %0, %cst_7 {dimension_numbers = #tpu.dot_dimension_numbers<[1], [0], [0], [1], [0, 0, 1, 1], [], []>} : vector<128x128xbf16>, vector<128x128xbf16>, vector<128x128xf32> -> vector<128x128xf32>
    %7 = vector.shape_cast %6 : vector<128x128xf32> to vector<2x4x16x128xf32>
    %8 = vector.extract_strided_slice %7 {offsets = [0, 0, 0, 0], sizes = [2, 1, 16, 128], strides = [1, 1, 1, 1]} : vector<2x4x16x128xf32> to vector<2x1x16x128xf32>
    %9 = vector.shape_cast %8 : vector<2x1x16x128xf32> to vector<2x16x128xf32>
    %10 = vector.extract_strided_slice %7 {offsets = [0, 1, 0, 0], sizes = [2, 1, 16, 128], strides = [1, 1, 1, 1]} : vector<2x4x16x128xf32> to vector<2x1x16x128xf32>
    %11 = vector.shape_cast %10 : vector<2x1x16x128xf32> to vector<2x16x128xf32>
    %12 = arith.maximumf %9, %11 : vector<2x16x128xf32>
    %13 = vector.extract_strided_slice %7 {offsets = [0, 2, 0, 0], sizes = [2, 1, 16, 128], strides = [1, 1, 1, 1]} : vector<2x4x16x128xf32> to vector<2x1x16x128xf32>
    %14 = vector.shape_cast %13 : vector<2x1x16x128xf32> to vector<2x16x128xf32>
    %15 = vector.extract_strided_slice %7 {offsets = [0, 3, 0, 0], sizes = [2, 1, 16, 128], strides = [1, 1, 1, 1]} : vector<2x4x16x128xf32> to vector<2x1x16x128xf32>
    %16 = vector.shape_cast %15 : vector<2x1x16x128xf32> to vector<2x16x128xf32>
    %17 = arith.maximumf %14, %16 : vector<2x16x128xf32>
    %18 = arith.maximumf %12, %17 : vector<2x16x128xf32>
    %19 = vector.shape_cast %18 : vector<2x16x128xf32> to vector<32x128xf32>
    %20 = vector.broadcast %1 : vector<1x128xf32> to vector<32x128xf32>
    %21 = arith.addf %19, %20 : vector<32x128xf32>
    %cst_8 = arith.constant 0.000000e+00 : f32
    %22 = vector.broadcast %cst_8 : f32 to vector<32x128xf32>
    %23 = arith.maximumf %21, %22 : vector<32x128xf32>
    %c0_9 = arith.constant 0 : index
    %c0_10 = arith.constant 0 : index
    %24 = vector.load %arg13[%c0_9, %c0_10] : memref<256x128xf32, #tpu.memory_space<vmem>>, vector<32x128xf32>
    tpu.vector_store %arg13[%c0_9, %c0_10], %23 {strides = array<i32>} : memref<256x128xf32, #tpu.memory_space<vmem>>, vector<32x128xf32>,
    %c0_11 = arith.constant 0 : index
    %c128 = arith.constant 128 : index
    %c0_12 = arith.constant 0 : index
    %25 = vector.load %arg1[%c0_11, %c128, %c0_12] : memref<1x896x128xbf16, #tpu.memory_space<vmem>>, vector<1x128x128xbf16>
    %26 = vector.shape_cast %25 : vector<1x128x128xbf16> to vector<128x128xbf16>
    %cst_13 = arith.constant dense<0.000000e+00> : vector<128x128xf32>
    %27 = tpu.matmul %26, %0, %cst_13 {dimension_numbers = #tpu.dot_dimension_numbers<[1], [0], [0], [1], [0, 0, 1, 1], [], []>} : vector<128x128xbf16>, vector<128x128xbf16>, vector<128x128xf32> -> vector<128x128xf32>
    %28 = vector.shape_cast %27 : vector<128x128xf32> to vector<2x4x16x128xf32>
    %29 = vector.extract_strided_slice %28 {offsets = [0, 0, 0, 0], sizes = [2, 1, 16, 128], strides = [1, 1, 1, 1]} : vector<2x4x16x128xf32> to vector<2x1x16x128xf32>
    %30 = vector.shape_cast %29 : vector<2x1x16x128xf32> to vector<2x16x128xf32>
    %31 = vector.extract_strided_slice %28 {offsets = [0, 1, 0, 0], sizes = [2, 1, 16, 128], strides = [1, 1, 1, 1]} : vector<2x4x16x128xf32> to vector<2x1x16x128xf32>
    %32 = vector.shape_cast %31 : vector<2x1x16x128xf32> to vector<2x16x128xf32>
    %33 = arith.maximumf %30, %32 : vector<2x16x128xf32>
    %34 = vector.extract_strided_slice %28 {offsets = [0, 2, 0, 0], sizes = [2, 1, 16, 128], strides = [1, 1, 1, 1]} : vector<2x4x16x128xf32> to vector<2x1x16x128xf32>
    %35 = vector.shape_cast %34 : vector<2x1x16x128xf32> to vector<2x16x128xf32>
    %36 = vector.extract_strided_slice %28 {offsets = [0, 3, 0, 0], sizes = [2, 1, 16, 128], strides = [1, 1, 1, 1]} : vector<2x4x16x128xf32> to vector<2x1x16x128xf32>
    %37 = vector.shape_cast %36 : vector<2x1x16x128xf32> to vector<2x16x128xf32>
    %38 = arith.maximumf %35, %37 : vector<2x16x128xf32>
    %39 = arith.maximumf %33, %38 : vector<2x16x128xf32>
    %40 = vector.shape_cast %39 : vector<2x16x128xf32> to vector<32x128xf32>
    %41 = vector.broadcast %1 : vector<1x128xf32> to vector<32x128xf32>
    %42 = arith.addf %40, %41 : vector<32x128xf32>
    %cst_14 = arith.constant 0.000000e+00 : f32
    %43 = vector.broadcast %cst_14 : f32 to vector<32x128xf32>
    %44 = arith.maximumf %42, %43 : vector<32x128xf32>
    %c32 = arith.constant 32 : index
    %c0_15 = arith.constant 0 : index
    %45 = vector.load %arg13[%c32, %c0_15] : memref<256x128xf32, #tpu.memory_space<vmem>>, vector<32x128xf32>
    tpu.vector_store %arg13[%c32, %c0_15], %44 {strides = array<i32>} : memref<256x128xf32, #tpu.memory_space<vmem>>, vector<32x128xf32>,
    %c0_16 = arith.constant 0 : index
    %c256 = arith.constant 256 : index
    %c0_17 = arith.constant 0 : index
    %46 = vector.load %arg1[%c0_16, %c256, %c0_17] : memref<1x896x128xbf16, #tpu.memory_space<vmem>>, vector<1x128x128xbf16>
    %47 = vector.shape_cast %46 : vector<1x128x128xbf16> to vector<128x128xbf16>
    %cst_18 = arith.constant dense<0.000000e+00> : vector<128x128xf32>
    %48 = tpu.matmul %47, %0, %cst_18 {dimension_numbers = #tpu.dot_dimension_numbers<[1], [0], [0], [1], [0, 0, 1, 1], [], []>} : vector<128x128xbf16>, vector<128x128xbf16>, vector<128x128xf32> -> vector<128x128xf32>
    %49 = vector.shape_cast %48 : vector<128x128xf32> to vector<2x4x16x128xf32>
    %50 = vector.extract_strided_slice %49 {offsets = [0, 0, 0, 0], sizes = [2, 1, 16, 128], strides = [1, 1, 1, 1]} : vector<2x4x16x128xf32> to vector<2x1x16x128xf32>
    %51 = vector.shape_cast %50 : vector<2x1x16x128xf32> to vector<2x16x128xf32>
    %52 = vector.extract_strided_slice %49 {offsets = [0, 1, 0, 0], sizes = [2, 1, 16, 128], strides = [1, 1, 1, 1]} : vector<2x4x16x128xf32> to vector<2x1x16x128xf32>
    %53 = vector.shape_cast %52 : vector<2x1x16x128xf32> to vector<2x16x128xf32>
    %54 = arith.maximumf %51, %53 : vector<2x16x128xf32>
    %55 = vector.extract_strided_slice %49 {offsets = [0, 2, 0, 0], sizes = [2, 1, 16, 128], strides = [1, 1, 1, 1]} : vector<2x4x16x128xf32> to vector<2x1x16x128xf32>
    %56 = vector.shape_cast %55 : vector<2x1x16x128xf32> to vector<2x16x128xf32>
    %57 = vector.extract_strided_slice %49 {offsets = [0, 3, 0, 0], sizes = [2, 1, 16, 128], strides = [1, 1, 1, 1]} : vector<2x4x16x128xf32> to vector<2x1x16x128xf32>
    %58 = vector.shape_cast %57 : vector<2x1x16x128xf32> to vector<2x16x128xf32>
    %59 = arith.maximumf %56, %58 : vector<2x16x128xf32>
    %60 = arith.maximumf %54, %59 : vector<2x16x128xf32>
    %61 = vector.shape_cast %60 : vector<2x16x128xf32> to vector<32x128xf32>
    %62 = vector.broadcast %1 : vector<1x128xf32> to vector<32x128xf32>
    %63 = arith.addf %61, %62 : vector<32x128xf32>
    %cst_19 = arith.constant 0.000000e+00 : f32
    %64 = vector.broadcast %cst_19 : f32 to vector<32x128xf32>
    %65 = arith.maximumf %63, %64 : vector<32x128xf32>
    %c64 = arith.constant 64 : index
    %c0_20 = arith.constant 0 : index
    %66 = vector.load %arg13[%c64, %c0_20] : memref<256x128xf32, #tpu.memory_space<vmem>>, vector<32x128xf32>
    tpu.vector_store %arg13[%c64, %c0_20], %65 {strides = array<i32>} : memref<256x128xf32, #tpu.memory_space<vmem>>, vector<32x128xf32>,
    %c0_21 = arith.constant 0 : index
    %c384 = arith.constant 384 : index
    %c0_22 = arith.constant 0 : index
    %67 = vector.load %arg1[%c0_21, %c384, %c0_22] : memref<1x896x128xbf16, #tpu.memory_space<vmem>>, vector<1x128x128xbf16>
    %68 = vector.shape_cast %67 : vector<1x128x128xbf16> to vector<128x128xbf16>
    %cst_23 = arith.constant dense<0.000000e+00> : vector<128x128xf32>
    %69 = tpu.matmul %68, %0, %cst_23 {dimension_numbers = #tpu.dot_dimension_numbers<[1], [0], [0], [1], [0, 0, 1, 1], [], []>} : vector<128x128xbf16>, vector<128x128xbf16>, vector<128x128xf32> -> vector<128x128xf32>
    %70 = vector.shape_cast %69 : vector<128x128xf32> to vector<2x4x16x128xf32>
    %71 = vector.extract_strided_slice %70 {offsets = [0, 0, 0, 0], sizes = [2, 1, 16, 128], strides = [1, 1, 1, 1]} : vector<2x4x16x128xf32> to vector<2x1x16x128xf32>
    %72 = vector.shape_cast %71 : vector<2x1x16x128xf32> to vector<2x16x128xf32>
    %73 = vector.extract_strided_slice %70 {offsets = [0, 1, 0, 0], sizes = [2, 1, 16, 128], strides = [1, 1, 1, 1]} : vector<2x4x16x128xf32> to vector<2x1x16x128xf32>
    %74 = vector.shape_cast %73 : vector<2x1x16x128xf32> to vector<2x16x128xf32>
    %75 = arith.maximumf %72, %74 : vector<2x16x128xf32>
    %76 = vector.extract_strided_slice %70 {offsets = [0, 2, 0, 0], sizes = [2, 1, 16, 128], strides = [1, 1, 1, 1]} : vector<2x4x16x128xf32> to vector<2x1x16x128xf32>
    %77 = vector.shape_cast %76 : vector<2x1x16x128xf32> to vector<2x16x128xf32>
    %78 = vector.extract_strided_slice %70 {offsets = [0, 3, 0, 0], sizes = [2, 1, 16, 128], strides = [1, 1, 1, 1]} : vector<2x4x16x128xf32> to vector<2x1x16x128xf32>
    %79 = vector.shape_cast %78 : vector<2x1x16x128xf32> to vector<2x16x128xf32>
    %80 = arith.maximumf %77, %79 : vector<2x16x128xf32>
    %81 = arith.maximumf %75, %80 : vector<2x16x128xf32>
    %82 = vector.shape_cast %81 : vector<2x16x128xf32> to vector<32x128xf32>
    %83 = vector.broadcast %1 : vector<1x128xf32> to vector<32x128xf32>
    %84 = arith.addf %82, %83 : vector<32x128xf32>
    %cst_24 = arith.constant 0.000000e+00 : f32
    %85 = vector.broadcast %cst_24 : f32 to vector<32x128xf32>
    %86 = arith.maximumf %84, %85 : vector<32x128xf32>
    %c96 = arith.constant 96 : index
    %c0_25 = arith.constant 0 : index
    %87 = vector.load %arg13[%c96, %c0_25] : memref<256x128xf32, #tpu.memory_space<vmem>>, vector<32x128xf32>
    tpu.vector_store %arg13[%c96, %c0_25], %86 {strides = array<i32>} : memref<256x128xf32, #tpu.memory_space<vmem>>, vector<32x128xf32>,
    %c0_26 = arith.constant 0 : index
    %c512 = arith.constant 512 : index
    %c0_27 = arith.constant 0 : index
    %88 = vector.load %arg1[%c0_26, %c512, %c0_27] : memref<1x896x128xbf16, #tpu.memory_space<vmem>>, vector<1x128x128xbf16>
    %89 = vector.shape_cast %88 : vector<1x128x128xbf16> to vector<128x128xbf16>
    %cst_28 = arith.constant dense<0.000000e+00> : vector<128x128xf32>
    %90 = tpu.matmul %89, %0, %cst_28 {dimension_numbers = #tpu.dot_dimension_numbers<[1], [0], [0], [1], [0, 0, 1, 1], [], []>} : vector<128x128xbf16>, vector<128x128xbf16>, vector<128x128xf32> -> vector<128x128xf32>
    %91 = vector.shape_cast %90 : vector<128x128xf32> to vector<2x4x16x128xf32>
    %92 = vector.extract_strided_slice %91 {offsets = [0, 0, 0, 0], sizes = [2, 1, 16, 128], strides = [1, 1, 1, 1]} : vector<2x4x16x128xf32> to vector<2x1x16x128xf32>
    %93 = vector.shape_cast %92 : vector<2x1x16x128xf32> to vector<2x16x128xf32>
    %94 = vector.extract_strided_slice %91 {offsets = [0, 1, 0, 0], sizes = [2, 1, 16, 128], strides = [1, 1, 1, 1]} : vector<2x4x16x128xf32> to vector<2x1x16x128xf32>
    %95 = vector.shape_cast %94 : vector<2x1x16x128xf32> to vector<2x16x128xf32>
    %96 = arith.maximumf %93, %95 : vector<2x16x128xf32>
    %97 = vector.extract_strided_slice %91 {offsets = [0, 2, 0, 0], sizes = [2, 1, 16, 128], strides = [1, 1, 1, 1]} : vector<2x4x16x128xf32> to vector<2x1x16x128xf32>
    %98 = vector.shape_cast %97 : vector<2x1x16x128xf32> to vector<2x16x128xf32>
    %99 = vector.extract_strided_slice %91 {offsets = [0, 3, 0, 0], sizes = [2, 1, 16, 128], strides = [1, 1, 1, 1]} : vector<2x4x16x128xf32> to vector<2x1x16x128xf32>
    %100 = vector.shape_cast %99 : vector<2x1x16x128xf32> to vector<2x16x128xf32>
    %101 = arith.maximumf %98, %100 : vector<2x16x128xf32>
    %102 = arith.maximumf %96, %101 : vector<2x16x128xf32>
    %103 = vector.shape_cast %102 : vector<2x16x128xf32> to vector<32x128xf32>
    %104 = vector.broadcast %1 : vector<1x128xf32> to vector<32x128xf32>
    %105 = arith.addf %103, %104 : vector<32x128xf32>
    %cst_29 = arith.constant 0.000000e+00 : f32
    %106 = vector.broadcast %cst_29 : f32 to vector<32x128xf32>
    %107 = arith.maximumf %105, %106 : vector<32x128xf32>
    %c128_30 = arith.constant 128 : index
    %c0_31 = arith.constant 0 : index
    %108 = vector.load %arg13[%c128_30, %c0_31] : memref<256x128xf32, #tpu.memory_space<vmem>>, vector<32x128xf32>
    tpu.vector_store %arg13[%c128_30, %c0_31], %107 {strides = array<i32>} : memref<256x128xf32, #tpu.memory_space<vmem>>, vector<32x128xf32>,
    %c0_32 = arith.constant 0 : index
    %c640 = arith.constant 640 : index
    %c0_33 = arith.constant 0 : index
    %109 = vector.load %arg1[%c0_32, %c640, %c0_33] : memref<1x896x128xbf16, #tpu.memory_space<vmem>>, vector<1x128x128xbf16>
    %110 = vector.shape_cast %109 : vector<1x128x128xbf16> to vector<128x128xbf16>
    %cst_34 = arith.constant dense<0.000000e+00> : vector<128x128xf32>
    %111 = tpu.matmul %110, %0, %cst_34 {dimension_numbers = #tpu.dot_dimension_numbers<[1], [0], [0], [1], [0, 0, 1, 1], [], []>} : vector<128x128xbf16>, vector<128x128xbf16>, vector<128x128xf32> -> vector<128x128xf32>
    %112 = vector.shape_cast %111 : vector<128x128xf32> to vector<2x4x16x128xf32>
    %113 = vector.extract_strided_slice %112 {offsets = [0, 0, 0, 0], sizes = [2, 1, 16, 128], strides = [1, 1, 1, 1]} : vector<2x4x16x128xf32> to vector<2x1x16x128xf32>
    %114 = vector.shape_cast %113 : vector<2x1x16x128xf32> to vector<2x16x128xf32>
    %115 = vector.extract_strided_slice %112 {offsets = [0, 1, 0, 0], sizes = [2, 1, 16, 128], strides = [1, 1, 1, 1]} : vector<2x4x16x128xf32> to vector<2x1x16x128xf32>
    %116 = vector.shape_cast %115 : vector<2x1x16x128xf32> to vector<2x16x128xf32>
    %117 = arith.maximumf %114, %116 : vector<2x16x128xf32>
    %118 = vector.extract_strided_slice %112 {offsets = [0, 2, 0, 0], sizes = [2, 1, 16, 128], strides = [1, 1, 1, 1]} : vector<2x4x16x128xf32> to vector<2x1x16x128xf32>
    %119 = vector.shape_cast %118 : vector<2x1x16x128xf32> to vector<2x16x128xf32>
    %120 = vector.extract_strided_slice %112 {offsets = [0, 3, 0, 0], sizes = [2, 1, 16, 128], strides = [1, 1, 1, 1]} : vector<2x4x16x128xf32> to vector<2x1x16x128xf32>
    %121 = vector.shape_cast %120 : vector<2x1x16x128xf32> to vector<2x16x128xf32>
    %122 = arith.maximumf %119, %121 : vector<2x16x128xf32>
    %123 = arith.maximumf %117, %122 : vector<2x16x128xf32>
    %124 = vector.shape_cast %123 : vector<2x16x128xf32> to vector<32x128xf32>
    %125 = vector.broadcast %1 : vector<1x128xf32> to vector<32x128xf32>
    %126 = arith.addf %124, %125 : vector<32x128xf32>
    %cst_35 = arith.constant 0.000000e+00 : f32
    %127 = vector.broadcast %cst_35 : f32 to vector<32x128xf32>
    %128 = arith.maximumf %126, %127 : vector<32x128xf32>
    %c160 = arith.constant 160 : index
    %c0_36 = arith.constant 0 : index
    %129 = vector.load %arg13[%c160, %c0_36] : memref<256x128xf32, #tpu.memory_space<vmem>>, vector<32x128xf32>
    tpu.vector_store %arg13[%c160, %c0_36], %128 {strides = array<i32>} : memref<256x128xf32, #tpu.memory_space<vmem>>, vector<32x128xf32>,
    %c0_37 = arith.constant 0 : index
    %c768 = arith.constant 768 : index
    %c0_38 = arith.constant 0 : index
    %130 = vector.load %arg1[%c0_37, %c768, %c0_38] : memref<1x896x128xbf16, #tpu.memory_space<vmem>>, vector<1x128x128xbf16>
    %131 = vector.shape_cast %130 : vector<1x128x128xbf16> to vector<128x128xbf16>
    %cst_39 = arith.constant dense<0.000000e+00> : vector<128x128xf32>
    %132 = tpu.matmul %131, %0, %cst_39 {dimension_numbers = #tpu.dot_dimension_numbers<[1], [0], [0], [1], [0, 0, 1, 1], [], []>} : vector<128x128xbf16>, vector<128x128xbf16>, vector<128x128xf32> -> vector<128x128xf32>
    %133 = vector.shape_cast %132 : vector<128x128xf32> to vector<2x4x16x128xf32>
    %134 = vector.extract_strided_slice %133 {offsets = [0, 0, 0, 0], sizes = [2, 1, 16, 128], strides = [1, 1, 1, 1]} : vector<2x4x16x128xf32> to vector<2x1x16x128xf32>
    %135 = vector.shape_cast %134 : vector<2x1x16x128xf32> to vector<2x16x128xf32>
    %136 = vector.extract_strided_slice %133 {offsets = [0, 1, 0, 0], sizes = [2, 1, 16, 128], strides = [1, 1, 1, 1]} : vector<2x4x16x128xf32> to vector<2x1x16x128xf32>
    %137 = vector.shape_cast %136 : vector<2x1x16x128xf32> to vector<2x16x128xf32>
    %138 = arith.maximumf %135, %137 : vector<2x16x128xf32>
    %139 = vector.extract_strided_slice %133 {offsets = [0, 2, 0, 0], sizes = [2, 1, 16, 128], strides = [1, 1, 1, 1]} : vector<2x4x16x128xf32> to vector<2x1x16x128xf32>
    %140 = vector.shape_cast %139 : vector<2x1x16x128xf32> to vector<2x16x128xf32>
    %141 = vector.extract_strided_slice %133 {offsets = [0, 3, 0, 0], sizes = [2, 1, 16, 128], strides = [1, 1, 1, 1]} : vector<2x4x16x128xf32> to vector<2x1x16x128xf32>
    %142 = vector.shape_cast %141 : vector<2x1x16x128xf32> to vector<2x16x128xf32>
    %143 = arith.maximumf %140, %142 : vector<2x16x128xf32>
    %144 = arith.maximumf %138, %143 : vector<2x16x128xf32>
    %145 = vector.shape_cast %144 : vector<2x16x128xf32> to vector<32x128xf32>
    %146 = vector.broadcast %1 : vector<1x128xf32> to vector<32x128xf32>
    %147 = arith.addf %145, %146 : vector<32x128xf32>
    %cst_40 = arith.constant 0.000000e+00 : f32
    %148 = vector.broadcast %cst_40 : f32 to vector<32x128xf32>
    %149 = arith.maximumf %147, %148 : vector<32x128xf32>
    %c192 = arith.constant 192 : index
    %c0_41 = arith.constant 0 : index
    %150 = vector.load %arg13[%c192, %c0_41] : memref<256x128xf32, #tpu.memory_space<vmem>>, vector<32x128xf32>
    tpu.vector_store %arg13[%c192, %c0_41], %149 {strides = array<i32>} : memref<256x128xf32, #tpu.memory_space<vmem>>, vector<32x128xf32>,
    %cst_42 = arith.constant 0.000000e+00 : f32
    %151 = vector.broadcast %cst_42 : f32 to vector<160x128xf32>
    %c0_43 = arith.constant 0 : index
    %c0_44 = arith.constant 0 : index
    %152 = vector.load %arg13[%c0_43, %c0_44] : memref<256x128xf32, #tpu.memory_space<vmem>>, vector<160x128xf32>
    %153 = arith.truncf %152 : vector<160x128xf32> to vector<160x128xbf16>
    %c0_45 = arith.constant 0 : index
    %c0_46 = arith.constant 0 : index
    %c0_47 = arith.constant 0 : index
    %154 = vector.load %arg4[%c0_45, %c0_46, %c0_47] : memref<25x128x128xbf16, #tpu.memory_space<vmem>>, vector<1x128x128xbf16>
    %155 = vector.shape_cast %154 : vector<1x128x128xbf16> to vector<128x128xbf16>
    %cst_48 = arith.constant dense<0.000000e+00> : vector<160x128xf32>
    %156 = tpu.matmul %153, %155, %cst_48 {dimension_numbers = #tpu.dot_dimension_numbers<[1], [0], [0], [1], [0, 0, 1, 1], [], []>} : vector<160x128xbf16>, vector<128x128xbf16>, vector<160x128xf32> -> vector<160x128xf32>
    %157 = arith.addf %151, %156 : vector<160x128xf32>
    %c1 = arith.constant 1 : index
    %c0_49 = arith.constant 0 : index
    %158 = vector.load %arg13[%c1, %c0_49] : memref<256x128xf32, #tpu.memory_space<vmem>>, vector<160x128xf32>
    %159 = arith.truncf %158 : vector<160x128xf32> to vector<160x128xbf16>
    %c1_50 = arith.constant 1 : index
    %c0_51 = arith.constant 0 : index
    %c0_52 = arith.constant 0 : index
    %160 = vector.load %arg4[%c1_50, %c0_51, %c0_52] : memref<25x128x128xbf16, #tpu.memory_space<vmem>>, vector<1x128x128xbf16>
    %161 = vector.shape_cast %160 : vector<1x128x128xbf16> to vector<128x128xbf16>
    %cst_53 = arith.constant dense<0.000000e+00> : vector<160x128xf32>
    %162 = tpu.matmul %159, %161, %cst_53 {dimension_numbers = #tpu.dot_dimension_numbers<[1], [0], [0], [1], [0, 0, 1, 1], [], []>} : vector<160x128xbf16>, vector<128x128xbf16>, vector<160x128xf32> -> vector<160x128xf32>
    %163 = arith.addf %157, %162 : vector<160x128xf32>
    %c2 = arith.constant 2 : index
    %c0_54 = arith.constant 0 : index
    %164 = vector.load %arg13[%c2, %c0_54] : memref<256x128xf32, #tpu.memory_space<vmem>>, vector<160x128xf32>
    %165 = arith.truncf %164 : vector<160x128xf32> to vector<160x128xbf16>
    %c2_55 = arith.constant 2 : index
    %c0_56 = arith.constant 0 : index
    %c0_57 = arith.constant 0 : index
    %166 = vector.load %arg4[%c2_55, %c0_56, %c0_57] : memref<25x128x128xbf16, #tpu.memory_space<vmem>>, vector<1x128x128xbf16>
    %167 = vector.shape_cast %166 : vector<1x128x128xbf16> to vector<128x128xbf16>
    %cst_58 = arith.constant dense<0.000000e+00> : vector<160x128xf32>
    %168 = tpu.matmul %165, %167, %cst_58 {dimension_numbers = #tpu.dot_dimension_numbers<[1], [0], [0], [1], [0, 0, 1, 1], [], []>} : vector<160x128xbf16>, vector<128x128xbf16>, vector<160x128xf32> -> vector<160x128xf32>
    %169 = arith.addf %163, %168 : vector<160x128xf32>
    %c3 = arith.constant 3 : index
    %c0_59 = arith.constant 0 : index
    %170 = vector.load %arg13[%c3, %c0_59] : memref<256x128xf32, #tpu.memory_space<vmem>>, vector<160x128xf32>
    %171 = arith.truncf %170 : vector<160x128xf32> to vector<160x128xbf16>
    %c3_60 = arith.constant 3 : index
    %c0_61 = arith.constant 0 : index
    %c0_62 = arith.constant 0 : index
    %172 = vector.load %arg4[%c3_60, %c0_61, %c0_62] : memref<25x128x128xbf16, #tpu.memory_space<vmem>>, vector<1x128x128xbf16>
    %173 = vector.shape_cast %172 : vector<1x128x128xbf16> to vector<128x128xbf16>
    %cst_63 = arith.constant dense<0.000000e+00> : vector<160x128xf32>
    %174 = tpu.matmul %171, %173, %cst_63 {dimension_numbers = #tpu.dot_dimension_numbers<[1], [0], [0], [1], [0, 0, 1, 1], [], []>} : vector<160x128xbf16>, vector<128x128xbf16>, vector<160x128xf32> -> vector<160x128xf32>
    %175 = arith.addf %169, %174 : vector<160x128xf32>
    %c4 = arith.constant 4 : index
    %c0_64 = arith.constant 0 : index
    %176 = vector.load %arg13[%c4, %c0_64] : memref<256x128xf32, #tpu.memory_space<vmem>>, vector<160x128xf32>
    %177 = arith.truncf %176 : vector<160x128xf32> to vector<160x128xbf16>
    %c4_65 = arith.constant 4 : index
    %c0_66 = arith.constant 0 : index
    %c0_67 = arith.constant 0 : index
    %178 = vector.load %arg4[%c4_65, %c0_66, %c0_67] : memref<25x128x128xbf16, #tpu.memory_space<vmem>>, vector<1x128x128xbf16>
    %179 = vector.shape_cast %178 : vector<1x128x128xbf16> to vector<128x128xbf16>
    %cst_68 = arith.constant dense<0.000000e+00> : vector<160x128xf32>
    %180 = tpu.matmul %177, %179, %cst_68 {dimension_numbers = #tpu.dot_dimension_numbers<[1], [0], [0], [1], [0, 0, 1, 1], [], []>} : vector<160x128xbf16>, vector<128x128xbf16>, vector<160x128xf32> -> vector<160x128xf32>
    %181 = arith.addf %175, %180 : vector<160x128xf32>
    %c16 = arith.constant 16 : index
    %c0_69 = arith.constant 0 : index
    %182 = vector.load %arg13[%c16, %c0_69] : memref<256x128xf32, #tpu.memory_space<vmem>>, vector<160x128xf32>
    %183 = arith.truncf %182 : vector<160x128xf32> to vector<160x128xbf16>
    %c5 = arith.constant 5 : index
    %c0_70 = arith.constant 0 : index
    %c0_71 = arith.constant 0 : index
    %184 = vector.load %arg4[%c5, %c0_70, %c0_71] : memref<25x128x128xbf16, #tpu.memory_space<vmem>>, vector<1x128x128xbf16>
    %185 = vector.shape_cast %184 : vector<1x128x128xbf16> to vector<128x128xbf16>
    %cst_72 = arith.constant dense<0.000000e+00> : vector<160x128xf32>
    %186 = tpu.matmul %183, %185, %cst_72 {dimension_numbers = #tpu.dot_dimension_numbers<[1], [0], [0], [1], [0, 0, 1, 1], [], []>} : vector<160x128xbf16>, vector<128x128xbf16>, vector<160x128xf32> -> vector<160x128xf32>
    %187 = arith.addf %181, %186 : vector<160x128xf32>
    %c17 = arith.constant 17 : index
    %c0_73 = arith.constant 0 : index
    %188 = vector.load %arg13[%c17, %c0_73] : memref<256x128xf32, #tpu.memory_space<vmem>>, vector<160x128xf32>
    %189 = arith.truncf %188 : vector<160x128xf32> to vector<160x128xbf16>
    %c6 = arith.constant 6 : index
    %c0_74 = arith.constant 0 : index
    %c0_75 = arith.constant 0 : index
    %190 = vector.load %arg4[%c6, %c0_74, %c0_75] : memref<25x128x128xbf16, #tpu.memory_space<vmem>>, vector<1x128x128xbf16>
    %191 = vector.shape_cast %190 : vector<1x128x128xbf16> to vector<128x128xbf16>
    %cst_76 = arith.constant dense<0.000000e+00> : vector<160x128xf32>
    %192 = tpu.matmul %189, %191, %cst_76 {dimension_numbers = #tpu.dot_dimension_numbers<[1], [0], [0], [1], [0, 0, 1, 1], [], []>} : vector<160x128xbf16>, vector<128x128xbf16>, vector<160x128xf32> -> vector<160x128xf32>
    %193 = arith.addf %187, %192 : vector<160x128xf32>
    %c18 = arith.constant 18 : index
    %c0_77 = arith.constant 0 : index
    %194 = vector.load %arg13[%c18, %c0_77] : memref<256x128xf32, #tpu.memory_space<vmem>>, vector<160x128xf32>
    %195 = arith.truncf %194 : vector<160x128xf32> to vector<160x128xbf16>
    %c7 = arith.constant 7 : index
    %c0_78 = arith.constant 0 : index
    %c0_79 = arith.constant 0 : index
    %196 = vector.load %arg4[%c7, %c0_78, %c0_79] : memref<25x128x128xbf16, #tpu.memory_space<vmem>>, vector<1x128x128xbf16>
    %197 = vector.shape_cast %196 : vector<1x128x128xbf16> to vector<128x128xbf16>
    %cst_80 = arith.constant dense<0.000000e+00> : vector<160x128xf32>
    %198 = tpu.matmul %195, %197, %cst_80 {dimension_numbers = #tpu.dot_dimension_numbers<[1], [0], [0], [1], [0, 0, 1, 1], [], []>} : vector<160x128xbf16>, vector<128x128xbf16>, vector<160x128xf32> -> vector<160x128xf32>
    %199 = arith.addf %193, %198 : vector<160x128xf32>
    %c19 = arith.constant 19 : index
    %c0_81 = arith.constant 0 : index
    %200 = vector.load %arg13[%c19, %c0_81] : memref<256x128xf32, #tpu.memory_space<vmem>>, vector<160x128xf32>
    %201 = arith.truncf %200 : vector<160x128xf32> to vector<160x128xbf16>
    %c8 = arith.constant 8 : index
    %c0_82 = arith.constant 0 : index
    %c0_83 = arith.constant 0 : index
    %202 = vector.load %arg4[%c8, %c0_82, %c0_83] : memref<25x128x128xbf16, #tpu.memory_space<vmem>>, vector<1x128x128xbf16>
    %203 = vector.shape_cast %202 : vector<1x128x128xbf16> to vector<128x128xbf16>
    %cst_84 = arith.constant dense<0.000000e+00> : vector<160x128xf32>
    %204 = tpu.matmul %201, %203, %cst_84 {dimension_numbers = #tpu.dot_dimension_numbers<[1], [0], [0], [1], [0, 0, 1, 1], [], []>} : vector<160x128xbf16>, vector<128x128xbf16>, vector<160x128xf32> -> vector<160x128xf32>
    %205 = arith.addf %199, %204 : vector<160x128xf32>
    %c20 = arith.constant 20 : index
    %c0_85 = arith.constant 0 : index
    %206 = vector.load %arg13[%c20, %c0_85] : memref<256x128xf32, #tpu.memory_space<vmem>>, vector<160x128xf32>
    %207 = arith.truncf %206 : vector<160x128xf32> to vector<160x128xbf16>
    %c9 = arith.constant 9 : index
    %c0_86 = arith.constant 0 : index
    %c0_87 = arith.constant 0 : index
    %208 = vector.load %arg4[%c9, %c0_86, %c0_87] : memref<25x128x128xbf16, #tpu.memory_space<vmem>>, vector<1x128x128xbf16>
    %209 = vector.shape_cast %208 : vector<1x128x128xbf16> to vector<128x128xbf16>
    %cst_88 = arith.constant dense<0.000000e+00> : vector<160x128xf32>
    %210 = tpu.matmul %207, %209, %cst_88 {dimension_numbers = #tpu.dot_dimension_numbers<[1], [0], [0], [1], [0, 0, 1, 1], [], []>} : vector<160x128xbf16>, vector<128x128xbf16>, vector<160x128xf32> -> vector<160x128xf32>
    %211 = arith.addf %205, %210 : vector<160x128xf32>
    %c32_89 = arith.constant 32 : index
    %c0_90 = arith.constant 0 : index
    %212 = vector.load %arg13[%c32_89, %c0_90] : memref<256x128xf32, #tpu.memory_space<vmem>>, vector<160x128xf32>
    %213 = arith.truncf %212 : vector<160x128xf32> to vector<160x128xbf16>
    %c10 = arith.constant 10 : index
    %c0_91 = arith.constant 0 : index
    %c0_92 = arith.constant 0 : index
    %214 = vector.load %arg4[%c10, %c0_91, %c0_92] : memref<25x128x128xbf16, #tpu.memory_space<vmem>>, vector<1x128x128xbf16>
    %215 = vector.shape_cast %214 : vector<1x128x128xbf16> to vector<128x128xbf16>
    %cst_93 = arith.constant dense<0.000000e+00> : vector<160x128xf32>
    %216 = tpu.matmul %213, %215, %cst_93 {dimension_numbers = #tpu.dot_dimension_numbers<[1], [0], [0], [1], [0, 0, 1, 1], [], []>} : vector<160x128xbf16>, vector<128x128xbf16>, vector<160x128xf32> -> vector<160x128xf32>
    %217 = arith.addf %211, %216 : vector<160x128xf32>
    %c33 = arith.constant 33 : index
    %c0_94 = arith.constant 0 : index
    %218 = vector.load %arg13[%c33, %c0_94] : memref<256x128xf32, #tpu.memory_space<vmem>>, vector<160x128xf32>
    %219 = arith.truncf %218 : vector<160x128xf32> to vector<160x128xbf16>
    %c11 = arith.constant 11 : index
    %c0_95 = arith.constant 0 : index
    %c0_96 = arith.constant 0 : index
    %220 = vector.load %arg4[%c11, %c0_95, %c0_96] : memref<25x128x128xbf16, #tpu.memory_space<vmem>>, vector<1x128x128xbf16>
    %221 = vector.shape_cast %220 : vector<1x128x128xbf16> to vector<128x128xbf16>
    %cst_97 = arith.constant dense<0.000000e+00> : vector<160x128xf32>
    %222 = tpu.matmul %219, %221, %cst_97 {dimension_numbers = #tpu.dot_dimension_numbers<[1], [0], [0], [1], [0, 0, 1, 1], [], []>} : vector<160x128xbf16>, vector<128x128xbf16>, vector<160x128xf32> -> vector<160x128xf32>
    %223 = arith.addf %217, %222 : vector<160x128xf32>
    %c34 = arith.constant 34 : index
    %c0_98 = arith.constant 0 : index
    %224 = vector.load %arg13[%c34, %c0_98] : memref<256x128xf32, #tpu.memory_space<vmem>>, vector<160x128xf32>
    %225 = arith.truncf %224 : vector<160x128xf32> to vector<160x128xbf16>
    %c12 = arith.constant 12 : index
    %c0_99 = arith.constant 0 : index
    %c0_100 = arith.constant 0 : index
    %226 = vector.load %arg4[%c12, %c0_99, %c0_100] : memref<25x128x128xbf16, #tpu.memory_space<vmem>>, vector<1x128x128xbf16>
    %227 = vector.shape_cast %226 : vector<1x128x128xbf16> to vector<128x128xbf16>
    %cst_101 = arith.constant dense<0.000000e+00> : vector<160x128xf32>
    %228 = tpu.matmul %225, %227, %cst_101 {dimension_numbers = #tpu.dot_dimension_numbers<[1], [0], [0], [1], [0, 0, 1, 1], [], []>} : vector<160x128xbf16>, vector<128x128xbf16>, vector<160x128xf32> -> vector<160x128xf32>
    %229 = arith.addf %223, %228 : vector<160x128xf32>
    %c35 = arith.constant 35 : index
    %c0_102 = arith.constant 0 : index
    %230 = vector.load %arg13[%c35, %c0_102] : memref<256x128xf32, #tpu.memory_space<vmem>>, vector<160x128xf32>
    %231 = arith.truncf %230 : vector<160x128xf32> to vector<160x128xbf16>
    %c13 = arith.constant 13 : index
    %c0_103 = arith.constant 0 : index
    %c0_104 = arith.constant 0 : index
    %232 = vector.load %arg4[%c13, %c0_103, %c0_104] : memref<25x128x128xbf16, #tpu.memory_space<vmem>>, vector<1x128x128xbf16>
    %233 = vector.shape_cast %232 : vector<1x128x128xbf16> to vector<128x128xbf16>
    %cst_105 = arith.constant dense<0.000000e+00> : vector<160x128xf32>
    %234 = tpu.matmul %231, %233, %cst_105 {dimension_numbers = #tpu.dot_dimension_numbers<[1], [0], [0], [1], [0, 0, 1, 1], [], []>} : vector<160x128xbf16>, vector<128x128xbf16>, vector<160x128xf32> -> vector<160x128xf32>
    %235 = arith.addf %229, %234 : vector<160x128xf32>
    %c36 = arith.constant 36 : index
    %c0_106 = arith.constant 0 : index
    %236 = vector.load %arg13[%c36, %c0_106] : memref<256x128xf32, #tpu.memory_space<vmem>>, vector<160x128xf32>
    %237 = arith.truncf %236 : vector<160x128xf32> to vector<160x128xbf16>
    %c14 = arith.constant 14 : index
    %c0_107 = arith.constant 0 : index
    %c0_108 = arith.constant 0 : index
    %238 = vector.load %arg4[%c14, %c0_107, %c0_108] : memref<25x128x128xbf16, #tpu.memory_space<vmem>>, vector<1x128x128xbf16>
    %239 = vector.shape_cast %238 : vector<1x128x128xbf16> to vector<128x128xbf16>
    %cst_109 = arith.constant dense<0.000000e+00> : vector<160x128xf32>
    %240 = tpu.matmul %237, %239, %cst_109 {dimension_numbers = #tpu.dot_dimension_numbers<[1], [0], [0], [1], [0, 0, 1, 1], [], []>} : vector<160x128xbf16>, vector<128x128xbf16>, vector<160x128xf32> -> vector<160x128xf32>
    %241 = arith.addf %235, %240 : vector<160x128xf32>
    %c48 = arith.constant 48 : index
    %c0_110 = arith.constant 0 : index
    %242 = vector.load %arg13[%c48, %c0_110] : memref<256x128xf32, #tpu.memory_space<vmem>>, vector<160x128xf32>
    %243 = arith.truncf %242 : vector<160x128xf32> to vector<160x128xbf16>
    %c15 = arith.constant 15 : index
    %c0_111 = arith.constant 0 : index
    %c0_112 = arith.constant 0 : index
    %244 = vector.load %arg4[%c15, %c0_111, %c0_112] : memref<25x128x128xbf16, #tpu.memory_space<vmem>>, vector<1x128x128xbf16>
    %245 = vector.shape_cast %244 : vector<1x128x128xbf16> to vector<128x128xbf16>
    %cst_113 = arith.constant dense<0.000000e+00> : vector<160x128xf32>
    %246 = tpu.matmul %243, %245, %cst_113 {dimension_numbers = #tpu.dot_dimension_numbers<[1], [0], [0], [1], [0, 0, 1, 1], [], []>} : vector<160x128xbf16>, vector<128x128xbf16>, vector<160x128xf32> -> vector<160x128xf32>
    %247 = arith.addf %241, %246 : vector<160x128xf32>
    %c49 = arith.constant 49 : index
    %c0_114 = arith.constant 0 : index
    %248 = vector.load %arg13[%c49, %c0_114] : memref<256x128xf32, #tpu.memory_space<vmem>>, vector<160x128xf32>
    %249 = arith.truncf %248 : vector<160x128xf32> to vector<160x128xbf16>
    %c16_115 = arith.constant 16 : index
    %c0_116 = arith.constant 0 : index
    %c0_117 = arith.constant 0 : index
    %250 = vector.load %arg4[%c16_115, %c0_116, %c0_117] : memref<25x128x128xbf16, #tpu.memory_space<vmem>>, vector<1x128x128xbf16>
    %251 = vector.shape_cast %250 : vector<1x128x128xbf16> to vector<128x128xbf16>
    %cst_118 = arith.constant dense<0.000000e+00> : vector<160x128xf32>
    %252 = tpu.matmul %249, %251, %cst_118 {dimension_numbers = #tpu.dot_dimension_numbers<[1], [0], [0], [1], [0, 0, 1, 1], [], []>} : vector<160x128xbf16>, vector<128x128xbf16>, vector<160x128xf32> -> vector<160x128xf32>
    %253 = arith.addf %247, %252 : vector<160x128xf32>
    %c50 = arith.constant 50 : index
    %c0_119 = arith.constant 0 : index
    %254 = vector.load %arg13[%c50, %c0_119] : memref<256x128xf32, #tpu.memory_space<vmem>>, vector<160x128xf32>
    %255 = arith.truncf %254 : vector<160x128xf32> to vector<160x128xbf16>
    %c17_120 = arith.constant 17 : index
    %c0_121 = arith.constant 0 : index
    %c0_122 = arith.constant 0 : index
    %256 = vector.load %arg4[%c17_120, %c0_121, %c0_122] : memref<25x128x128xbf16, #tpu.memory_space<vmem>>, vector<1x128x128xbf16>
    %257 = vector.shape_cast %256 : vector<1x128x128xbf16> to vector<128x128xbf16>
    %cst_123 = arith.constant dense<0.000000e+00> : vector<160x128xf32>
    %258 = tpu.matmul %255, %257, %cst_123 {dimension_numbers = #tpu.dot_dimension_numbers<[1], [0], [0], [1], [0, 0, 1, 1], [], []>} : vector<160x128xbf16>, vector<128x128xbf16>, vector<160x128xf32> -> vector<160x128xf32>
    %259 = arith.addf %253, %258 : vector<160x128xf32>
    %c51 = arith.constant 51 : index
    %c0_124 = arith.constant 0 : index
    %260 = vector.load %arg13[%c51, %c0_124] : memref<256x128xf32, #tpu.memory_space<vmem>>, vector<160x128xf32>
    %261 = arith.truncf %260 : vector<160x128xf32> to vector<160x128xbf16>
    %c18_125 = arith.constant 18 : index
    %c0_126 = arith.constant 0 : index
    %c0_127 = arith.constant 0 : index
    %262 = vector.load %arg4[%c18_125, %c0_126, %c0_127] : memref<25x128x128xbf16, #tpu.memory_space<vmem>>, vector<1x128x128xbf16>
    %263 = vector.shape_cast %262 : vector<1x128x128xbf16> to vector<128x128xbf16>
    %cst_128 = arith.constant dense<0.000000e+00> : vector<160x128xf32>
    %264 = tpu.matmul %261, %263, %cst_128 {dimension_numbers = #tpu.dot_dimension_numbers<[1], [0], [0], [1], [0, 0, 1, 1], [], []>} : vector<160x128xbf16>, vector<128x128xbf16>, vector<160x128xf32> -> vector<160x128xf32>
    %265 = arith.addf %259, %264 : vector<160x128xf32>
    %c52 = arith.constant 52 : index
    %c0_129 = arith.constant 0 : index
    %266 = vector.load %arg13[%c52, %c0_129] : memref<256x128xf32, #tpu.memory_space<vmem>>, vector<160x128xf32>
    %267 = arith.truncf %266 : vector<160x128xf32> to vector<160x128xbf16>
    %c19_130 = arith.constant 19 : index
    %c0_131 = arith.constant 0 : index
    %c0_132 = arith.constant 0 : index
    %268 = vector.load %arg4[%c19_130, %c0_131, %c0_132] : memref<25x128x128xbf16, #tpu.memory_space<vmem>>, vector<1x128x128xbf16>
    %269 = vector.shape_cast %268 : vector<1x128x128xbf16> to vector<128x128xbf16>
    %cst_133 = arith.constant dense<0.000000e+00> : vector<160x128xf32>
    %270 = tpu.matmul %267, %269, %cst_133 {dimension_numbers = #tpu.dot_dimension_numbers<[1], [0], [0], [1], [0, 0, 1, 1], [], []>} : vector<160x128xbf16>, vector<128x128xbf16>, vector<160x128xf32> -> vector<160x128xf32>
    %271 = arith.addf %265, %270 : vector<160x128xf32>
    %c64_134 = arith.constant 64 : index
    %c0_135 = arith.constant 0 : index
    %272 = vector.load %arg13[%c64_134, %c0_135] : memref<256x128xf32, #tpu.memory_space<vmem>>, vector<160x128xf32>
    %273 = arith.truncf %272 : vector<160x128xf32> to vector<160x128xbf16>
    %c20_136 = arith.constant 20 : index
    %c0_137 = arith.constant 0 : index
    %c0_138 = arith.constant 0 : index
    %274 = vector.load %arg4[%c20_136, %c0_137, %c0_138] : memref<25x128x128xbf16, #tpu.memory_space<vmem>>, vector<1x128x128xbf16>
    %275 = vector.shape_cast %274 : vector<1x128x128xbf16> to vector<128x128xbf16>
    %cst_139 = arith.constant dense<0.000000e+00> : vector<160x128xf32>
    %276 = tpu.matmul %273, %275, %cst_139 {dimension_numbers = #tpu.dot_dimension_numbers<[1], [0], [0], [1], [0, 0, 1, 1], [], []>} : vector<160x128xbf16>, vector<128x128xbf16>, vector<160x128xf32> -> vector<160x128xf32>
    %277 = arith.addf %271, %276 : vector<160x128xf32>
    %c65 = arith.constant 65 : index
    %c0_140 = arith.constant 0 : index
    %278 = vector.load %arg13[%c65, %c0_140] : memref<256x128xf32, #tpu.memory_space<vmem>>, vector<160x128xf32>
    %279 = arith.truncf %278 : vector<160x128xf32> to vector<160x128xbf16>
    %c21 = arith.constant 21 : index
    %c0_141 = arith.constant 0 : index
    %c0_142 = arith.constant 0 : index
    %280 = vector.load %arg4[%c21, %c0_141, %c0_142] : memref<25x128x128xbf16, #tpu.memory_space<vmem>>, vector<1x128x128xbf16>
    %281 = vector.shape_cast %280 : vector<1x128x128xbf16> to vector<128x128xbf16>
    %cst_143 = arith.constant dense<0.000000e+00> : vector<160x128xf32>
    %282 = tpu.matmul %279, %281, %cst_143 {dimension_numbers = #tpu.dot_dimension_numbers<[1], [0], [0], [1], [0, 0, 1, 1], [], []>} : vector<160x128xbf16>, vector<128x128xbf16>, vector<160x128xf32> -> vector<160x128xf32>
    %283 = arith.addf %277, %282 : vector<160x128xf32>
    %c66 = arith.constant 66 : index
    %c0_144 = arith.constant 0 : index
    %284 = vector.load %arg13[%c66, %c0_144] : memref<256x128xf32, #tpu.memory_space<vmem>>, vector<160x128xf32>
    %285 = arith.truncf %284 : vector<160x128xf32> to vector<160x128xbf16>
    %c22 = arith.constant 22 : index
    %c0_145 = arith.constant 0 : index
    %c0_146 = arith.constant 0 : index
    %286 = vector.load %arg4[%c22, %c0_145, %c0_146] : memref<25x128x128xbf16, #tpu.memory_space<vmem>>, vector<1x128x128xbf16>
    %287 = vector.shape_cast %286 : vector<1x128x128xbf16> to vector<128x128xbf16>
    %cst_147 = arith.constant dense<0.000000e+00> : vector<160x128xf32>
    %288 = tpu.matmul %285, %287, %cst_147 {dimension_numbers = #tpu.dot_dimension_numbers<[1], [0], [0], [1], [0, 0, 1, 1], [], []>} : vector<160x128xbf16>, vector<128x128xbf16>, vector<160x128xf32> -> vector<160x128xf32>
    %289 = arith.addf %283, %288 : vector<160x128xf32>
    %c67 = arith.constant 67 : index
    %c0_148 = arith.constant 0 : index
    %290 = vector.load %arg13[%c67, %c0_148] : memref<256x128xf32, #tpu.memory_space<vmem>>, vector<160x128xf32>
    %291 = arith.truncf %290 : vector<160x128xf32> to vector<160x128xbf16>
    %c23 = arith.constant 23 : index
    %c0_149 = arith.constant 0 : index
    %c0_150 = arith.constant 0 : index
    %292 = vector.load %arg4[%c23, %c0_149, %c0_150] : memref<25x128x128xbf16, #tpu.memory_space<vmem>>, vector<1x128x128xbf16>
    %293 = vector.shape_cast %292 : vector<1x128x128xbf16> to vector<128x128xbf16>
    %cst_151 = arith.constant dense<0.000000e+00> : vector<160x128xf32>
    %294 = tpu.matmul %291, %293, %cst_151 {dimension_numbers = #tpu.dot_dimension_numbers<[1], [0], [0], [1], [0, 0, 1, 1], [], []>} : vector<160x128xbf16>, vector<128x128xbf16>, vector<160x128xf32> -> vector<160x128xf32>
    %295 = arith.addf %289, %294 : vector<160x128xf32>
    %c68 = arith.constant 68 : index
    %c0_152 = arith.constant 0 : index
    %296 = vector.load %arg13[%c68, %c0_152] : memref<256x128xf32, #tpu.memory_space<vmem>>, vector<160x128xf32>
    %297 = arith.truncf %296 : vector<160x128xf32> to vector<160x128xbf16>
    %c24 = arith.constant 24 : index
    %c0_153 = arith.constant 0 : index
    %c0_154 = arith.constant 0 : index
    %298 = vector.load %arg4[%c24, %c0_153, %c0_154] : memref<25x128x128xbf16, #tpu.memory_space<vmem>>, vector<1x128x128xbf16>
    %299 = vector.shape_cast %298 : vector<1x128x128xbf16> to vector<128x128xbf16>
    %cst_155 = arith.constant dense<0.000000e+00> : vector<160x128xf32>
    %300 = tpu.matmul %297, %299, %cst_155 {dimension_numbers = #tpu.dot_dimension_numbers<[1], [0], [0], [1], [0, 0, 1, 1], [], []>} : vector<160x128xbf16>, vector<128x128xbf16>, vector<160x128xf32> -> vector<160x128xf32>
    %301 = arith.addf %295, %300 : vector<160x128xf32>
    %c0_156 = arith.constant 0 : index
    %c0_157 = arith.constant 0 : index
    %302 = vector.load %arg5[%c0_156, %c0_157] : memref<1x128xf32, #tpu.memory_space<vmem>>, vector<1x128xf32>
    %303 = vector.shape_cast %301 : vector<160x128xf32> to vector<5x2x16x128xf32>
    %304 = vector.extract_strided_slice %303 {offsets = [0, 0, 0, 0], sizes = [5, 1, 16, 128], strides = [1, 1, 1, 1]} : vector<5x2x16x128xf32> to vector<5x1x16x128xf32>
    %305 = vector.shape_cast %304 : vector<5x1x16x128xf32> to vector<5x16x128xf32>
    %306 = vector.extract_strided_slice %303 {offsets = [0, 1, 0, 0], sizes = [5, 1, 16, 128], strides = [1, 1, 1, 1]} : vector<5x2x16x128xf32> to vector<5x1x16x128xf32>
    %307 = vector.shape_cast %306 : vector<5x1x16x128xf32> to vector<5x16x128xf32>
    %308 = arith.maximumf %305, %307 : vector<5x16x128xf32>
    %309 = vector.shape_cast %302 : vector<1x128xf32> to vector<1x1x128xf32>
    %310 = vector.broadcast %309 : vector<1x1x128xf32> to vector<5x16x128xf32>
    %311 = arith.addf %308, %310 : vector<5x16x128xf32>
    %cst_158 = arith.constant 0.000000e+00 : f32
    %312 = vector.broadcast %cst_158 : f32 to vector<5x16x128xf32>
    %313 = arith.maximumf %311, %312 : vector<5x16x128xf32>
    %314 = vector.extract_strided_slice %313 {offsets = [0, 0, 0], sizes = [5, 1, 128], strides = [1, 1, 1]} : vector<5x16x128xf32> to vector<5x1x128xf32>
    %315 = vector.shape_cast %314 : vector<5x1x128xf32> to vector<5x128xf32>
    %316 = vector.extract_strided_slice %313 {offsets = [0, 1, 0], sizes = [5, 1, 128], strides = [1, 1, 1]} : vector<5x16x128xf32> to vector<5x1x128xf32>
    %317 = vector.shape_cast %316 : vector<5x1x128xf32> to vector<5x128xf32>
    %318 = arith.maximumf %315, %317 : vector<5x128xf32>
    %319 = vector.extract_strided_slice %313 {offsets = [0, 2, 0], sizes = [5, 1, 128], strides = [1, 1, 1]} : vector<5x16x128xf32> to vector<5x1x128xf32>
    %320 = vector.shape_cast %319 : vector<5x1x128xf32> to vector<5x128xf32>
    %321 = vector.extract_strided_slice %313 {offsets = [0, 3, 0], sizes = [5, 1, 128], strides = [1, 1, 1]} : vector<5x16x128xf32> to vector<5x1x128xf32>
    %322 = vector.shape_cast %321 : vector<5x1x128xf32> to vector<5x128xf32>
    %323 = arith.maximumf %320, %322 : vector<5x128xf32>
    %c16_i32 = arith.constant 16 : i32
    %324 = tpu.dynamic_rotate %323 by %c16_i32 dim 1 : vector<5x128xf32>, i32 -> vector<5x128xf32>
    %325 = arith.addf %318, %324 : vector<5x128xf32>
    %326 = vector.extract_strided_slice %313 {offsets = [0, 4, 0], sizes = [5, 1, 128], strides = [1, 1, 1]} : vector<5x16x128xf32> to vector<5x1x128xf32>
    %327 = vector.shape_cast %326 : vector<5x1x128xf32> to vector<5x128xf32>
    %328 = vector.extract_strided_slice %313 {offsets = [0, 5, 0], sizes = [5, 1, 128], strides = [1, 1, 1]} : vector<5x16x128xf32> to vector<5x1x128xf32>
    %329 = vector.shape_cast %328 : vector<5x1x128xf32> to vector<5x128xf32>
    %330 = arith.maximumf %327, %329 : vector<5x128xf32>
    %c32_i32 = arith.constant 32 : i32
    %331 = tpu.dynamic_rotate %330 by %c32_i32 dim 1 : vector<5x128xf32>, i32 -> vector<5x128xf32>
    %332 = arith.addf %325, %331 : vector<5x128xf32>
    %333 = vector.extract_strided_slice %313 {offsets = [0, 6, 0], sizes = [5, 1, 128], strides = [1, 1, 1]} : vector<5x16x128xf32> to vector<5x1x128xf32>
    %334 = vector.shape_cast %333 : vector<5x1x128xf32> to vector<5x128xf32>
    %335 = vector.extract_strided_slice %313 {offsets = [0, 7, 0], sizes = [5, 1, 128], strides = [1, 1, 1]} : vector<5x16x128xf32> to vector<5x1x128xf32>
    %336 = vector.shape_cast %335 : vector<5x1x128xf32> to vector<5x128xf32>
    %337 = arith.maximumf %334, %336 : vector<5x128xf32>
    %c48_i32 = arith.constant 48 : i32
    %338 = tpu.dynamic_rotate %337 by %c48_i32 dim 1 : vector<5x128xf32>, i32 -> vector<5x128xf32>
    %339 = arith.addf %332, %338 : vector<5x128xf32>
    %340 = vector.extract_strided_slice %313 {offsets = [0, 8, 0], sizes = [5, 1, 128], strides = [1, 1, 1]} : vector<5x16x128xf32> to vector<5x1x128xf32>
    %341 = vector.shape_cast %340 : vector<5x1x128xf32> to vector<5x128xf32>
    %342 = vector.extract_strided_slice %313 {offsets = [0, 9, 0], sizes = [5, 1, 128], strides = [1, 1, 1]} : vector<5x16x128xf32> to vector<5x1x128xf32>
    %343 = vector.shape_cast %342 : vector<5x1x128xf32> to vector<5x128xf32>
    %344 = arith.maximumf %341, %343 : vector<5x128xf32>
    %c64_i32 = arith.constant 64 : i32
    %345 = tpu.dynamic_rotate %344 by %c64_i32 dim 1 : vector<5x128xf32>, i32 -> vector<5x128xf32>
    %346 = arith.addf %339, %345 : vector<5x128xf32>
    %347 = vector.extract_strided_slice %346 {offsets = [0, 0], sizes = [1, 128], strides = [1, 1]} : vector<5x128xf32> to vector<1x128xf32>
    %348 = vector.extract_strided_slice %346 {offsets = [1, 0], sizes = [1, 128], strides = [1, 1]} : vector<5x128xf32> to vector<1x128xf32>
    %349 = vector.extract_strided_slice %346 {offsets = [2, 0], sizes = [1, 128], strides = [1, 1]} : vector<5x128xf32> to vector<1x128xf32>
    %350 = vector.extract_strided_slice %346 {offsets = [3, 0], sizes = [1, 128], strides = [1, 1]} : vector<5x128xf32> to vector<1x128xf32>
    %351 = vector.extract_strided_slice %346 {offsets = [4, 0], sizes = [1, 128], strides = [1, 1]} : vector<5x128xf32> to vector<1x128xf32>
    %352 = tpu.concatenate %347, %348, %349, %350, %351 in 1 : vector<1x128xf32>, vector<1x128xf32>, vector<1x128xf32>, vector<1x128xf32>, vector<1x128xf32> -> vector<1x640xf32>
    %353 = arith.truncf %352 : vector<1x640xf32> to vector<1x640xbf16>
    %c0_159 = arith.constant 0 : index
    %c0_160 = arith.constant 0 : index
    %354 = vector.load %arg6[%c0_159, %c0_160] : memref<640x128xbf16, #tpu.memory_space<vmem>>, vector<640x128xbf16>
    %cst_161 = arith.constant dense<0.000000e+00> : vector<1x128xf32>
    %355 = tpu.matmul %353, %354, %cst_161 {dimension_numbers = #tpu.dot_dimension_numbers<[1], [0], [0], [1], [0, 0, 1, 1], [], []>} : vector<1x640xbf16>, vector<640x128xbf16>, vector<1x128xf32> -> vector<1x128xf32>
    %c0_162 = arith.constant 0 : index
    %c0_163 = arith.constant 0 : index
    %356 = vector.load %arg7[%c0_162, %c0_163] : memref<1x128xf32, #tpu.memory_space<vmem>>, vector<1x128xf32>
    %357 = arith.addf %355, %356 : vector<1x128xf32>
    %cst_164 = arith.constant 0.000000e+00 : f32
    %358 = vector.broadcast %cst_164 : f32 to vector<1x128xf32>
    %359 = arith.maximumf %357, %358 : vector<1x128xf32>
    %360 = arith.truncf %359 : vector<1x128xf32> to vector<1x128xbf16>
    %c0_165 = arith.constant 0 : index
    %c0_166 = arith.constant 0 : index
    %361 = vector.load %arg8[%c0_165, %c0_166] : memref<128x128xbf16, #tpu.memory_space<vmem>>, vector<128x128xbf16>
    %cst_167 = arith.constant dense<0.000000e+00> : vector<1x128xf32>
    %362 = tpu.matmul %360, %361, %cst_167 {dimension_numbers = #tpu.dot_dimension_numbers<[1], [0], [0], [1], [0, 0, 1, 1], [], []>} : vector<1x128xbf16>, vector<128x128xbf16>, vector<1x128xf32> -> vector<1x128xf32>
    %c0_168 = arith.constant 0 : index
    %c0_169 = arith.constant 0 : index
    %363 = vector.load %arg9[%c0_168, %c0_169] : memref<1x128xf32, #tpu.memory_space<vmem>>, vector<1x128xf32>
    %364 = arith.addf %362, %363 : vector<1x128xf32>
    %cst_170 = arith.constant 0.000000e+00 : f32
    %365 = vector.broadcast %cst_170 : f32 to vector<1x128xf32>
    %366 = arith.maximumf %364, %365 : vector<1x128xf32>
    %367 = arith.truncf %366 : vector<1x128xf32> to vector<1x128xbf16>
    %c0_171 = arith.constant 0 : index
    %c0_172 = arith.constant 0 : index
    %368 = vector.load %arg10[%c0_171, %c0_172] : memref<128x128xbf16, #tpu.memory_space<vmem>>, vector<128x128xbf16>
    %cst_173 = arith.constant dense<0.000000e+00> : vector<1x128xf32>
    %369 = tpu.matmul %367, %368, %cst_173 {dimension_numbers = #tpu.dot_dimension_numbers<[1], [0], [0], [1], [0, 0, 1, 1], [], []>} : vector<1x128xbf16>, vector<128x128xbf16>, vector<1x128xf32> -> vector<1x128xf32>
    %c0_174 = arith.constant 0 : index
    %c0_175 = arith.constant 0 : index
    %370 = vector.load %arg11[%c0_174, %c0_175] : memref<1x128xf32, #tpu.memory_space<vmem>>, vector<1x128xf32>
    %371 = arith.addf %369, %370 : vector<1x128xf32>
    %372 = vector.shape_cast %371 : vector<1x128xf32> to vector<1x128xf32>
    %373 = vector.broadcast %372 : vector<1x128xf32> to vector<8x128xf32>
    %c0_176 = arith.constant 0 : index
    %c0_177 = arith.constant 0 : index
    %c0_178 = arith.constant 0 : index
    %374 = vector.load %arg12[%c0_176, %c0_177, %c0_178] : memref<1x8x128xf32, #tpu.memory_space<vmem>>, vector<1x8x128xf32>
    %375 = vector.shape_cast %374 : vector<1x8x128xf32> to vector<8x128xf32>
    %376 = vector.shape_cast %373 : vector<8x128xf32> to vector<1x8x128xf32>
    tpu.vector_store %arg12[%c0_176, %c0_177, %c0_178], %376 {strides = array<i32>} : memref<1x8x128xf32, #tpu.memory_space<vmem>>, vector<1x8x128xf32>,
    return
  }
  func.func @transform_0(%arg0: i32) -> (i32, i32, i32) {
    %c0_i32 = arith.constant 0 : i32
    %c0_i32_0 = arith.constant 0 : i32
    %c0_i32_1 = arith.constant 0 : i32
    return %arg0, %c0_i32, %c0_i32_0 : i32, i32, i32
  }
  func.func @transform_1(%arg0: i32) -> (i32, i32) {
    %c0_i32 = arith.constant 0 : i32
    %c0_i32_0 = arith.constant 0 : i32
    %c0_i32_1 = arith.constant 0 : i32
    return %c0_i32, %c0_i32_0 : i32, i32
  }
  func.func @transform_2(%arg0: i32) -> (i32, i32) {
    %c0_i32 = arith.constant 0 : i32
    %c0_i32_0 = arith.constant 0 : i32
    %c0_i32_1 = arith.constant 0 : i32
    return %c0_i32, %c0_i32_0 : i32, i32
  }
  func.func @transform_3(%arg0: i32) -> (i32, i32, i32) {
    %c0_i32 = arith.constant 0 : i32
    %c0_i32_0 = arith.constant 0 : i32
    %c0_i32_1 = arith.constant 0 : i32
    %c0_i32_2 = arith.constant 0 : i32
    return %c0_i32, %c0_i32_0, %c0_i32_1 : i32, i32, i32
  }
  func.func @transform_4(%arg0: i32) -> (i32, i32) {
    %c0_i32 = arith.constant 0 : i32
    %c0_i32_0 = arith.constant 0 : i32
    %c0_i32_1 = arith.constant 0 : i32
    return %c0_i32, %c0_i32_0 : i32, i32
  }
  func.func @transform_5(%arg0: i32) -> (i32, i32) {
    %c0_i32 = arith.constant 0 : i32
    %c0_i32_0 = arith.constant 0 : i32
    %c0_i32_1 = arith.constant 0 : i32
    return %c0_i32, %c0_i32_0 : i32, i32
  }
  func.func @transform_6(%arg0: i32) -> (i32, i32) {
    %c0_i32 = arith.constant 0 : i32
    %c0_i32_0 = arith.constant 0 : i32
    %c0_i32_1 = arith.constant 0 : i32
    return %c0_i32, %c0_i32_0 : i32, i32
  }
  func.func @transform_7(%arg0: i32) -> (i32, i32) {
    %c0_i32 = arith.constant 0 : i32
    %c0_i32_0 = arith.constant 0 : i32
    %c0_i32_1 = arith.constant 0 : i32
    return %c0_i32, %c0_i32_0 : i32, i32
  }
  func.func @transform_8(%arg0: i32) -> (i32, i32) {
    %c0_i32 = arith.constant 0 : i32
    %c0_i32_0 = arith.constant 0 : i32
    %c0_i32_1 = arith.constant 0 : i32
    return %c0_i32, %c0_i32_0 : i32, i32
  }
  func.func @transform_9(%arg0: i32) -> (i32, i32) {
    %c0_i32 = arith.constant 0 : i32
    %c0_i32_0 = arith.constant 0 : i32
    %c0_i32_1 = arith.constant 0 : i32
    return %c0_i32, %c0_i32_0 : i32, i32
  }
  func.func @transform_10(%arg0: i32) -> (i32, i32) {
    %c0_i32 = arith.constant 0 : i32
    %c0_i32_0 = arith.constant 0 : i32
    %c0_i32_1 = arith.constant 0 : i32
    return %c0_i32, %c0_i32_0 : i32, i32
  }
  func.func @transform_11(%arg0: i32) -> (i32, i32, i32) {
    %c0_i32 = arith.constant 0 : i32
    %c0_i32_0 = arith.constant 0 : i32
    %c0_i32_1 = arith.constant 0 : i32
    return %arg0, %c0_i32, %c0_i32_0 : i32, i32, i32
  }
}

</mosaic_0001>

<bundles_post_ra>
// kernel: lenet5_forward.1
= control target key start
LH: loop header
LB: loop body
LE: loop exit
PB: predicated region body
PF: predicated region fallthrough
CT: control target
= control target key end

     0   :  { %s11271_s17 = smov 0   ;;  %s13567_s0 = inlined_call_operand.vmem [shape: bf16[2,896,128], index: 0, kind: input, shape index: {}]   ;;  %s13568_s1 = inlined_call_operand.vmem [shape: bf16[128,128], index: 1, kind: input, shape index: {}]   ;;  %s13569_s2 = inlined_call_operand.vmem [shape: f32[1,128], index: 2, kind: input, shape index: {}]   ;;  %s13570_s3 = inlined_call_operand.vmem [shape: bf16[25,128,128], index: 3, kind: input, shape index: {}]   ;;  %s13571_s4 = inlined_call_operand.vmem [shape: f32[1,128], index: 4, kind: input, shape index: {}]   ;;  %s13572_s5 = inlined_call_operand.vmem [shape: bf16[640,128], index: 5, kind: input, shape index: {}]   ;;  %s13573_s6 = inlined_call_operand.vmem [shape: f32[1,128], index: 6, kind: input, shape index: {}]   ;;  %s13574_s7 = inlined_call_operand.vmem [shape: bf16[128,128], index: 7, kind: input, shape index: {}]   ;;  %s13575_s8 = inlined_call_operand.vmem [shape: f32[1,128], index: 8, kind: input, shape index: {}]   ;;  %s13576_s9 = inlined_call_operand.vmem [shape: bf16[128,128], index: 9, kind: input, shape index: {}]   ;;  %s13577_s10 = inlined_call_operand.vmem [shape: f32[1,128], index: 10, kind: input, shape index: {}]   ;;  %s13578_s11 = inlined_call_operand.vmem [shape: f32[2,8,128], index: 11, kind: output, shape index: {}]  }
   0x1 LB: > { %s8329_s18 = sadd.s32 4294967295, %s11203_s17   ;;  %p8333_p0 = scmp.ge.s32.totalorder %s11203_s17, 1  ;;  %s11203_s17 = sphi %s11271_s17, %s21_s17  }
   0x2   : > { %p337_p1 = scmp.lt.s32.totalorder %s11203_s17, 3 }
   0x4   : > { %p338_p2 = pnand %p8333_p0, %p337_p1 }
   0x6   : > { %341 = sbr.rel (%p338_p2) target bundleno = 1798 (0x706), region = 64 }
   0xb   : > { %v11282_v0 = vld [vmem:[%s13568_s1 + $0x38] sm:$0xff]   ;;  %p376_p3 = scmp.lt.s32.totalorder %s8329_s18, 1  ;;  %v11287_v1 = vld [vmem:[%s13568_s1 + $0x30] sm:$0xff]   ;;  %v11300_v2 = vld [vmem:[%s13568_s1 + $0x28] sm:$0xff]   ;;  %vm7479_vm0 = vcmask 1041409   ;;  %vm7481_vm1 = vcmask 1042434  }
   0xc   : > { %9677 = vmatprep.subr.bf16.mxu0 %v11282_v0  ;;  %9709 = vmatprep.subr.bf16.mxu1 %v11282_v0  ;;  %v11313_v3 = vld [vmem:[%s13568_s1 + $0x20] sm:$0xff]   ;;  %v11326_v6 = vld [vmem:[%s13568_s1 + $0x18] sm:$0xff]   ;;  %v11335_v7 = vld [vmem:[%s13568_s1 + $0x10] sm:$0xff]   ;;  %vm7484_vm2 = vcmask 1043459   ;;  %vm7487_vm3 = vcmask 1044484   ;;  %s11206_s13 = smov 48  }
   0xd   : > { %s13606_s18 = smov (!%p376_p3, %s8329_s18), 1  ;;  %9678 = vmatpush3.bf16.msra.mxu0 %v11282_v0  ;;  %9710 = vmatpush3.bf16.msra.mxu1 %v11282_v0  ;;  %v11344_v8 = vld [vmem:[%s13568_s1 + $0x8] sm:$0xff]   ;;  %v11353_v9 = vld [vmem:[%s13568_s1] sm:$0xff]   ;;  %v10936_v54 = vld [vmem:[%s13570_s3 + $0x78] sm:$0xff]   ;;  %s11207_s14 = smov 16   ;;  %vm11210_vm4 = vmmov 0  }
   0xe   : > { %9679 = vmatprep.subr.bf16.mxu0 %v11287_v1  ;;  %9711 = vmatprep.subr.bf16.mxu1 %v11287_v1  ;;  %s10861_s25 = smul.u32 448, %s13606_s18  ;;  %v10938_v57 = vld [vmem:[%s13570_s3 + $0x70] sm:$0xff]   ;;  %v10942_v59 = vld [vmem:[%s13570_s3 + $0x68] sm:$0xff]   ;;  %v10937_v61 = vld [vmem:[%s13570_s3 + $0x38] sm:$0xff]   ;;  %s11209_s15 = smov 32  }
   0xf   : > { %v10944_v62 = vld [vmem:[%s13570_s3 + $0x60] sm:$0xff]   ;;  %s8335_s23 = sshll.u32 %s13606_s18, 3 }
  0x10   : > { %s11306_s28 = scalar_lea.vmem %s13567_s0, %s10861_s25  ;;  %s384_s25 = scalar_lea.vmem %s13578_s11, %s8335_s23 }
  0x11   : > { %9680 = vmatpush3.bf16.msra.mxu0 %v11287_v1  ;;  %9712 = vmatpush3.bf16.msra.mxu1 %v11287_v1  ;;  %v10884_v4 = vld [vmem:[%s11306_s28] sm:$0xff]   ;;  %v10886_v10 = vld [vmem:[%s11306_s28 + $0x8] sm:$0xff]   ;;  %v10888_v12 = vld [vmem:[%s11306_s28 + $0x10] sm:$0xff]  }
  0x12   : > { %9681 = vmatprep.subr.bf16.mxu0 %v11300_v2  ;;  %9713 = vmatprep.subr.bf16.mxu1 %v11300_v2  ;;  %v10885_v5 = vld [vmem:[%s11306_s28 + $0x40] sm:$0xff]   ;;  %v10887_v11 = vld [vmem:[%s11306_s28 + $0x48] sm:$0xff]   ;;  %v10889_v13 = vld [vmem:[%s11306_s28 + $0x50] sm:$0xff]  }
  0x13   : > { %9693 = vmatprep.mubr.bf16.mxu0 %v10884_v4  ;;  %9725 = vmatprep.mubr.bf16.mxu1 %v10885_v5  ;;  %v10890_v14 = vld [vmem:[%s11306_s28 + $0x18] sm:$0xff]   ;;  %v10892_v16 = vld [vmem:[%s11306_s28 + $0x20] sm:$0xff]   ;;  %v10894_v18 = vld [vmem:[%s11306_s28 + $0x28] sm:$0xff]  }
  0x14   : > { %v10891_v15 = vld [vmem:[%s11306_s28 + $0x58] sm:$0xff]   ;;  %v10893_v17 = vld [vmem:[%s11306_s28 + $0x60] sm:$0xff]   ;;  %v10895_v19 = vld [vmem:[%s11306_s28 + $0x68] sm:$0xff]  }
  0x15   : > { %9682 = vmatpush3.bf16.msra.mxu0 %v11300_v2  ;;  %9714 = vmatpush3.bf16.msra.mxu1 %v11300_v2  ;;  %v10896_v20 = vld [vmem:[%s11306_s28 + $0x30] sm:$0xff]   ;;  %v10898_v22 = vld [vmem:[%s11306_s28 + $0x38] sm:$0xff]   ;;  %v10900_v24 = vld [vmem:[%s11306_s28 + $0x80] sm:$0xff]  }
  0x16   : > { %9683 = vmatprep.subr.bf16.mxu0 %v11313_v3  ;;  %9715 = vmatprep.subr.bf16.mxu1 %v11313_v3  ;;  %v10897_v21 = vld [vmem:[%s11306_s28 + $0x70] sm:$0xff]   ;;  %v10899_v23 = vld [vmem:[%s11306_s28 + $0x78] sm:$0xff]   ;;  %v10901_v25 = vld [vmem:[%s11306_s28 + $0xc0] sm:$0xff]  }
  0x17   : > { %v10902_v26 = vld [vmem:[%s11306_s28 + $0x88] sm:$0xff]   ;;  %v10904_v28 = vld [vmem:[%s11306_s28 + $0x90] sm:$0xff]   ;;  %v10906_v30 = vld [vmem:[%s11306_s28 + $0x98] sm:$0xff]  }
  0x18   : > { %v10903_v27 = vld [vmem:[%s11306_s28 + $0xc8] sm:$0xff]   ;;  %v10905_v29 = vld [vmem:[%s11306_s28 + $0xd0] sm:$0xff]   ;;  %v10907_v31 = vld [vmem:[%s11306_s28 + $0xd8] sm:$0xff]  }
  0x19   : > { %9684 = vmatpush3.bf16.msra.mxu0 %v11313_v3  ;;  %9716 = vmatpush3.bf16.msra.mxu1 %v11313_v3  ;;  %v10908_v32 = vld [vmem:[%s11306_s28 + $0xa0] sm:$0xff]   ;;  %v10910_v34 = vld [vmem:[%s11306_s28 + $0xa8] sm:$0xff]   ;;  %v10912_v36 = vld [vmem:[%s11306_s28 + $0xb0] sm:$0xff]  }
  0x1a   : > { %9685 = vmatprep.subr.bf16.mxu0 %v11326_v6  ;;  %9717 = vmatprep.subr.bf16.mxu1 %v11326_v6  ;;  %v10909_v33 = vld [vmem:[%s11306_s28 + $0xe0] sm:$0xff]   ;;  %v10911_v35 = vld [vmem:[%s11306_s28 + $0xe8] sm:$0xff]   ;;  %v10913_v37 = vld [vmem:[%s11306_s28 + $0xf0] sm:$0xff]  }
  0x1b   : > { %v10914_v38 = vld [vmem:[%s11306_s28 + $0xb8] sm:$0xff]   ;;  %v10916_v40 = vld [vmem:[%s11306_s28 + $0x100] sm:$0xff]   ;;  %v10918_v42 = vld [vmem:[%s11306_s28 + $0x108] sm:$0xff]  }
  0x1c   : > { %v10915_v39 = vld [vmem:[%s11306_s28 + $0xf8] sm:$0xff]   ;;  %v10917_v41 = vld [vmem:[%s11306_s28 + $0x140] sm:$0xff]   ;;  %v10919_v43 = vld [vmem:[%s11306_s28 + $0x148] sm:$0xff]  }
  0x1d   : > { %9686 = vmatpush3.bf16.msra.mxu0 %v11326_v6  ;;  %9718 = vmatpush3.bf16.msra.mxu1 %v11326_v6  ;;  %v10920_v44 = vld [vmem:[%s11306_s28 + $0x110] sm:$0xff]   ;;  %v10922_v46 = vld [vmem:[%s11306_s28 + $0x118] sm:$0xff]   ;;  %v10924_v48 = vld [vmem:[%s11306_s28 + $0x120] sm:$0xff]  }
  0x1e   : > { %9687 = vmatprep.subr.bf16.mxu0 %v11335_v7  ;;  %9719 = vmatprep.subr.bf16.mxu1 %v11335_v7  ;;  %v10921_v45 = vld [vmem:[%s11306_s28 + $0x150] sm:$0xff]   ;;  %v10923_v47 = vld [vmem:[%s11306_s28 + $0x158] sm:$0xff]   ;;  %v10925_v49 = vld [vmem:[%s11306_s28 + $0x160] sm:$0xff]  }
  0x1f   : > { %v10926_v50 = vld [vmem:[%s11306_s28 + $0x128] sm:$0xff]   ;;  %v10928_v52 = vld [vmem:[%s11306_s28 + $0x130] sm:$0xff]   ;;  %v10930_v55 = vld [vmem:[%s11306_s28 + $0x138] sm:$0xff]  }
  0x20   : > { %v10927_v51 = vld [vmem:[%s11306_s28 + $0x168] sm:$0xff]   ;;  %v10929_v53 = vld [vmem:[%s11306_s28 + $0x170] sm:$0xff]   ;;  %v10931_v56 = vld [vmem:[%s11306_s28 + $0x178] sm:$0xff]  }
  0x21   : > { %9688 = vmatpush3.bf16.msra.mxu0 %v11335_v7  ;;  %9720 = vmatpush3.bf16.msra.mxu1 %v11335_v7  ;;  %v10932_v58 = vld [vmem:[%s11306_s28 + $0x180] sm:$0xff]   ;;  %v10933_v60 = vld [vmem:[%s11306_s28 + $0x188] sm:$0xff]   ;;  %v10934_v63 = vld [vmem:[%s11306_s28 + $0x190] sm:$0xff]  }
  0x22   : > { %9689 = vmatprep.subr.bf16.mxu0 %v11344_v8  ;;  %9721 = vmatprep.subr.bf16.mxu1 %v11344_v8  ;;  %v10950_v4 = vld [vmem:[%s13570_s3 + $0x50] sm:$0xff]   ;;  %v10940_v5 = vld [vmem:[%s11306_s28 + $0x1a0] sm:$0xff]  }
  0x25   : > { %9690 = vmatpush3.bf16.msra.mxu0 %v11344_v8  ;;  %9722 = vmatpush3.bf16.msra.mxu1 %v11344_v8 }
  0x26   : > { %9691 = vmatprep.subr.bf16.mxu0 %v11353_v9  ;;  %9723 = vmatprep.subr.bf16.mxu1 %v11353_v9 }
  0x29   : > { %9692 = vmatpush3.bf16.msra.mxu0 %v11353_v9  ;;  %9724 = vmatpush3.bf16.msra.mxu1 %v11353_v9 }
  0x2a   : > { %9741 = vmatprep.subr.bf16.mxu0 %v11282_v0  ;;  %9773 = vmatprep.subr.bf16.mxu1 %v11282_v0 }
  0x2c   : > { %9694 = vmatmul.mubr.bf16.vlgmr.msra.gmra.mxu0 %v10886_v10  ;;  %9726 = vmatmul.mubr.bf16.vlgmr.msra.gmra.mxu1 %v10887_v11  ;;  %v10954_v10 = vld [vmem:[%s13570_s3 + $0x40] sm:$0xff]   ;;  %v10946_v11 = vld [vmem:[%s11306_s28 + $0x1b0] sm:$0xff]  }
  0x2d   : > { %9742 = vmatpush3.bf16.msra.mxu0 %v11282_v0  ;;  %9774 = vmatpush3.bf16.msra.mxu1 %v11282_v0 }
  0x2e   : > { %9743 = vmatprep.subr.bf16.mxu0 %v11287_v1  ;;  %9775 = vmatprep.subr.bf16.mxu1 %v11287_v1 }
  0x2f   : > { %9697 = vmatprep.mubr.bf16.mxu0 %v10888_v12  ;;  %9729 = vmatprep.mubr.bf16.mxu1 %v10889_v13  ;;  %v10951_v12 = vld [vmem:[%s13570_s3 + $0x10] sm:$0xff]   ;;  %v10953_v13 = vld [vmem:[%s13570_s3 + $0x8] sm:$0xff]  }
  0x31   : > { %9744 = vmatpush3.bf16.msra.mxu0 %v11287_v1  ;;  %9776 = vmatpush3.bf16.msra.mxu1 %v11287_v1 }
  0x32   : > { %9745 = vmatprep.subr.bf16.mxu0 %v11300_v2  ;;  %9777 = vmatprep.subr.bf16.mxu1 %v11300_v2 }
  0x34   : > { %9698 = vmatmul.mubr.bf16.gmra.mxu0 %v10890_v14  ;;  %9730 = vmatmul.mubr.bf16.gmra.mxu1 %v10891_v15  ;;  %v10947_v14 = vld [vmem:[%s11306_s28 + $0x1b8] sm:$0xff]   ;;  %v10955_v15 = vld [vmem:[%s13570_s3] sm:$0xff]  }
  0x35   : > { %9746 = vmatpush3.bf16.msra.mxu0 %v11300_v2  ;;  %9778 = vmatpush3.bf16.msra.mxu1 %v11300_v2 }
  0x36   : > { %9747 = vmatprep.subr.bf16.mxu0 %v11313_v3  ;;  %9779 = vmatprep.subr.bf16.mxu1 %v11313_v3 }
  0x37   : > { %9701 = vmatprep.mubr.bf16.mxu0 %v10892_v16  ;;  %9733 = vmatprep.mubr.bf16.mxu1 %v10893_v17  ;;  %v11546_v16 = vld [vmem:[%s13570_s3 + $0xf8] sm:$0xff]  }
  0x38   : > { %v11552_v17 = vld [vmem:[%s13570_s3 + $0xb8] sm:$0xff]  }
  0x39   : > { %9748 = vmatpush3.bf16.msra.mxu0 %v11313_v3  ;;  %9780 = vmatpush3.bf16.msra.mxu1 %v11313_v3 }
  0x3a   : > { %9749 = vmatprep.subr.bf16.mxu0 %v11326_v6  ;;  %9781 = vmatprep.subr.bf16.mxu1 %v11326_v6 }
  0x3c   : > { %9702 = vmatmul.mubr.bf16.gmra.mxu0 %v10894_v18  ;;  %9734 = vmatmul.mubr.bf16.gmra.mxu1 %v10895_v19 }
  0x3d   : > { %9750 = vmatpush3.bf16.msra.mxu0 %v11326_v6  ;;  %9782 = vmatpush3.bf16.msra.mxu1 %v11326_v6 }
  0x3e   : > { %9751 = vmatprep.subr.bf16.mxu0 %v11335_v7  ;;  %9783 = vmatprep.subr.bf16.mxu1 %v11335_v7 }
  0x3f   : > { %9705 = vmatprep.mubr.bf16.mxu0 %v10896_v20  ;;  %9737 = vmatprep.mubr.bf16.mxu1 %v10897_v21 }
  0x41   : > { %9752 = vmatpush3.bf16.msra.mxu0 %v11335_v7  ;;  %9784 = vmatpush3.bf16.msra.mxu1 %v11335_v7 }
  0x42   : > { %9753 = vmatprep.subr.bf16.mxu0 %v11344_v8  ;;  %9785 = vmatprep.subr.bf16.mxu1 %v11344_v8 }
  0x44   : > { %9706 = vmatmul.mubr.bf16.gmra.mxu0 %v10898_v22  ;;  %9738 = vmatmul.mubr.bf16.gmra.mxu1 %v10899_v23 }
  0x45   : > { %9754 = vmatpush3.bf16.msra.mxu0 %v11344_v8  ;;  %9786 = vmatpush3.bf16.msra.mxu1 %v11344_v8 }
  0x46   : > { %9755 = vmatprep.subr.bf16.mxu0 %v11353_v9  ;;  %9787 = vmatprep.subr.bf16.mxu1 %v11353_v9 }
  0x47   : > { %9757 = vmatprep.mubr.bf16.mxu0 %v10900_v24  ;;  %9789 = vmatprep.mubr.bf16.mxu1 %v10901_v25 }
  0x49   : > { %9756 = vmatpush3.bf16.msra.mxu0 %v11353_v9  ;;  %9788 = vmatpush3.bf16.msra.mxu1 %v11353_v9 }
  0x4a   : > { %9805 = vmatprep.subr.bf16.mxu0 %v11282_v0  ;;  %9837 = vmatprep.subr.bf16.mxu1 %v11282_v0 }
  0x4c   : > { %9758 = vmatmul.mubr.bf16.vlgmr.msra.gmra.mxu0 %v10902_v26  ;;  %9790 = vmatmul.mubr.bf16.vlgmr.msra.gmra.mxu1 %v10903_v27 }
  0x4d   : > { %9806 = vmatpush3.bf16.msra.mxu0 %v11282_v0  ;;  %9838 = vmatpush3.bf16.msra.mxu1 %v11282_v0 }
  0x4e   : > { %9807 = vmatprep.subr.bf16.mxu0 %v11287_v1  ;;  %9839 = vmatprep.subr.bf16.mxu1 %v11287_v1 }
  0x4f   : > { %9761 = vmatprep.mubr.bf16.mxu0 %v10904_v28  ;;  %9793 = vmatprep.mubr.bf16.mxu1 %v10905_v29  ;;  %v11558_v29 = vld [vmem:[%s13569_s2] ss:$0 sm:$0xff] }
  0x51   : > { %9808 = vmatpush3.bf16.msra.mxu0 %v11287_v1  ;;  %9840 = vmatpush3.bf16.msra.mxu1 %v11287_v1 }
  0x52   : > { %9809 = vmatprep.subr.bf16.mxu0 %v11300_v2  ;;  %9841 = vmatprep.subr.bf16.mxu1 %v11300_v2 }
  0x54   : > { %9762 = vmatmul.mubr.bf16.gmra.mxu0 %v10906_v30  ;;  %9794 = vmatmul.mubr.bf16.gmra.mxu1 %v10907_v31 }
  0x55   : > { %9810 = vmatpush3.bf16.msra.mxu0 %v11300_v2  ;;  %9842 = vmatpush3.bf16.msra.mxu1 %v11300_v2 }
  0x56   : > { %9811 = vmatprep.subr.bf16.mxu0 %v11313_v3  ;;  %9843 = vmatprep.subr.bf16.mxu1 %v11313_v3 }
  0x57   : > { %9765 = vmatprep.mubr.bf16.mxu0 %v10908_v32  ;;  %9797 = vmatprep.mubr.bf16.mxu1 %v10909_v33 }
  0x59   : > { %9812 = vmatpush3.bf16.msra.mxu0 %v11313_v3  ;;  %9844 = vmatpush3.bf16.msra.mxu1 %v11313_v3 }
  0x5a   : > { %9813 = vmatprep.subr.bf16.mxu0 %v11326_v6  ;;  %9845 = vmatprep.subr.bf16.mxu1 %v11326_v6 }
  0x5c   : > { %9766 = vmatmul.mubr.bf16.gmra.mxu0 %v10910_v34  ;;  %9798 = vmatmul.mubr.bf16.gmra.mxu1 %v10911_v35 }
  0x5d   : > { %9814 = vmatpush3.bf16.msra.mxu0 %v11326_v6  ;;  %9846 = vmatpush3.bf16.msra.mxu1 %v11326_v6 }
  0x5e   : > { %9815 = vmatprep.subr.bf16.mxu0 %v11335_v7  ;;  %9847 = vmatprep.subr.bf16.mxu1 %v11335_v7 }
  0x5f   : > { %9769 = vmatprep.mubr.bf16.mxu0 %v10912_v36  ;;  %9801 = vmatprep.mubr.bf16.mxu1 %v10913_v37 }
  0x61   : > { %9816 = vmatpush3.bf16.msra.mxu0 %v11335_v7  ;;  %9848 = vmatpush3.bf16.msra.mxu1 %v11335_v7 }
  0x62   : > { %9817 = vmatprep.subr.bf16.mxu0 %v11344_v8  ;;  %9849 = vmatprep.subr.bf16.mxu1 %v11344_v8 }
  0x64   : > { %9770 = vmatmul.mubr.bf16.gmra.mxu0 %v10914_v38  ;;  %9802 = vmatmul.mubr.bf16.gmra.mxu1 %v10915_v39 }
  0x65   : > { %9818 = vmatpush3.bf16.msra.mxu0 %v11344_v8  ;;  %9850 = vmatpush3.bf16.msra.mxu1 %v11344_v8 }
  0x66   : > { %9819 = vmatprep.subr.bf16.mxu0 %v11353_v9  ;;  %9851 = vmatprep.subr.bf16.mxu1 %v11353_v9 }
  0x67   : > { %9821 = vmatprep.mubr.bf16.mxu0 %v10916_v40  ;;  %9853 = vmatprep.mubr.bf16.mxu1 %v10917_v41 }
  0x69   : > { %9820 = vmatpush3.bf16.msra.mxu0 %v11353_v9  ;;  %9852 = vmatpush3.bf16.msra.mxu1 %v11353_v9 }
  0x6a   : > { %9869 = vmatprep.subr.bf16.mxu0 %v11282_v0  ;;  %9901 = vmatprep.subr.bf16.mxu1 %v10936_v54 }
  0x6c   : > { %9822 = vmatmul.mubr.bf16.vlgmr.msra.gmra.mxu0 %v10918_v42  ;;  %9854 = vmatmul.mubr.bf16.vlgmr.msra.gmra.mxu1 %v10919_v43 }
  0x6d   : > { %9825 = vmatprep.mubr.bf16.mxu0 %v10920_v44  ;;  %9857 = vmatprep.mubr.bf16.mxu1 %v10921_v45 }
  0x6e   : > { %9870 = vmatpush3.bf16.msra.mxu0 %v11282_v0  ;;  %9902 = vmatpush3.bf16.msra.mxu1 %v10936_v54  ;;  %v10939_v0 = vld [vmem:[%s13570_s3 + $0x30] sm:$0xff]  }
  0x6f   : > { %9871 = vmatprep.subr.bf16.mxu0 %v11287_v1  ;;  %9903 = vmatprep.subr.bf16.mxu1 %v10938_v57 }
  0x72   : > { %9872 = vmatpush3.bf16.msra.mxu0 %v11287_v1  ;;  %9904 = vmatpush3.bf16.msra.mxu1 %v10938_v57  ;;  %v10948_v1 = vld [vmem:[%s13570_s3 + $0x58] sm:$0xff]  }
  0x73   : > { %9873 = vmatprep.subr.bf16.mxu0 %v11300_v2  ;;  %9905 = vmatprep.subr.bf16.mxu1 %v10942_v59 }
  0x74   : > { %9826 = vmatmul.mubr.bf16.gmra.mxu0 %v10922_v46  ;;  %9858 = vmatmul.mubr.bf16.gmra.mxu1 %v10923_v47 }
  0x75   : > { %9829 = vmatprep.mubr.bf16.mxu0 %v10924_v48  ;;  %9861 = vmatprep.mubr.bf16.mxu1 %v10925_v49 }
  0x76   : > { %9874 = vmatpush3.bf16.msra.mxu0 %v11300_v2  ;;  %9906 = vmatpush3.bf16.msra.mxu1 %v10942_v59  ;;  %v10935_v2 = vld [vmem:[%s11306_s28 + $0x198] sm:$0xff]  }
  0x77   : > { %9875 = vmatprep.subr.bf16.mxu0 %v11313_v3  ;;  %9907 = vmatprep.subr.bf16.mxu1 %v10944_v62 }
  0x7a   : > { %9876 = vmatpush3.bf16.msra.mxu0 %v11313_v3  ;;  %9908 = vmatpush3.bf16.msra.mxu1 %v10944_v62  ;;  %v10943_v3 = vld [vmem:[%s13570_s3 + $0x28] sm:$0xff]  }
  0x7b   : > { %9877 = vmatprep.subr.bf16.mxu0 %v11326_v6  ;;  %9909 = vmatprep.subr.bf16.mxu1 %v10948_v1 }
  0x7c   : > { %9830 = vmatmul.mubr.bf16.gmra.mxu0 %v10926_v50  ;;  %9862 = vmatmul.mubr.bf16.gmra.mxu1 %v10927_v51 }
  0x7d   : > { %9833 = vmatprep.mubr.bf16.mxu0 %v10928_v52  ;;  %9865 = vmatprep.mubr.bf16.mxu1 %v10929_v53 }
  0x7e   : > { %9878 = vmatpush3.bf16.msra.mxu0 %v11326_v6  ;;  %9910 = vmatpush3.bf16.msra.mxu1 %v10948_v1  ;;  %v10945_v6 = vld [vmem:[%s13570_s3 + $0x20] sm:$0xff]  }
  0x7f   : > { %9879 = vmatprep.subr.bf16.mxu0 %v11335_v7  ;;  %9911 = vmatprep.subr.bf16.mxu1 %v10950_v4 }
  0x82   : > { %9880 = vmatpush3.bf16.msra.mxu0 %v11335_v7  ;;  %9912 = vmatpush3.bf16.msra.mxu1 %v10950_v4  ;;  %v10952_v7 = vld [vmem:[%s13570_s3 + $0x48] sm:$0xff]  }
  0x83   : > { %9881 = vmatprep.subr.bf16.mxu0 %v11344_v8  ;;  %9913 = vmatprep.subr.bf16.mxu1 %v10952_v7 }
  0x84   : > { %9834 = vmatmul.mubr.bf16.gmra.mxu0 %v10930_v55  ;;  %9866 = vmatmul.mubr.bf16.gmra.mxu1 %v10931_v56 }
  0x85   : > { %9885 = vmatprep.mubr.bf16.mxu0 %v10932_v58 }
  0x86   : > { %9882 = vmatpush3.bf16.msra.mxu0 %v11344_v8  ;;  %v10949_v8 = vld [vmem:[%s13570_s3 + $0x18] sm:$0xff]   ;;  %9914 = vmatpush3.bf16.msra.mxu1 %v10952_v7 }
  0x87   : > { %9883 = vmatprep.subr.bf16.mxu0 %v11353_v9  ;;  %9915 = vmatprep.subr.bf16.mxu1 %v10954_v10 }
  0x8a   : > { %9884 = vmatpush3.bf16.msra.mxu0 %v11353_v9  ;;  %v10941_v9 = vld [vmem:[%s11306_s28 + $0x1a8] sm:$0xff]   ;;  %9916 = vmatpush3.bf16.msra.mxu1 %v10954_v10 }
  0x8b   : > { %9937 = vmatprep.subr.bf16.mxu0 %v10937_v61  ;;  %9973 = vmatprep.subr.bf16.mxu1 %v11552_v17 }
  0x8d   : > { %9886 = vmatmul.mubr.bf16.vlgmr.msra.gmra.mxu0 %v10933_v60 }
  0x8e   : > { %9889 = vmatprep.mubr.bf16.mxu0 %v10934_v63  ;;  %9938 = vmatpush3.bf16.msra.mxu0 %v10937_v61 }
  0x8f   : > { %9939 = vmatprep.subr.bf16.mxu0 %v10939_v0 }
  0x92   : > { %9940 = vmatpush3.bf16.msra.mxu0 %v10939_v0 }
  0x93   : > { %9941 = vmatprep.subr.bf16.mxu0 %v10943_v3 }
  0x95   : > { %9890 = vmatmul.mubr.bf16.gmra.mxu0 %v10935_v2 }
  0x96   : > { %9893 = vmatprep.mubr.bf16.mxu0 %v10940_v5  ;;  %9942 = vmatpush3.bf16.msra.mxu0 %v10943_v3 }
  0x97   : > { %9943 = vmatprep.subr.bf16.mxu0 %v10945_v6 }
  0x9a   : > { %9944 = vmatpush3.bf16.msra.mxu0 %v10945_v6 }
  0x9b   : > { %9945 = vmatprep.subr.bf16.mxu0 %v10949_v8 }
  0x9d   : > { %9894 = vmatmul.mubr.bf16.gmra.mxu0 %v10941_v9 }
  0x9e   : > { %9897 = vmatprep.mubr.bf16.mxu0 %v10946_v11  ;;  %9946 = vmatpush3.bf16.msra.mxu0 %v10949_v8 }
  0x9f   : > { %9947 = vmatprep.subr.bf16.mxu0 %v10951_v12 }
  0xa2   : > { %9948 = vmatpush3.bf16.msra.mxu0 %v10951_v12 }
  0xa3   : > { %9949 = vmatprep.subr.bf16.mxu0 %v10953_v13 }
  0xa5   : > { %9898 = vmatmul.mubr.bf16.gmra.mxu0 %v10947_v14 }
  0xa6   : > { %9950 = vmatpush3.bf16.msra.mxu0 %v10953_v13 }
  0xa7   : > { %9951 = vmatprep.subr.bf16.mxu0 %v10955_v15 }
  0xaa   : > { %9952 = vmatpush3.bf16.msra.mxu0 %v10955_v15 }
  0xab   : > { %10009 = vmatprep.subr.bf16.mxu0 %v11546_v16 }
  0xec   : > { %v9695_v18 = vpop.f32.mrf.mxu0  ;;  %v9727_v19 = vpop.f32.mrf.mxu1 }
  0xee   : > { %v553_v20 = vpop.f32.mrf.mxu0  ;;  %v744_v21 = vpop.f32.mrf.mxu1 }
  0xef   : > { %v807_v28 = vmax.f32 %v744_v21, %v9727_v19  ;;  %v616_v32 = vmax.f32 %v553_v20, %v9695_v18 }
  0xf0   : > { %v9696_v22 = vpop.f32.mrf.mxu0  ;;  %v9728_v23 = vpop.f32.mrf.mxu1 }
  0xf2   : > { %v556_v24 = vpop.f32.mrf.mxu0  ;;  %v747_v25 = vpop.f32.mrf.mxu1 }
  0xf3   : > { %v808_v37 = vmax.f32 %v747_v25, %v9728_v23  ;;  %v617_v40 = vmax.f32 %v556_v24, %v9696_v22 }
  0xf4   : > { %v9699_v26 = vpop.f32.mrf.mxu0  ;;  %v9731_v27 = vpop.f32.mrf.mxu1 }
  0xf6   : > { %v569_v30 = vpop.f32.mrf.mxu0  ;;  %v760_v31 = vpop.f32.mrf.mxu1 }
  0xf7   : > { %v620_v33 = vmax.f32 %v569_v30, %v9699_v26  ;;  %v811_v34 = vmax.f32 %v760_v31, %v9731_v27 }
  0xf8   : > { %v9700_v35 = vpop.f32.mrf.mxu0  ;;  %v9732_v36 = vpop.f32.mrf.mxu1 }
  0xf9   : > { %v624_v38 = vmax.f32 %v616_v32, %v620_v33  ;;  %v815_v39 = vmax.f32 %v807_v28, %v811_v34 }
  0xfa   : > { %v572_v41 = vpop.f32.mrf.mxu0  ;;  %v763_v42 = vpop.f32.mrf.mxu1 }
  0xfb   : > { %v634_v43 = vadd.f32 %v11558_v29, %v624_v38  ;;  %v11562_v44 = vadd.f32 %v11558_v29, %v815_v39  ;;  %v621_v45 = vmax.f32 %v572_v41, %v9700_v35  ;;  %v812_v46 = vmax.f32 %v763_v42, %v9732_v36 }
  0xfc   : > { %v9703_v47 = vpop.f32.mrf.mxu0  ;;  %v9735_v48 = vpop.f32.mrf.mxu1 }
  0xfd   : > { %v638_v49 = vmax.f32 %v634_v43, 0.0  ;;  %v823_v50 = vmax.f32 %v11562_v44, 0.0  ;;  %v625_v51 = vmax.f32 %v617_v40, %v621_v45  ;;  %v816_v52 = vmax.f32 %v808_v37, %v812_v46  ;;  %v10960_v40 = vld [vmem:[%s13570_s3 + $0xf0] sm:$0xff]  }
  0xfe   : > { %v585_v53 = vpop.f32.mrf.mxu0  ;;  %v776_v54 = vpop.f32.mrf.mxu1 }
  0xff   : > { %642 = vst [vmem:[#allocation2] sm:$0xff] %v638_v49  ;;  %827 = vst [vmem:[#allocation2 + $0x20] sm:$0xff] %v823_v50  ;;  %v635_v55 = vadd.f32 %v11558_v29, %v625_v51  ;;  %v820_v56 = vadd.f32 %v11558_v29, %v816_v52  ;;  %v809_v2 = vmax.f32 %v776_v54, %v9735_v48 }
 0x100   : > { %v9704_v57 = vpop.f32.mrf.mxu0  ;;  %v9736_v58 = vpop.f32.mrf.mxu1  ;;  %v618_v5 = vmax.f32 %v585_v53, %v9703_v47 }
 0x101   : > { %v639_v59 = vmax.f32 %v635_v55, 0.0  ;;  %v824_v60 = vmax.f32 %v820_v56, 0.0  ;;  %v10962_v55 = vld [vmem:[%s13570_s3 + $0xe8] sm:$0xff]  }
 0x102   : > { %v588_v61 = vpop.f32.mrf.mxu0  ;;  %v779_v62 = vpop.f32.mrf.mxu1 }
 0x103   : > { %643 = vst [vmem:[#allocation2 + $0x8] sm:$0xff] %v639_v59  ;;  %828 = vst [vmem:[#allocation2 + $0x28] sm:$0xff] %v824_v60  ;;  %v1776_v63 = vpack.c.bf16 %v639_v59, %v638_v49  ;;  %v810_v10 = vmax.f32 %v779_v62, %v9736_v58  ;;  %v619_v13 = vmax.f32 %v588_v61, %v9704_v57 }
 0x104   : > { %v9707_v0 = vpop.f32.mrf.mxu0  ;;  %v9739_v1 = vpop.f32.mrf.mxu1  ;;  %v1778_v43 = vpack.c.bf16 %v824_v60, %v823_v50 }
 0x105   : > { %9953 = vmatprep.mubr.bf16.mxu0 %v1776_v63 }
 0x106   : > { %v601_v3 = vpop.f32.mrf.mxu0  ;;  %v792_v4 = vpop.f32.mrf.mxu1 }
 0x107   : > { %v622_v6 = vmax.f32 %v601_v3, %v9707_v0  ;;  %v813_v7 = vmax.f32 %v792_v4, %v9739_v1 }
 0x108   : > { %v9708_v8 = vpop.f32.mrf.mxu0  ;;  %v9740_v9 = vpop.f32.mrf.mxu1 }
 0x109   : > { %v626_v11 = vmax.f32 %v618_v5, %v622_v6  ;;  %v817_v12 = vmax.f32 %v809_v2, %v813_v7 }
 0x10a   : > { %v604_v14 = vpop.f32.mrf.mxu0  ;;  %v795_v15 = vpop.f32.mrf.mxu1  ;;  %v1802_v48 = vld [vmem:[#allocation2 + $0x1] sm:$0xff] }
 0x10b   : > { %v636_v18 = vadd.f32 %v11558_v29, %v626_v11  ;;  %v821_v19 = vadd.f32 %v11558_v29, %v817_v12  ;;  %v623_v20 = vmax.f32 %v604_v14, %v9708_v8  ;;  %v814_v21 = vmax.f32 %v795_v15, %v9740_v9  ;;  %v1806_v5 = vld [vmem:[#allocation2 + $0x21] sm:$0xff]  ;;  %v10957_v15 = vld [vmem:[%s13570_s3 + $0xb0] sm:$0xff]  }
 0x10c   : > { %v9759_v22 = vpop.f32.mrf.mxu0  ;;  %v9791_v23 = vpop.f32.mrf.mxu1 }
 0x10d   : > { %v640_v24 = vmax.f32 %v636_v18, 0.0  ;;  %v825_v25 = vmax.f32 %v821_v19, 0.0  ;;  %v627_v26 = vmax.f32 %v619_v13, %v623_v20  ;;  %v818_v27 = vmax.f32 %v810_v10, %v814_v21  ;;  %v10964_v10 = vld [vmem:[%s13570_s3 + $0xe0] sm:$0xff]  }
 0x10e   : > { %v929_v28 = vpop.f32.mrf.mxu0  ;;  %v1114_v30 = vpop.f32.mrf.mxu1 }
 0x10f   : > { %644 = vst [vmem:[#allocation2 + $0x10] sm:$0xff] %v640_v24  ;;  %829 = vst [vmem:[#allocation2 + $0x30] sm:$0xff] %v825_v25  ;;  %v637_v31 = vadd.f32 %v11558_v29, %v627_v26  ;;  %v822_v32 = vadd.f32 %v11558_v29, %v818_v27  ;;  %v1177_v45 = vmax.f32 %v1114_v30, %v9791_v23  ;;  %v10959_v27 = vld [vmem:[%s13570_s3 + $0xa8] sm:$0xff]  }
 0x110   : > { %v9760_v33 = vpop.f32.mrf.mxu0  ;;  %v9792_v34 = vpop.f32.mrf.mxu1  ;;  %v992_v51 = vmax.f32 %v929_v28, %v9759_v22  ;;  %v10965_v22 = vld [vmem:[%s13570_s3 + $0xd8] sm:$0xff]  }
 0x111   : > { %v641_v35 = vmax.f32 %v637_v31, 0.0  ;;  %v826_v36 = vmax.f32 %v822_v32, 0.0 }
 0x112   : > { %v932_v37 = vpop.f32.mrf.mxu0  ;;  %v1117_v38 = vpop.f32.mrf.mxu1 }
 0x113   : > { %645 = vst [vmem:[#allocation2 + $0x18] sm:$0xff] %v641_v35  ;;  %830 = vst [vmem:[#allocation2 + $0x38] sm:$0xff] %v826_v36  ;;  %v1777_v39 = vpack.c.bf16 %v641_v35, %v640_v24  ;;  %v1178_v56 = vmax.f32 %v1117_v38, %v9792_v34  ;;  %v993_v60 = vmax.f32 %v932_v37, %v9760_v33  ;;  %v10961_v35 = vld [vmem:[%s13570_s3 + $0xa0] sm:$0xff]  }
 0x114   : > { %v9763_v41 = vpop.f32.mrf.mxu0  ;;  %v9795_v42 = vpop.f32.mrf.mxu1  ;;  %v1779_v0 = vpack.c.bf16 %v826_v36, %v825_v25 }
 0x115   : > { %9954 = vmatmul.mubr.bf16.vlgmr.msra.gmra.mxu0 %v1777_v39 }
 0x116   : > { %v945_v46 = vpop.f32.mrf.mxu0  ;;  %v1130_v47 = vpop.f32.mrf.mxu1  ;;  %v1803_v49 = vld [vmem:[#allocation2 + $0x9] sm:$0xff]  ;;  %9957 = vmatprep.mubr.bf16.mxu0 %v1778_v43  ;;  %10010 = vmatpush3.bf16.msra.mxu0 %v11546_v16 }
 0x117   : > { %v996_v52 = vmax.f32 %v945_v46, %v9763_v41  ;;  %v1181_v53 = vmax.f32 %v1130_v47, %v9795_v42  ;;  %v1822_v54 = vpack.c.bf16 %v1803_v49, %v1802_v48  ;;  %10011 = vmatprep.subr.bf16.mxu0 %v10960_v40  ;;  %v1807_v59 = vld [vmem:[#allocation2 + $0x29] sm:$0xff] }
 0x118   : > { %v9764_v44 = vpop.f32.mrf.mxu0  ;;  %v9796_v50 = vpop.f32.mrf.mxu1  ;;  %v1824_v9 = vpack.c.bf16 %v1807_v59, %v1806_v5 }
 0x119   : > { %v1000_v57 = vmax.f32 %v992_v51, %v996_v52  ;;  %v1185_v58 = vmax.f32 %v1177_v45, %v1181_v53  ;;  %9917 = vmatprep.mubr.bf16.mxu1 %v1822_v54  ;;  %v10969_v45 = vld [vmem:[%s13570_s3 + $0xc8] sm:$0xff]   ;;  %v10963_v52 = vld [vmem:[%s13570_s3 + $0x98] sm:$0xff]  }
 0x11a   : > { %v948_v61 = vpop.f32.mrf.mxu0  ;;  %v1133_v62 = vpop.f32.mrf.mxu1  ;;  %v1804_v16 = vld [vmem:[#allocation2 + $0x11] sm:$0xff]  ;;  %v1805_v63 = vld [vmem:[#allocation2 + $0x19] sm:$0xff]  ;;  %10012 = vmatpush3.bf16.msra.mxu0 %v10960_v40 }
 0x11b   : > { %v1004_v1 = vadd.f32 %v11558_v29, %v1000_v57  ;;  %v11584_v2 = vadd.f32 %v11558_v29, %v1185_v58  ;;  %v997_v3 = vmax.f32 %v948_v61, %v9764_v44  ;;  %v1182_v4 = vmax.f32 %v1133_v62, %v9796_v50  ;;  %10013 = vmatprep.subr.bf16.mxu0 %v10962_v55  ;;  %v1808_v38 = vld [vmem:[#allocation2 + $0x31] sm:$0xff]  ;;  %v10971_v58 = vld [vmem:[%s13570_s3 + $0xc0] sm:$0xff]  }
 0x11c   : > { %v9767_v6 = vpop.f32.mrf.mxu0  ;;  %v9799_v7 = vpop.f32.mrf.mxu1  ;;  %v1823_v8 = vpack.c.bf16 %v1805_v63, %v1804_v16 }
 0x11d   : > { %v1008_v11 = vmax.f32 %v1004_v1, 0.0  ;;  %v1193_v12 = vmax.f32 %v11584_v2, 0.0  ;;  %v1001_v13 = vmax.f32 %v993_v60, %v997_v3  ;;  %v1186_v14 = vmax.f32 %v1178_v56, %v1182_v4  ;;  %9958 = vmatmul.mubr.bf16.gmra.mxu0 %v1779_v0  ;;  %v10966_v0 = vld [vmem:[%s13570_s3 + $0x90] sm:$0xff]  }
 0x11e   : > { %9918 = vmatmul.mubr.bf16.vlgmr.msra.gmra.mxu1 %v1823_v8  ;;  %v961_v18 = vpop.f32.mrf.mxu0  ;;  %v1146_v19 = vpop.f32.mrf.mxu1  ;;  %10014 = vmatpush3.bf16.msra.mxu0 %v10962_v55 }
 0x11f   : > { %1012 = vst [vmem:[#allocation2 + $0x40] sm:$0xff] %v1008_v11  ;;  %1197 = vst [vmem:[#allocation2 + $0x60] sm:$0xff] %v1193_v12  ;;  %v1005_v20 = vadd.f32 %v11558_v29, %v1001_v13  ;;  %v1190_v21 = vadd.f32 %v11558_v29, %v1186_v14  ;;  %9921 = vmatprep.mubr.bf16.mxu1 %v1824_v9  ;;  %9974 = vmatpush3.bf16.msra.mxu1 %v11552_v17  ;;  %v10967_v17 = vld [vmem:[%s13570_s3 + $0xd0] sm:$0xff]  }
 0x120   : > { %v9768_v23 = vpop.f32.mrf.mxu0  ;;  %v9800_v24 = vpop.f32.mrf.mxu1  ;;  %10015 = vmatprep.subr.bf16.mxu0 %v10964_v10  ;;  %9975 = vmatprep.subr.bf16.mxu1 %v10957_v15  ;;  %v1179_v34 = vmax.f32 %v1146_v19, %v9799_v7  ;;  %v994_v40 = vmax.f32 %v961_v18, %v9767_v6  ;;  %v11638_v6 = vld [vmem:[%s13570_s3 + $0x178] sm:$0xff]  }
 0x121   : > { %v1009_v25 = vmax.f32 %v1005_v20, 0.0  ;;  %v11601_v26 = vmax.f32 %v1190_v21, 0.0 }
 0x122   : > { %v964_v28 = vpop.f32.mrf.mxu0  ;;  %v1149_v30 = vpop.f32.mrf.mxu1  ;;  %10016 = vmatpush3.bf16.msra.mxu0 %v10964_v10 }
 0x123   : > { %1013 = vst [vmem:[#allocation2 + $0x48] sm:$0xff] %v1009_v25  ;;  %1198 = vst [vmem:[#allocation2 + $0x68] sm:$0xff] %v11601_v26  ;;  %v11607_v31 = vpack.c.bf16 %v1009_v25, %v1008_v11  ;;  %10017 = vmatprep.subr.bf16.mxu0 %v10965_v22  ;;  %9976 = vmatpush3.bf16.msra.mxu1 %v10957_v15  ;;  %v1180_v48 = vmax.f32 %v1149_v30, %v9800_v24  ;;  %v10968_v11 = vld [vmem:[%s13570_s3 + $0x88] sm:$0xff]  }
 0x124   : > { %v9771_v32 = vpop.f32.mrf.mxu0  ;;  %v9803_v33 = vpop.f32.mrf.mxu1  ;;  %9977 = vmatprep.subr.bf16.mxu1 %v10959_v27  ;;  %v995_v53 = vmax.f32 %v964_v28, %v9768_v23  ;;  %v1782_v20 = vpack.c.bf16 %v11601_v26, %v1193_v12 }
 0x125   : > { %9961 = vmatprep.mubr.bf16.mxu0 %v11607_v31 }
 0x126   : > { %v977_v36 = vpop.f32.mrf.mxu0  ;;  %v1162_v37 = vpop.f32.mrf.mxu1  ;;  %v1809_v39 = vld [vmem:[#allocation2 + $0x39] sm:$0xff]  ;;  %10018 = vmatpush3.bf16.msra.mxu0 %v10965_v22 }
 0x127   : > { %v998_v41 = vmax.f32 %v977_v36, %v9771_v32  ;;  %v1183_v42 = vmax.f32 %v1162_v37, %v9803_v33  ;;  %v1825_v43 = vpack.c.bf16 %v1809_v39, %v1808_v38  ;;  %10019 = vmatprep.subr.bf16.mxu0 %v10967_v17  ;;  %9978 = vmatpush3.bf16.msra.mxu1 %v10959_v27  ;;  %v10970_v22 = vld [vmem:[%s13570_s3 + $0x80] sm:$0xff]   ;;  %v11656_v37 = vld [vmem:[%s13570_s3 + $0x138] sm:$0xff]  }
 0x128   : > { %v9772_v46 = vpop.f32.mrf.mxu0  ;;  %v9804_v47 = vpop.f32.mrf.mxu1  ;;  %9979 = vmatprep.subr.bf16.mxu1 %v10961_v35 }
 0x129   : > { %v1002_v49 = vmax.f32 %v994_v40, %v998_v41  ;;  %v1187_v51 = vmax.f32 %v1179_v34, %v1183_v42  ;;  %9922 = vmatmul.mubr.bf16.gmra.mxu1 %v1825_v43 }
 0x12a   : > { %v980_v54 = vpop.f32.mrf.mxu0  ;;  %v1165_v55 = vpop.f32.mrf.mxu1  ;;  %10020 = vmatpush3.bf16.msra.mxu0 %v10967_v17  ;;  %v1810_v25 = vld [vmem:[#allocation2 + $0x41] sm:$0xff] }
 0x12b   : > { %v1006_v44 = vadd.f32 %v11558_v29, %v1002_v49  ;;  %v11624_v50 = vadd.f32 %v11558_v29, %v1187_v51  ;;  %v999_v56 = vmax.f32 %v980_v54, %v9772_v46  ;;  %v1184_v57 = vmax.f32 %v1165_v55, %v9804_v47  ;;  %10021 = vmatprep.subr.bf16.mxu0 %v10969_v45  ;;  %v1814_v49 = vld [vmem:[#allocation2 + $0x61] sm:$0xff] }
 0x12c   : > { %v9823_v59 = vpop.f32.mrf.mxu0  ;;  %v9855_v60 = vpop.f32.mrf.mxu1  ;;  %9980 = vmatpush3.bf16.msra.mxu1 %v10961_v35 }
 0x12d   : > { %v1010_v61 = vmax.f32 %v1006_v44, 0.0  ;;  %v1195_v62 = vmax.f32 %v11624_v50, 0.0  ;;  %v1003_v16 = vmax.f32 %v995_v53, %v999_v56  ;;  %v1188_v63 = vmax.f32 %v1180_v48, %v1184_v57  ;;  %9981 = vmatprep.subr.bf16.mxu1 %v10963_v52 }
 0x12e   : > { %v1299_v1 = vpop.f32.mrf.mxu0  ;;  %v1484_v3 = vpop.f32.mrf.mxu1  ;;  %10022 = vmatpush3.bf16.msra.mxu0 %v10969_v45 }
 0x12f   : > { %1014 = vst [vmem:[#allocation2 + $0x50] sm:$0xff] %v1010_v61  ;;  %1199 = vst [vmem:[#allocation2 + $0x70] sm:$0xff] %v1195_v62  ;;  %v1007_v4 = vadd.f32 %v11558_v29, %v1003_v16  ;;  %v1192_v5 = vadd.f32 %v11558_v29, %v1188_v63  ;;  %10023 = vmatprep.subr.bf16.mxu0 %v10971_v58  ;;  %v1547_v21 = vmax.f32 %v1484_v3, %v9855_v60 }
 0x130   : > { %v9824_v7 = vpop.f32.mrf.mxu0  ;;  %v9856_v8 = vpop.f32.mrf.mxu1  ;;  %9982 = vmatpush3.bf16.msra.mxu1 %v10963_v52  ;;  %v1362_v28 = vmax.f32 %v1299_v1, %v9823_v59 }
 0x131   : > { %v1011_v9 = vmax.f32 %v1007_v4, 0.0  ;;  %v1196_v10 = vmax.f32 %v1192_v5, 0.0  ;;  %9983 = vmatprep.subr.bf16.mxu1 %v10966_v0 }
 0x132   : > { %v1302_v13 = vpop.f32.mrf.mxu0  ;;  %v1487_v14 = vpop.f32.mrf.mxu1  ;;  %10024 = vmatpush3.bf16.msra.mxu0 %v10971_v58 }
 0x133   : > { %1015 = vst [vmem:[#allocation2 + $0x58] sm:$0xff] %v1011_v9  ;;  %1200 = vst [vmem:[#allocation2 + $0x78] sm:$0xff] %v1196_v10  ;;  %v11643_v15 = vpack.c.bf16 %v1011_v9, %v1010_v61  ;;  %10081 = vmatprep.subr.bf16.mxu0 %v11638_v6  ;;  %v1548_v33 = vmax.f32 %v1487_v14, %v9856_v8  ;;  %v1363_v38 = vmax.f32 %v1302_v13, %v9824_v7 }
 0x134   : > { %v9827_v18 = vpop.f32.mrf.mxu0  ;;  %v9859_v19 = vpop.f32.mrf.mxu1  ;;  %9984 = vmatpush3.bf16.msra.mxu1 %v10966_v0  ;;  %v11658_v43 = vpack.c.bf16 %v1196_v10, %v1195_v62 }
 0x135   : > { %9962 = vmatmul.mubr.bf16.gmra.mxu0 %v11643_v15  ;;  %9985 = vmatprep.subr.bf16.mxu1 %v10968_v11 }
 0x136   : > { %v1315_v23 = vpop.f32.mrf.mxu0  ;;  %v1500_v24 = vpop.f32.mrf.mxu1  ;;  %v1811_v27 = vld [vmem:[#allocation2 + $0x49] sm:$0xff]  ;;  %9965 = vmatprep.mubr.bf16.mxu0 %v1782_v20 }
 0x137   : > { %v1366_v30 = vmax.f32 %v1315_v23, %v9827_v18  ;;  %v1551_v17 = vmax.f32 %v1500_v24, %v9859_v19  ;;  %v1826_v2 = vpack.c.bf16 %v1811_v27, %v1810_v25  ;;  %v1815_v36 = vld [vmem:[#allocation2 + $0x69] sm:$0xff] }
 0x138   : > { %v9828_v32 = vpop.f32.mrf.mxu0  ;;  %v9860_v12 = vpop.f32.mrf.mxu1  ;;  %9986 = vmatpush3.bf16.msra.mxu1 %v10968_v11  ;;  %v1828_v54 = vpack.c.bf16 %v1815_v36, %v1814_v49  ;;  %v2399_v49 = vld [vmem:[#allocation2 + $0x3] sm:$0xff] }
 0x139   : > { %v1370_v34 = vmax.f32 %v1362_v28, %v1366_v30  ;;  %v1555_v35 = vmax.f32 %v1547_v21, %v1551_v17  ;;  %9925 = vmatprep.mubr.bf16.mxu1 %v1826_v2  ;;  %9987 = vmatprep.subr.bf16.mxu1 %v10970_v22 }
 0x13a   : > { %v1318_v39 = vpop.f32.mrf.mxu0  ;;  %v1503_v40 = vpop.f32.mrf.mxu1  ;;  %v1812_v41 = vld [vmem:[#allocation2 + $0x51] sm:$0xff]  ;;  %v1813_v42 = vld [vmem:[#allocation2 + $0x59] sm:$0xff] }
 0x13b   : > { %v1374_v45 = vadd.f32 %v11558_v29, %v1370_v34  ;;  %v1559_v46 = vadd.f32 %v11558_v29, %v1555_v35  ;;  %v1367_v47 = vmax.f32 %v1318_v39, %v9828_v32  ;;  %v1552_v48 = vmax.f32 %v1503_v40, %v9860_v12  ;;  %v1816_v11 = vld [vmem:[#allocation2 + $0x71] sm:$0xff] }
 0x13c   : > { %v9831_v51 = vpop.f32.mrf.mxu0  ;;  %v9863_v52 = vpop.f32.mrf.mxu1  ;;  %v1827_v53 = vpack.c.bf16 %v1813_v42, %v1812_v41  ;;  %9988 = vmatpush3.bf16.msra.mxu1 %v10970_v22 }
 0x13d   : > { %v1378_v55 = vmax.f32 %v1374_v45, 0.0  ;;  %v1563_v44 = vmax.f32 %v1559_v46, 0.0  ;;  %v1371_v50 = vmax.f32 %v1363_v38, %v1367_v47  ;;  %v1556_v56 = vmax.f32 %v1548_v33, %v1552_v48  ;;  %9966 = vmatmul.mubr.bf16.gmra.mxu0 %v11658_v43  ;;  %10045 = vmatprep.subr.bf16.mxu1 %v11656_v37  ;;  %v2400_v45 = vld [vmem:[#allocation2 + $0xb] sm:$0xff] }
 0x13e   : > { %9926 = vmatmul.mubr.bf16.gmra.mxu1 %v1827_v53  ;;  %v1331_v57 = vpop.f32.mrf.mxu0  ;;  %v1516_v58 = vpop.f32.mrf.mxu1 }
 0x13f   : > { %1382 = vst [vmem:[#allocation2 + $0x80] sm:$0xff] %v1378_v55  ;;  %1567 = vst [vmem:[#allocation2 + $0xa0] sm:$0xff] %v1563_v44  ;;  %v1375_v59 = vadd.f32 %v11558_v29, %v1371_v50  ;;  %v1560_v60 = vadd.f32 %v11558_v29, %v1556_v56  ;;  %9929 = vmatprep.mubr.bf16.mxu1 %v1828_v54  ;;  %v1549_v8 = vmax.f32 %v1516_v58, %v9863_v52  ;;  %v2402_v58 = vld [vmem:[#allocation2 + $0x1b] sm:$0xff] }
 0x140   : > { %v9832_v61 = vpop.f32.mrf.mxu0  ;;  %v9864_v62 = vpop.f32.mrf.mxu1  ;;  %v1364_v14 = vmax.f32 %v1331_v57, %v9831_v51  ;;  %v2419_v52 = vpack.c.bf16 %v2400_v45, %v2399_v49  ;;  %v2401_v57 = vld [vmem:[#allocation2 + $0x13] sm:$0xff]  ;;  %v10980_v45 = vld [vmem:[%s13570_s3 + $0x160] sm:$0xff]   ;;  %v10975_v49 = vld [vmem:[%s13570_s3 + $0x128] sm:$0xff]  }
 0x141   : > { %v1379_v16 = vmax.f32 %v1375_v59, 0.0  ;;  %v1564_v63 = vmax.f32 %v1560_v60, 0.0  ;;  %v2172_v60 = vld [vmem:[#allocation2 + $0xa] sm:$0xff] }
 0x142   : > { %v1334_v0 = vpop.f32.mrf.mxu0  ;;  %v1519_v1 = vpop.f32.mrf.mxu1 }
 0x143   : > { %1383 = vst [vmem:[#allocation2 + $0x88] sm:$0xff] %v1379_v16  ;;  %1568 = vst [vmem:[#allocation2 + $0xa8] sm:$0xff] %v1564_v63  ;;  %v11666_v3 = vpack.c.bf16 %v1379_v16, %v1378_v55  ;;  %v11668_v4 = vpack.c.bf16 %v1564_v63, %v1563_v44  ;;  %v1550_v23 = vmax.f32 %v1519_v1, %v9864_v62 }
 0x144   : > { %v9835_v5 = vpop.f32.mrf.mxu0  ;;  %v9867_v7 = vpop.f32.mrf.mxu1  ;;  %v1365_v27 = vmax.f32 %v1334_v0, %v9832_v61  ;;  %v2404_v61 = vld [vmem:[#allocation2 + $0x2b] sm:$0xff] }
 0x145   : > { %9969 = vmatprep.mubr.bf16.mxu0 %v11666_v3 }
 0x146   : > { %v1347_v9 = vpop.f32.mrf.mxu0  ;;  %v1532_v10 = vpop.f32.mrf.mxu1  ;;  %v1817_v13 = vld [vmem:[#allocation2 + $0x79] sm:$0xff] }
 0x147   : > { %v1368_v18 = vmax.f32 %v1347_v9, %v9835_v5  ;;  %v1553_v19 = vmax.f32 %v1532_v10, %v9867_v7  ;;  %v11671_v20 = vpack.c.bf16 %v1817_v13, %v1816_v11  ;;  %v2171_v7 = vld [vmem:[#allocation2 + $0x2] sm:$0xff] }
 0x148   : > { %v9836_v21 = vpop.f32.mrf.mxu0  ;;  %v9868_v22 = vpop.f32.mrf.mxu1  ;;  %v2403_v9 = vld [vmem:[#allocation2 + $0x23] sm:$0xff]  ;;  %v2191_v11 = vpack.c.bf16 %v2172_v60, %v2171_v7  ;;  %v10981_v7 = vld [vmem:[%s13570_s3 + $0x158] sm:$0xff]  }
 0x149   : > { %v1372_v24 = vmax.f32 %v1364_v14, %v1368_v18  ;;  %v1557_v25 = vmax.f32 %v1549_v8, %v1553_v19  ;;  %9930 = vmatmul.mubr.bf16.gmra.mxu1 %v11671_v20  ;;  %v11686_v8 = vpack.c.bf16 %v2402_v58, %v2401_v57  ;;  %v2421_v13 = vpack.c.bf16 %v2404_v61, %v2403_v9  ;;  %v10976_v14 = vld [vmem:[%s13570_s3 + $0x170] sm:$0xff]   ;;  %v2179_v61 = vld [vmem:[#allocation2 + $0x42] sm:$0xff] }
 0x14a   : > { %v1350_v28 = vpop.f32.mrf.mxu0  ;;  %v1535_v30 = vpop.f32.mrf.mxu1  ;;  %v1818_v54 = vld [vmem:[#allocation2 + $0x81] sm:$0xff]  ;;  %v2177_v57 = vld [vmem:[#allocation2 + $0x32] sm:$0xff] }
 0x14b   : > { %v1376_v17 = vadd.f32 %v11558_v29, %v1372_v24  ;;  %v1561_v2 = vadd.f32 %v11558_v29, %v1557_v25  ;;  %v1369_v32 = vmax.f32 %v1350_v28, %v9836_v21  ;;  %v1554_v12 = vmax.f32 %v1535_v30, %v9868_v22  ;;  %v10978_v24 = vld [vmem:[%s13570_s3 + $0x168] sm:$0xff]   ;;  %v2174_v28 = vld [vmem:[#allocation2 + $0x1a] sm:$0xff] }
 0x14c   : > { %v2406_v30 = vld [vmem:[#allocation2 + $0x3b] sm:$0xff]  ;;  %v2412_v58 = vld [vmem:[#allocation2 + $0x6b] sm:$0xff] }
 0x14d   : > { %v1380_v33 = vmax.f32 %v1376_v17, 0.0  ;;  %v1565_v34 = vmax.f32 %v1561_v2, 0.0  ;;  %v1373_v35 = vmax.f32 %v1365_v27, %v1369_v32  ;;  %v9887_v36 = vpop.f32.mrf.mxu0  ;;  %v1558_v38 = vmax.f32 %v1550_v23, %v1554_v12  ;;  %v2173_v27 = vld [vmem:[#allocation2 + $0x12] sm:$0xff]  ;;  %v2176_v2 = vld [vmem:[#allocation2 + $0x2a] sm:$0xff] }
 0x14e   : > { %v2405_v12 = vld [vmem:[#allocation2 + $0x33] sm:$0xff] }
 0x14f   : > { %1384 = vst [vmem:[#allocation2 + $0x90] sm:$0xff] %v1380_v33  ;;  %1569 = vst [vmem:[#allocation2 + $0xb0] sm:$0xff] %v1565_v34  ;;  %v1377_v39 = vadd.f32 %v11558_v29, %v1373_v35  ;;  %v1669_v40 = vpop.f32.mrf.mxu0  ;;  %v1562_v41 = vadd.f32 %v11558_v29, %v1558_v38  ;;  %v11699_v35 = vpack.c.bf16 %v2174_v28, %v2173_v27  ;;  %v2413_v27 = vld [vmem:[#allocation2 + $0x73] sm:$0xff] }
 0x150   : > { %v1732_v44 = vmax.f32 %v1669_v40, %v9887_v36  ;;  %v10973_v36 = vld [vmem:[%s13570_s3 + $0x130] sm:$0xff]   ;;  %v11704_v38 = vpack.c.bf16 %v2406_v30, %v2405_v12 }
 0x151   : > { %v1381_v42 = vmax.f32 %v1377_v39, 0.0  ;;  %v9888_v46 = vpop.f32.mrf.mxu0  ;;  %v1566_v47 = vmax.f32 %v1562_v41, 0.0  ;;  %v2407_v41 = vld [vmem:[#allocation2 + $0x43] sm:$0xff]  ;;  %v10982_v12 = vld [vmem:[%s13570_s3 + $0x110] sm:$0xff]  }
 0x153   : > { %1385 = vst [vmem:[#allocation2 + $0x98] sm:$0xff] %v1381_v42  ;;  %v11678_v48 = vpack.c.bf16 %v1381_v42, %v1380_v33  ;;  %v1672_v51 = vpop.f32.mrf.mxu0  ;;  %1570 = vst [vmem:[#allocation2 + $0xb8] sm:$0xff] %v1566_v47  ;;  %v2408_v33 = vld [vmem:[#allocation2 + $0x4b] sm:$0xff] }
 0x154   : > { %v1733_v0 = vmax.f32 %v1672_v51, %v9888_v46  ;;  %v2423_v42 = vpack.c.bf16 %v2408_v33, %v2407_v41 }
 0x155   : > { %9970 = vmatmul.mubr.bf16.gmra.mxu0 %v11678_v48  ;;  %v9891_v53 = vpop.f32.mrf.mxu0 }
 0x156   : > { %v1819_v55 = vld [vmem:[#allocation2 + $0x89] sm:$0xff]  ;;  %10025 = vmatprep.mubr.bf16.mxu0 %v2419_v52  ;;  %v2178_v52 = vld [vmem:[#allocation2 + $0x3a] sm:$0xff] }
 0x157   : > { %v11681_v50 = vpack.c.bf16 %v1819_v55, %v1818_v54  ;;  %v1685_v56 = vpop.f32.mrf.mxu0  ;;  %v2410_v54 = vld [vmem:[#allocation2 + $0x5b] sm:$0xff]  ;;  %v11718_v60 = vpack.c.bf16 %v2178_v52, %v2177_v57  ;;  %v2416_v28 = vld [vmem:[#allocation2 + $0x8b] sm:$0xff] }
 0x158   : > { %v1736_v59 = vmax.f32 %v1685_v56, %v9891_v53  ;;  %v2409_v53 = vld [vmem:[#allocation2 + $0x53] sm:$0xff] }
 0x159   : > { %9933 = vmatprep.mubr.bf16.mxu1 %v11681_v50  ;;  %v9892_v62 = vpop.f32.mrf.mxu0  ;;  %v10990_v57 = vld [vmem:[%s13570_s3 + $0x1f8] sm:$0xff]  }
 0x15a   : > { %v1820_v16 = vld [vmem:[#allocation2 + $0x91] sm:$0xff]  ;;  %v1821_v63 = vld [vmem:[#allocation2 + $0x99] sm:$0xff]  ;;  %v1740_v1 = vmax.f32 %v1732_v44, %v1736_v59 }
 0x15b   : > { %v11684_v5 = vpack.c.bf16 %v1821_v63, %v1820_v16  ;;  %v1688_v10 = vpop.f32.mrf.mxu0  ;;  %v2180_v44 = vld [vmem:[#allocation2 + $0x4a] sm:$0xff]  ;;  %v2424_v16 = vpack.c.bf16 %v2410_v54, %v2409_v53  ;;  %v2417_v41 = vld [vmem:[#allocation2 + $0x93] sm:$0xff]  ;;  %v10986_v53 = vld [vmem:[%s13570_s3 + $0x100] sm:$0xff]  }
 0x15c   : > { %v1744_v18 = vadd.f32 %v11558_v29, %v1740_v1  ;;  %v1737_v19 = vmax.f32 %v1688_v10, %v9892_v62  ;;  %v10977_v62 = vld [vmem:[%s13570_s3 + $0x120] sm:$0xff]  }
 0x15d   : > { %9934 = vmatmul.mubr.bf16.gmra.mxu1 %v11684_v5  ;;  %10026 = vmatmul.mubr.bf16.vlgmr.msra.gmra.mxu0 %v11686_v8  ;;  %v9895_v21 = vpop.f32.mrf.mxu0  ;;  %v2411_v1 = vld [vmem:[#allocation2 + $0x63] sm:$0xff] }
 0x15e   : > { %9989 = vmatprep.mubr.bf16.mxu1 %v2191_v11  ;;  %10029 = vmatprep.mubr.bf16.mxu0 %v2421_v13  ;;  %v1748_v22 = vmax.f32 %v1744_v18, 0.0  ;;  %v1741_v23 = vmax.f32 %v1733_v0, %v1737_v19  ;;  %v11723_v0 = vpack.c.bf16 %v2180_v44, %v2179_v61  ;;  %v2425_v11 = vpack.c.bf16 %v2412_v58, %v2411_v1  ;;  %v10983_v13 = vld [vmem:[%s13570_s3 + $0x150] sm:$0xff]   ;;  %v10979_v19 = vld [vmem:[%s13570_s3 + $0x118] sm:$0xff]   ;;  %v10987_v44 = vld [vmem:[%s13570_s3 + $0x140] sm:$0xff]  }
 0x15f   : > { %10082 = vmatpush3.bf16.msra.mxu0 %v11638_v6  ;;  %v1701_v25 = vpop.f32.mrf.mxu0  ;;  %v2175_v6 = vld [vmem:[#allocation2 + $0x22] sm:$0xff]  ;;  %v2190_v61 = vld [vmem:[#allocation2 + $0x9a] sm:$0xff] }
 0x160   : > { %10083 = vmatprep.subr.bf16.mxu0 %v10976_v14  ;;  %1752 = vst [vmem:[#allocation2 + $0xc0] sm:$0xff] %v1748_v22  ;;  %v1745_v17 = vadd.f32 %v11558_v29, %v1741_v23  ;;  %v11706_v40 = vpack.c.bf16 %v2176_v2, %v2175_v6  ;;  %v1734_v47 = vmax.f32 %v1701_v25, %v9895_v21  ;;  %v2181_v21 = vld [vmem:[#allocation2 + $0x52] sm:$0xff]  ;;  %v2182_v22 = vld [vmem:[#allocation2 + $0x5a] sm:$0xff]  ;;  %v2184_v25 = vld [vmem:[#allocation2 + $0x6a] sm:$0xff] }
 0x161   : > { %v9896_v32 = vpop.f32.mrf.mxu0  ;;  %v2414_v23 = vld [vmem:[#allocation2 + $0x7b] sm:$0xff]  ;;  %v10985_v6 = vld [vmem:[%s13570_s3 + $0x148] sm:$0xff]  }
 0x162   : > { %v1749_v34 = vmax.f32 %v1745_v17, 0.0  ;;  %v11738_v17 = vpack.c.bf16 %v2182_v22, %v2181_v21  ;;  %v2183_v2 = vld [vmem:[#allocation2 + $0x62] sm:$0xff]  ;;  %v2860_v1 = vld [vmem:[#allocation2 + $0x38] sm:$0xff]  ;;  %v2632_v22 = vld [vmem:[#allocation2 + $0x2c] sm:$0xff] }
 0x163   : > { %10084 = vmatpush3.bf16.msra.mxu0 %v10976_v14  ;;  %v1704_v39 = vpop.f32.mrf.mxu0  ;;  %v11743_v33 = vpack.c.bf16 %v2184_v25, %v2183_v2  ;;  %v2857_v58 = vld [vmem:[#allocation2 + $0x20] sm:$0xff]  ;;  %v10994_v21 = vld [vmem:[%s13570_s3 + $0x1e8] sm:$0xff]   ;;  %v10989_v25 = vld [vmem:[%s13570_s3 + $0x1b0] sm:$0xff]  }
 0x164   : > { %10085 = vmatprep.subr.bf16.mxu0 %v10978_v24  ;;  %1753 = vst [vmem:[#allocation2 + $0xc8] sm:$0xff] %v1749_v34  ;;  %v2415_v34 = vld [vmem:[#allocation2 + $0x83] sm:$0xff] }
 0x165   : > { %9990 = vmatmul.mubr.bf16.vlgmr.msra.gmra.mxu1 %v11699_v35  ;;  %10030 = vmatmul.mubr.bf16.gmra.mxu0 %v11704_v38  ;;  %v9899_v46 = vpop.f32.mrf.mxu0  ;;  %v2634_v2 = vld [vmem:[#allocation2 + $0x3c] sm:$0xff] }
 0x166   : > { %9993 = vmatprep.mubr.bf16.mxu1 %v11706_v40  ;;  %10046 = vmatpush3.bf16.msra.mxu1 %v11656_v37  ;;  %v1735_v37 = vmax.f32 %v1704_v39, %v9896_v32  ;;  %v2426_v32 = vpack.c.bf16 %v2414_v23, %v2413_v27  ;;  %v2186_v39 = vld [vmem:[#allocation2 + $0x7a] sm:$0xff] }
 0x167   : > { %10047 = vmatprep.subr.bf16.mxu1 %v10973_v36  ;;  %10033 = vmatprep.mubr.bf16.mxu0 %v2423_v42  ;;  %v1717_v51 = vpop.f32.mrf.mxu0  ;;  %v2418_v42 = vld [vmem:[#allocation2 + $0x9b] sm:$0xff] }
 0x168   : > { %10086 = vmatpush3.bf16.msra.mxu0 %v10978_v24  ;;  %v1738_v55 = vmax.f32 %v1717_v51, %v9899_v46  ;;  %v2185_v46 = vld [vmem:[#allocation2 + $0x72] sm:$0xff]  ;;  %v2187_v51 = vld [vmem:[#allocation2 + $0x82] sm:$0xff]  ;;  %v2428_v52 = vpack.c.bf16 %v2418_v42, %v2417_v41 }
 0x169   : > { %10087 = vmatprep.subr.bf16.mxu0 %v10980_v45  ;;  %v9900_v56 = vpop.f32.mrf.mxu0  ;;  %v10999_v41 = vld [vmem:[%s13570_s3 + $0x1d0] sm:$0xff]  }
 0x16a   : > { %10048 = vmatpush3.bf16.msra.mxu1 %v10973_v36  ;;  %v1742_v59 = vmax.f32 %v1734_v47, %v1738_v55  ;;  %v10984_v36 = vld [vmem:[%s13570_s3 + $0x108] sm:$0xff]   ;;  %v2856_v47 = vld [vmem:[#allocation2 + $0x18] sm:$0xff]  ;;  %v2855_v55 = vld [vmem:[#allocation2 + $0x10] sm:$0xff] }
 0x16b   : > { %10049 = vmatprep.subr.bf16.mxu1 %v10975_v49  ;;  %v1720_v63 = vpop.f32.mrf.mxu0  ;;  %v2637_v42 = vld [vmem:[#allocation2 + $0x54] sm:$0xff] }
 0x16c   : > { %10088 = vmatpush3.bf16.msra.mxu0 %v10980_v45  ;;  %v1746_v9 = vadd.f32 %v11558_v29, %v1742_v59  ;;  %v1739_v10 = vmax.f32 %v1720_v63, %v9900_v56  ;;  %v2188_v45 = vld [vmem:[#allocation2 + $0x8a] sm:$0xff]  ;;  %v2875_v56 = vpack.c.bf16 %v2856_v47, %v2855_v55  ;;  %v2189_v59 = vld [vmem:[#allocation2 + $0x92] sm:$0xff] }
 0x16d   : > { %9994 = vmatmul.mubr.bf16.gmra.mxu1 %v11718_v60  ;;  %10034 = vmatmul.mubr.bf16.gmra.mxu0 %v2424_v16  ;;  %v11758_v54 = vpack.c.bf16 %v2188_v45, %v2187_v51  ;;  %v2628_v16 = vld [vmem:[#allocation2 + $0xc] sm:$0xff]  ;;  %v2638_v45 = vld [vmem:[#allocation2 + $0x5c] sm:$0xff]  ;;  %v2639_v51 = vld [vmem:[#allocation2 + $0x64] sm:$0xff] }
 0x16e   : > { %9997 = vmatprep.mubr.bf16.mxu1 %v11723_v0  ;;  %10050 = vmatpush3.bf16.msra.mxu1 %v10975_v49  ;;  %v1750_v14 = vmax.f32 %v1746_v9, 0.0  ;;  %v1743_v18 = vmax.f32 %v1735_v37, %v1739_v10  ;;  %v11753_v49 = vpack.c.bf16 %v2186_v39, %v2185_v46  ;;  %v10988_v37 = vld [vmem:[%s13570_s3 + $0x1b8] sm:$0xff]   ;;  %v2859_v63 = vld [vmem:[#allocation2 + $0x30] sm:$0xff]  ;;  %v2627_v9 = vld [vmem:[#allocation2 + $0x4] sm:$0xff]  ;;  %v11817_v47 = vpack.c.bf16 %v2638_v45, %v2637_v42 }
 0x16f   : > { %10051 = vmatprep.subr.bf16.mxu1 %v10977_v62  ;;  %10037 = vmatprep.mubr.bf16.mxu0 %v2425_v11  ;;  %v2647_v11 = vpack.c.bf16 %v2628_v16, %v2627_v9  ;;  %v10997_v39 = vld [vmem:[%s13570_s3 + $0x1d8] sm:$0xff]   ;;  %v2640_v46 = vld [vmem:[#allocation2 + $0x6c] sm:$0xff]  ;;  %v3329_v42 = vld [vmem:[#allocation2 + $0xa2] sm:$0xff] }
 0x170   : > { %10089 = vmatprep.subr.bf16.mxu0 %v10981_v7  ;;  %1754 = vst [vmem:[#allocation2 + $0xd0] sm:$0xff] %v1750_v14  ;;  %v1747_v24 = vadd.f32 %v11558_v29, %v1743_v18  ;;  %v2427_v29 = vpack.c.bf16 %v2416_v28, %v2415_v34  ;;  %v10992_v14 = vld [vmem:[%s13570_s3 + $0x1f0] sm:$0xff]   ;;  %v10996_v28 = vld [vmem:[%s13570_s3 + $0x1e0] sm:$0xff]   ;;  %v11000_v55 = vld [vmem:[%s13570_s3 + $0x188] sm:$0xff]  }
 0x171   : > { %10090 = vmatpush3.bf16.msra.mxu0 %v10981_v7  ;;  %v11771_v7 = vpack.c.bf16 %v2190_v61, %v2189_v59  ;;  %v2629_v18 = vld [vmem:[#allocation2 + $0x14] sm:$0xff]  ;;  %v11003_v59 = vld [vmem:[%s13570_s3 + $0x1c0] sm:$0xff]  }
 0x172   : > { %10052 = vmatpush3.bf16.msra.mxu1 %v10977_v62  ;;  %10091 = vmatprep.subr.bf16.mxu0 %v10983_v13  ;;  %v1751_v30 = vmax.f32 %v1747_v24, 0.0  ;;  %v2858_v62 = vld [vmem:[#allocation2 + $0x28] sm:$0xff]  ;;  %v11006_v61 = vld [vmem:[%s13570_s3 + $0x278] sm:$0xff]   ;;  %v11018_v45 = vld [vmem:[%s13570_s3 + $0x200] sm:$0xff]  }
 0x173   : > { %10053 = vmatprep.subr.bf16.mxu1 %v10979_v19  ;;  %v2876_v10 = vpack.c.bf16 %v2858_v62, %v2857_v58  ;;  %v2631_v24 = vld [vmem:[#allocation2 + $0x24] sm:$0xff]  ;;  %v11004_v62 = vld [vmem:[%s13570_s3 + $0x238] sm:$0xff]  }
 0x174   : > { %1755 = vst [vmem:[#allocation2 + $0xd8] sm:$0xff] %v1751_v30  ;;  %v11785_v27 = vpack.c.bf16 %v2632_v22, %v2631_v24  ;;  %v10991_v30 = vld [vmem:[%s13570_s3 + $0x1a8] sm:$0xff]   ;;  %v2645_v16 = vld [vmem:[#allocation2 + $0x94] sm:$0xff] }
 0x175   : > { %9998 = vmatmul.mubr.bf16.gmra.mxu1 %v11738_v17  ;;  %10038 = vmatmul.mubr.bf16.gmra.mxu0 %v2426_v32  ;;  %v2865_v32 = vld [vmem:[#allocation2 + $0x60] sm:$0xff]  ;;  %v11005_v22 = vld [vmem:[%s13570_s3 + $0x230] sm:$0xff]   ;;  %v11007_v24 = vld [vmem:[%s13570_s3 + $0x228] sm:$0xff]  }
 0x176   : > { %10001 = vmatprep.mubr.bf16.mxu1 %v11743_v33  ;;  %10054 = vmatpush3.bf16.msra.mxu1 %v10979_v19  ;;  %v2630_v19 = vld [vmem:[#allocation2 + $0x1c] sm:$0xff]  ;;  %v2643_v58 = vld [vmem:[#allocation2 + $0x84] sm:$0xff] }
 0x177   : > { %10041 = vmatprep.mubr.bf16.mxu0 %v2427_v29  ;;  %10055 = vmatprep.subr.bf16.mxu1 %v10982_v12  ;;  %v11780_v23 = vpack.c.bf16 %v2630_v19, %v2629_v18  ;;  %v2635_v29 = vld [vmem:[#allocation2 + $0x44] sm:$0xff]  ;;  %v3084_v9 = vld [vmem:[#allocation2 + $0x19] sm:$0xff] }
 0x178   : > { %10092 = vmatpush3.bf16.msra.mxu0 %v10983_v13  ;;  %v2877_v13 = vpack.c.bf16 %v2860_v1, %v2859_v63  ;;  %v2646_v63 = vld [vmem:[#allocation2 + $0x9c] sm:$0xff]  ;;  %v3083_v1 = vld [vmem:[#allocation2 + $0x11] sm:$0xff] }
 0x179   : > { %10093 = vmatprep.subr.bf16.mxu0 %v10985_v6  ;;  %v3085_v18 = vld [vmem:[#allocation2 + $0x21] sm:$0xff] }
 0x17a   : > { %10056 = vmatpush3.bf16.msra.mxu1 %v10982_v12  ;;  %v2636_v12 = vld [vmem:[#allocation2 + $0x4c] sm:$0xff] }
 0x17b   : > { %10057 = vmatprep.subr.bf16.mxu1 %v10984_v36 }
 0x17c   : > { %10094 = vmatpush3.bf16.msra.mxu0 %v10985_v6  ;;  %v10993_v6 = vld [vmem:[%s13570_s3 + $0x1a0] sm:$0xff]  }
 0x17d   : > { %10002 = vmatmul.mubr.bf16.gmra.mxu1 %v11753_v49  ;;  %10042 = vmatmul.mubr.bf16.gmra.mxu0 %v2428_v52  ;;  %v10998_v52 = vld [vmem:[%s13570_s3 + $0x190] sm:$0xff]  }
 0x17e   : > { %10005 = vmatprep.mubr.bf16.mxu1 %v11758_v54  ;;  %10058 = vmatpush3.bf16.msra.mxu1 %v10984_v36  ;;  %v11803_v36 = vpack.c.bf16 %v2636_v12, %v2635_v29  ;;  %v11011_v29 = vld [vmem:[%s13570_s3 + $0x218] sm:$0xff]  }
 0x17f   : > { %10097 = vmatprep.mubr.bf16.mxu0 %v2875_v56  ;;  %10059 = vmatprep.subr.bf16.mxu1 %v10986_v53  ;;  %v2644_v56 = vld [vmem:[#allocation2 + $0x8c] sm:$0xff] }
 0x180   : > { %10095 = vmatprep.subr.bf16.mxu0 %v10987_v44 }
 0x181   : > { %10096 = vmatpush3.bf16.msra.mxu0 %v10987_v44  ;;  %v2642_v44 = vld [vmem:[#allocation2 + $0x7c] sm:$0xff] }
 0x182   : > { %10060 = vmatpush3.bf16.msra.mxu1 %v10986_v53  ;;  %10153 = vmatprep.subr.bf16.mxu0 %v10990_v57  ;;  %v11001_v53 = vld [vmem:[%s13570_s3 + $0x1c8] sm:$0xff]  }
 0x183   : > { %10117 = vmatprep.subr.bf16.mxu1 %v10988_v37 }
 0x185   : > { %10006 = vmatmul.mubr.bf16.gmra.mxu1 %v11771_v7  ;;  %10098 = vmatmul.mubr.bf16.vlgmr.msra.gmra.mxu0 %v2876_v10  ;;  %v3103_v10 = vpack.c.bf16 %v3084_v9, %v3083_v1  ;;  %v3547_v1 = vld [vmem:[#allocation2 + $0x53] sm:$0xff]  ;;  %v3548_v9 = vld [vmem:[#allocation2 + $0x5b] sm:$0xff] }
 0x186   : > { %10061 = vmatprep.mubr.bf16.mxu1 %v2647_v11  ;;  %10101 = vmatprep.mubr.bf16.mxu0 %v2877_v13  ;;  %v3086_v11 = vld [vmem:[#allocation2 + $0x29] sm:$0xff] }
 0x187   : > { %10154 = vmatpush3.bf16.msra.mxu0 %v10990_v57  ;;  %v2641_v57 = vld [vmem:[#allocation2 + $0x74] sm:$0xff]  ;;  %v11010_v13 = vld [vmem:[%s13570_s3 + $0x268] sm:$0xff]   ;;  %v11865_v19 = vpack.c.bf16 %v3086_v11, %v3085_v18  ;;  %v11970_v18 = vpack.c.bf16 %v3548_v9, %v3547_v1 }
 0x188   : > { %10155 = vmatprep.subr.bf16.mxu0 %v10992_v14 }
 0x18b   : > { %10156 = vmatpush3.bf16.msra.mxu0 %v10992_v14  ;;  %v3088_v14 = vld [vmem:[#allocation2 + $0x39] sm:$0xff] }
 0x18c   : > { %10157 = vmatprep.subr.bf16.mxu0 %v10994_v21 }
 0x18d   : > { %10062 = vmatmul.mubr.bf16.vlgmr.msra.gmra.mxu1 %v11780_v23  ;;  %10102 = vmatmul.mubr.bf16.gmra.mxu0 %v11607_v31  ;;  %v2633_v31 = vld [vmem:[#allocation2 + $0x34] sm:$0xff] }
 0x18e   : > { %10065 = vmatprep.mubr.bf16.mxu1 %v11785_v27  ;;  %10118 = vmatpush3.bf16.msra.mxu1 %v10988_v37  ;;  %v11797_v34 = vpack.c.bf16 %v2634_v2, %v2633_v31  ;;  %v11002_v37 = vld [vmem:[%s13570_s3 + $0x180] sm:$0xff]   ;;  %v11015_v31 = vld [vmem:[%s13570_s3 + $0x250] sm:$0xff]  }
 0x18f   : > { %10119 = vmatprep.subr.bf16.mxu1 %v10989_v25  ;;  %10105 = vmatprep.mubr.bf16.mxu0 %v11643_v15  ;;  %v2880_v15 = vpack.c.bf16 %v11601_v26, %v2865_v32  ;;  %v10995_v26 = vld [vmem:[%s13570_s3 + $0x198] sm:$0xff]   ;;  %v11009_v32 = vld [vmem:[%s13570_s3 + $0x220] sm:$0xff]  }
 0x190   : > { %10158 = vmatpush3.bf16.msra.mxu0 %v10994_v21  ;;  %v3087_v21 = vld [vmem:[#allocation2 + $0x31] sm:$0xff] }
 0x191   : > { %10159 = vmatprep.subr.bf16.mxu0 %v10996_v28 }
 0x192   : > { %10120 = vmatpush3.bf16.msra.mxu1 %v10989_v25  ;;  %v3090_v25 = vld [vmem:[#allocation2 + $0x49] sm:$0xff] }
 0x193   : > { %10121 = vmatprep.subr.bf16.mxu1 %v10991_v30 }
 0x194   : > { %10160 = vmatpush3.bf16.msra.mxu0 %v10996_v28  ;;  %v3091_v28 = vld [vmem:[#allocation2 + $0x51] sm:$0xff] }
 0x195   : > { %10066 = vmatmul.mubr.bf16.gmra.mxu1 %v11797_v34  ;;  %10106 = vmatmul.mubr.bf16.gmra.mxu0 %v2880_v15  ;;  %v3093_v15 = vld [vmem:[#allocation2 + $0x61] sm:$0xff] }
 0x196   : > { %10069 = vmatprep.mubr.bf16.mxu1 %v11803_v36  ;;  %10122 = vmatpush3.bf16.msra.mxu1 %v10991_v30  ;;  %v3092_v30 = vld [vmem:[#allocation2 + $0x59] sm:$0xff] }
 0x197   : > { %10123 = vmatprep.subr.bf16.mxu1 %v10993_v6  ;;  %10109 = vmatprep.mubr.bf16.mxu0 %v11658_v43  ;;  %v11822_v43 = vpack.c.bf16 %v2640_v46, %v2639_v51  ;;  %v11887_v12 = vpack.c.bf16 %v3092_v30, %v3091_v28  ;;  %v11020_v46 = vld [vmem:[%s13570_s3 + $0x2b8] sm:$0xff]   ;;  %v3102_v51 = vld [vmem:[#allocation2 + $0xa9] sm:$0xff] }
 0x198   : > { %10161 = vmatprep.subr.bf16.mxu0 %v10997_v39  ;;  %v3550_v28 = vld [vmem:[#allocation2 + $0x6b] sm:$0xff] }
 0x199   : > { %10162 = vmatpush3.bf16.msra.mxu0 %v10997_v39  ;;  %v11014_v39 = vld [vmem:[%s13570_s3 + $0x210] sm:$0xff]  }
 0x19a   : > { %10124 = vmatpush3.bf16.msra.mxu1 %v10993_v6  ;;  %10163 = vmatprep.subr.bf16.mxu0 %v10999_v41  ;;  %v3094_v6 = vld [vmem:[#allocation2 + $0x69] sm:$0xff] }
 0x19b   : > { %10125 = vmatprep.subr.bf16.mxu1 %v10995_v26 }
 0x19d   : > { %10070 = vmatmul.mubr.bf16.gmra.mxu1 %v11817_v47  ;;  %10110 = vmatmul.mubr.bf16.gmra.mxu0 %v11666_v3  ;;  %v11834_v3 = vpack.c.bf16 %v2642_v44, %v2641_v57  ;;  %v3542_v44 = vld [vmem:[#allocation2 + $0x2b] sm:$0xff]  ;;  %v3541_v57 = vld [vmem:[#allocation2 + $0x23] sm:$0xff] }
 0x19e   : > { %10073 = vmatprep.mubr.bf16.mxu1 %v11822_v43  ;;  %10126 = vmatpush3.bf16.msra.mxu1 %v10995_v26  ;;  %v3330_v26 = vld [vmem:[#allocation2 + $0xaa] sm:$0xff] }
 0x19f   : > { %10113 = vmatprep.mubr.bf16.mxu0 %v11678_v48  ;;  %10127 = vmatprep.subr.bf16.mxu1 %v10998_v52  ;;  %v11839_v48 = vpack.c.bf16 %v2644_v56, %v2643_v58  ;;  %v11026_v56 = vld [vmem:[%s13570_s3 + $0x2e8] sm:$0xff]   ;;  %v11944_v58 = vpack.c.bf16 %v3542_v44, %v3541_v57  ;;  %v11035_v44 = vld [vmem:[%s13570_s3 + $0x2c0] sm:$0xff]   ;;  %v11038_v57 = vld [vmem:[%s13570_s3 + $0x378] sm:$0xff]  }
 0x1a0   : > { %10164 = vmatpush3.bf16.msra.mxu0 %v10999_v41  ;;  %v11016_v41 = vld [vmem:[%s13570_s3 + $0x208] sm:$0xff]  }
 0x1a1   : > { %10165 = vmatprep.subr.bf16.mxu0 %v11001_v53 }
 0x1a2   : > { %10128 = vmatpush3.bf16.msra.mxu1 %v10998_v52  ;;  %v11205_v52 = vmov 0.0  }
 0x1a3   : > { %10129 = vmatprep.subr.bf16.mxu1 %v11000_v55  ;;  %403 = vst [vmem:[#allocation2 + $0xe0] sm:$0xff] %v11205_v52  ;;  %v3553_v52 = vld [vmem:[#allocation2 + $0x83] sm:$0xff] }
 0x1a4   : > { %10166 = vmatpush3.bf16.msra.mxu0 %v11001_v53 }
 0x1a5   : > { %10074 = vmatmul.mubr.bf16.gmra.mxu1 %v11834_v3  ;;  %10114 = vmatmul.mubr.bf16.gmra.mxu0 %v11668_v4  ;;  %v11854_v4 = vpack.c.bf16 %v2646_v63, %v2645_v16 }
 0x1a6   : > { %10077 = vmatprep.mubr.bf16.mxu1 %v11839_v48  ;;  %10130 = vmatpush3.bf16.msra.mxu1 %v11000_v55 }
 0x1a7   : > { %10169 = vmatprep.mubr.bf16.mxu0 %v11699_v35  ;;  %10131 = vmatprep.subr.bf16.mxu1 %v11002_v37  ;;  %v11008_v35 = vld [vmem:[%s13570_s3 + $0x270] sm:$0xff]  }
 0x1a8   : > { %10167 = vmatprep.subr.bf16.mxu0 %v11003_v59 }
 0x1a9   : > { %10168 = vmatpush3.bf16.msra.mxu0 %v11003_v59 }
 0x1aa   : > { %10132 = vmatpush3.bf16.msra.mxu1 %v11002_v37  ;;  %10225 = vmatprep.subr.bf16.mxu0 %v11006_v61 }
 0x1ab   : > { %10189 = vmatprep.subr.bf16.mxu1 %v11004_v62 }
 0x1ad   : > { %10078 = vmatmul.mubr.bf16.gmra.mxu1 %v11854_v4  ;;  %10170 = vmatmul.mubr.bf16.vlgmr.msra.gmra.mxu0 %v11706_v40  ;;  %v11870_v40 = vpack.c.bf16 %v3088_v14, %v3087_v21  ;;  %v11029_v21 = vld [vmem:[%s13570_s3 + $0x2d8] sm:$0xff]  }
 0x1ae   : > { %10133 = vmatprep.mubr.bf16.mxu1 %v3103_v10  ;;  %10173 = vmatprep.mubr.bf16.mxu0 %v11718_v60  ;;  %v11012_v60 = vld [vmem:[%s13570_s3 + $0x260] sm:$0xff]  }
 0x1af   : > { %10226 = vmatpush3.bf16.msra.mxu0 %v11006_v61  ;;  %v3545_v10 = vld [vmem:[#allocation2 + $0x43] sm:$0xff] }
 0x1b0   : > { %10227 = vmatprep.subr.bf16.mxu0 %v11008_v35 }
 0x1b3   : > { %10228 = vmatpush3.bf16.msra.mxu0 %v11008_v35 }
 0x1b4   : > { %10229 = vmatprep.subr.bf16.mxu0 %v11010_v13 }
 0x1b5   : > { %10134 = vmatmul.mubr.bf16.vlgmr.msra.gmra.mxu1 %v11865_v19  ;;  %10174 = vmatmul.mubr.bf16.gmra.mxu0 %v11723_v0  ;;  %v3089_v0 = vld [vmem:[#allocation2 + $0x41] sm:$0xff] }
 0x1b6   : > { %10137 = vmatprep.mubr.bf16.mxu1 %v11870_v40  ;;  %10190 = vmatpush3.bf16.msra.mxu1 %v11004_v62  ;;  %v11882_v2 = vpack.c.bf16 %v3090_v25, %v3089_v0  ;;  %v11023_v62 = vld [vmem:[%s13570_s3 + $0x2a8] sm:$0xff]   ;;  %v11027_v25 = vld [vmem:[%s13570_s3 + $0x298] sm:$0xff]  }
 0x1b7   : > { %10191 = vmatprep.subr.bf16.mxu1 %v11005_v22  ;;  %10177 = vmatprep.mubr.bf16.mxu0 %v11738_v17  ;;  %v11013_v17 = vld [vmem:[%s13570_s3 + $0x258] sm:$0xff]  }
 0x1b8   : > { %10230 = vmatpush3.bf16.msra.mxu0 %v11010_v13  ;;  %v3552_v0 = vld [vmem:[#allocation2 + $0x7b] sm:$0xff] }
 0x1b9   : > { %10231 = vmatprep.subr.bf16.mxu0 %v11012_v60 }
 0x1ba   : > { %10192 = vmatpush3.bf16.msra.mxu1 %v11005_v22 }
 0x1bb   : > { %10193 = vmatprep.subr.bf16.mxu1 %v11007_v24 }
 0x1bc   : > { %10232 = vmatpush3.bf16.msra.mxu0 %v11012_v60  ;;  %v11031_v60 = vld [vmem:[%s13570_s3 + $0x2d0] sm:$0xff]  }
 0x1bd   : > { %10138 = vmatmul.mubr.bf16.gmra.mxu1 %v11882_v2  ;;  %10178 = vmatmul.mubr.bf16.gmra.mxu0 %v11743_v33  ;;  %v11902_v33 = vpack.c.bf16 %v3094_v6, %v3093_v15  ;;  %v3551_v6 = vld [vmem:[#allocation2 + $0x73] sm:$0xff] }
 0x1be   : > { %10141 = vmatprep.mubr.bf16.mxu1 %v11887_v12  ;;  %10194 = vmatpush3.bf16.msra.mxu1 %v11007_v24 }
 0x1bf   : > { %10195 = vmatprep.subr.bf16.mxu1 %v11009_v32  ;;  %10181 = vmatprep.mubr.bf16.mxu0 %v11753_v49  ;;  %v11017_v49 = vld [vmem:[%s13570_s3 + $0x248] sm:$0xff]  }
 0x1c0   : > { %10233 = vmatprep.subr.bf16.mxu0 %v11013_v17 }
 0x1c1   : > { %10234 = vmatpush3.bf16.msra.mxu0 %v11013_v17 }
 0x1c2   : > { %10196 = vmatpush3.bf16.msra.mxu1 %v11009_v32  ;;  %10235 = vmatprep.subr.bf16.mxu0 %v11015_v31  ;;  %v3549_v32 = vld [vmem:[#allocation2 + $0x63] sm:$0xff] }
 0x1c3   : > { %10197 = vmatprep.subr.bf16.mxu1 %v11011_v29 }
 0x1c5   : > { %10142 = vmatmul.mubr.bf16.gmra.mxu1 %v11902_v33  ;;  %10182 = vmatmul.mubr.bf16.gmra.mxu0 %v11758_v54  ;;  %v3340_v54 = vpack.c.bf16 %v3330_v26, %v3329_v42 }
 0x1c6   : > { %10145 = vmatprep.mubr.bf16.mxu1 %v11671_v20  ;;  %10198 = vmatpush3.bf16.msra.mxu1 %v11011_v29  ;;  %v11019_v20 = vld [vmem:[%s13570_s3 + $0x240] sm:$0xff]   ;;  %v11989_v29 = vpack.c.bf16 %v3550_v28, %v3549_v32 }
 0x1c7   : > { %10185 = vmatprep.mubr.bf16.mxu0 %v11771_v7  ;;  %10199 = vmatprep.subr.bf16.mxu1 %v11014_v39  ;;  %v11022_v7 = vld [vmem:[%s13570_s3 + $0x2f8] sm:$0xff]  }
 0x1c8   : > { %10236 = vmatpush3.bf16.msra.mxu0 %v11015_v31 }
 0x1c9   : > { %10237 = vmatprep.subr.bf16.mxu0 %v11017_v49 }
 0x1ca   : > { %10200 = vmatpush3.bf16.msra.mxu1 %v11014_v39  ;;  %v11996_v39 = vpack.c.bf16 %v3552_v0, %v3551_v6  ;;  %v11037_v0 = vld [vmem:[%s13570_s3 + $0x330] sm:$0xff]   ;;  %v11044_v6 = vld [vmem:[%s13570_s3 + $0x360] sm:$0xff]  }
 0x1cb   : > { %10201 = vmatprep.subr.bf16.mxu1 %v11016_v41 }
 0x1cc   : > { %10238 = vmatpush3.bf16.msra.mxu0 %v11017_v49 }
 0x1cd   : > { %10146 = vmatmul.mubr.bf16.gmra.mxu1 %v11681_v50  ;;  %10186 = vmatmul.mubr.bf16.gmra.mxu0 %v3340_v54  ;;  %v3101_v50 = vld [vmem:[#allocation2 + $0xa1] sm:$0xff] }
 0x1ce   : > { %10149 = vmatprep.mubr.bf16.mxu1 %v11684_v5  ;;  %10202 = vmatpush3.bf16.msra.mxu1 %v11016_v41  ;;  %v11932_v5 = vpack.c.bf16 %v3102_v51, %v3101_v50  ;;  %v11033_v41 = vld [vmem:[%s13570_s3 + $0x2c8] sm:$0xff]   ;;  %v3556_v51 = vld [vmem:[#allocation2 + $0x9b] sm:$0xff] }
 0x1cf   : > { %10241 = vmatprep.mubr.bf16.mxu0 %v11780_v23  ;;  %10203 = vmatprep.subr.bf16.mxu1 %v11018_v45  ;;  %v11024_v23 = vld [vmem:[%s13570_s3 + $0x2f0] sm:$0xff]   ;;  %v3785_v50 = vld [vmem:[#allocation2 + $0xa4] sm:$0xff] }
 0x1d0   : > { %10239 = vmatprep.subr.bf16.mxu0 %v11019_v20 }
 0x1d1   : > { %10240 = vmatpush3.bf16.msra.mxu0 %v11019_v20 }
 0x1d2   : > { %10204 = vmatpush3.bf16.msra.mxu1 %v11018_v45  ;;  %10297 = vmatprep.subr.bf16.mxu0 %v11022_v7  ;;  %v11032_v45 = vld [vmem:[%s13570_s3 + $0x288] sm:$0xff]  }
 0x1d3   : > { %10261 = vmatprep.subr.bf16.mxu1 %v11020_v46 }
 0x1d5   : > { %10150 = vmatmul.mubr.bf16.gmra.mxu1 %v11932_v5  ;;  %v9955_v53 = vpop.f32.mrf.mxu0  ;;  %10242 = vmatmul.mubr.bf16.vlgmr.msra.gmra.mxu0 %v11785_v27  ;;  %v11021_v27 = vld [vmem:[%s13570_s3 + $0x2b0] sm:$0xff]  }
 0x1d6   : > { %10205 = vmatprep.mubr.bf16.mxu1 %v11686_v8  ;;  %10245 = vmatprep.mubr.bf16.mxu0 %v11797_v34  ;;  %v11028_v8 = vld [vmem:[%s13570_s3 + $0x2e0] sm:$0xff]  }
 0x1d7   : > { %v2092_v55 = vpop.f32.mrf.mxu0  ;;  %10298 = vmatpush3.bf16.msra.mxu0 %v11022_v7  ;;  %v3786_v7 = vld [vmem:[#allocation2 + $0xac] sm:$0xff] }
 0x1d8   : > { %10299 = vmatprep.subr.bf16.mxu0 %v11024_v23 }
 0x1d9   : > { %v9956_v37 = vpop.f32.mrf.mxu0 }
 0x1db   : > { %10300 = vmatpush3.bf16.msra.mxu0 %v11024_v23  ;;  %v2095_v61 = vpop.f32.mrf.mxu0 }
 0x1dc   : > { %10301 = vmatprep.subr.bf16.mxu0 %v11026_v56 }
 0x1dd   : > { %10206 = vmatmul.mubr.bf16.vlgmr.msra.gmra.mxu1 %v11944_v58  ;;  %10246 = vmatmul.mubr.bf16.gmra.mxu0 %v11803_v36  ;;  %v3546_v36 = vld [vmem:[#allocation2 + $0x4b] sm:$0xff]  ;;  %v9959_v11 = vpop.f32.mrf.mxu0 }
 0x1de   : > { %v9919_v34 = vpop.f32.mrf.mxu1  ;;  %10209 = vmatprep.mubr.bf16.mxu1 %v11704_v38  ;;  %10262 = vmatpush3.bf16.msra.mxu1 %v11020_v46  ;;  %v11965_v13 = vpack.c.bf16 %v3546_v36, %v3545_v10  ;;  %v3555_v46 = vld [vmem:[#allocation2 + $0x93] sm:$0xff] }
 0x1df   : > { %v11955_v59 = vadd.f32 %v9955_v53, %v9919_v34  ;;  %10263 = vmatprep.subr.bf16.mxu1 %v11021_v27  ;;  %10249 = vmatprep.mubr.bf16.mxu0 %v11817_v47  ;;  %v11025_v47 = vld [vmem:[%s13570_s3 + $0x2a0] sm:$0xff]   ;;  %v2108_v24 = vpop.f32.mrf.mxu0 }
 0x1e0   : > { %v1931_v16 = vpop.f32.mrf.mxu1  ;;  %10302 = vmatpush3.bf16.msra.mxu0 %v11026_v56  ;;  %v11034_v53 = vld [vmem:[%s13570_s3 + $0x280] sm:$0xff]  }
 0x1e1   : > { %v11961_v63 = vadd.f32 %v2092_v55, %v1931_v16  ;;  %10303 = vmatprep.subr.bf16.mxu0 %v11028_v8  ;;  %v9960_v17 = vpop.f32.mrf.mxu0  ;;  %v12017_v55 = vpack.c.bf16 %v3556_v51, %v3555_v46  ;;  %v3995_v34 = vld [vmem:[#allocation2 + $0x20] sm:$0xff]  ;;  %v4233_v46 = vld [vmem:[#allocation2 + $0x71] sm:$0xff]  ;;  %v4236_v51 = vld [vmem:[#allocation2 + $0x89] sm:$0xff] }
 0x1e2   : > { %v9920_v38 = vpop.f32.mrf.mxu1  ;;  %10264 = vmatpush3.bf16.msra.mxu1 %v11021_v27  ;;  %v11036_v27 = vld [vmem:[%s13570_s3 + $0x338] sm:$0xff]  }
 0x1e3   : > { %v11963_v35 = vadd.f32 %v9956_v37, %v9920_v38  ;;  %10265 = vmatprep.subr.bf16.mxu1 %v11023_v62  ;;  %v2111_v42 = vpop.f32.mrf.mxu0 }
 0x1e4   : > { %v1934_v14 = vpop.f32.mrf.mxu1  ;;  %10304 = vmatpush3.bf16.msra.mxu0 %v11028_v8  ;;  %v3558_v8 = vld [vmem:[#allocation2 + $0xab] sm:$0xff] }
 0x1e5   : > { %v11975_v22 = vadd.f32 %v2095_v61, %v1934_v14  ;;  %10210 = vmatmul.mubr.bf16.gmra.mxu1 %v11965_v13  ;;  %10250 = vmatmul.mubr.bf16.gmra.mxu0 %v11822_v43  ;;  %v3996_v61 = vld [vmem:[#allocation2 + $0x28] sm:$0xff]  ;;  %v3998_v14 = vld [vmem:[#allocation2 + $0x38] sm:$0xff] }
 0x1e6   : > { %10213 = vmatprep.mubr.bf16.mxu1 %v11970_v18  ;;  %10266 = vmatpush3.bf16.msra.mxu1 %v11023_v62  ;;  %v3557_v62 = vld [vmem:[#allocation2 + $0xa3] sm:$0xff]  ;;  %v4015_v1 = vpack.c.bf16 %v3996_v61, %v3995_v34  ;;  %v11047_v61 = vld [vmem:[%s13570_s3 + $0x350] sm:$0xff]  }
 0x1e7   : > { %10267 = vmatprep.subr.bf16.mxu1 %v11025_v47  ;;  %10253 = vmatprep.mubr.bf16.mxu0 %v11834_v3  ;;  %v11030_v3 = vld [vmem:[%s13570_s3 + $0x290] sm:$0xff]   ;;  %v12031_v16 = vpack.c.bf16 %v3558_v8, %v3557_v62 }
 0x1e8   : > { %10305 = vmatprep.subr.bf16.mxu0 %v11029_v21 }
 0x1e9   : > { %v9923_v30 = vpop.f32.mrf.mxu1  ;;  %10306 = vmatpush3.bf16.msra.mxu0 %v11029_v21  ;;  %v11042_v21 = vld [vmem:[%s13570_s3 + $0x368] sm:$0xff]  }
 0x1ea   : > { %v11987_v43 = vadd.f32 %v9959_v11, %v9923_v30  ;;  %10268 = vmatpush3.bf16.msra.mxu1 %v11025_v47  ;;  %10307 = vmatprep.subr.bf16.mxu0 %v11031_v60  ;;  %v3997_v47 = vld [vmem:[#allocation2 + $0x30] sm:$0xff]  ;;  %v3999_v30 = vld [vmem:[#allocation2 + $0x40] sm:$0xff] }
 0x1eb   : > { %v1947_v31 = vpop.f32.mrf.mxu1  ;;  %10269 = vmatprep.subr.bf16.mxu1 %v11027_v25 }
 0x1ec   : > { %v11994_v15 = vadd.f32 %v2108_v24, %v1947_v31  ;;  %v4000_v24 = vld [vmem:[#allocation2 + $0x48] sm:$0xff] }
 0x1ed   : > { %v9924_v49 = vpop.f32.mrf.mxu1  ;;  %10214 = vmatmul.mubr.bf16.gmra.mxu1 %v11989_v29  ;;  %10254 = vmatmul.mubr.bf16.gmra.mxu0 %v11839_v48  ;;  %v3554_v48 = vld [vmem:[#allocation2 + $0x8b] sm:$0xff] }
 0x1ee   : > { %v12003_v26 = vadd.f32 %v9960_v17, %v9924_v49  ;;  %10217 = vmatprep.mubr.bf16.mxu1 %v11996_v39  ;;  %10270 = vmatpush3.bf16.msra.mxu1 %v11027_v25  ;;  %v12012_v23 = vpack.c.bf16 %v3554_v48, %v3553_v52  ;;  %v12053_v17 = vpack.c.bf16 %v4000_v24, %v3999_v30  ;;  %v11039_v49 = vld [vmem:[%s13570_s3 + $0x328] sm:$0xff]   ;;  %v4007_v24 = vld [vmem:[#allocation2 + $0x80] sm:$0xff] }
 0x1ef   : > { %v1950_v54 = vpop.f32.mrf.mxu1  ;;  %10257 = vmatprep.mubr.bf16.mxu0 %v11854_v4  ;;  %10271 = vmatprep.subr.bf16.mxu1 %v11030_v3  ;;  %v3796_v4 = vpack.c.bf16 %v3786_v7, %v3785_v50  ;;  %v4001_v7 = vld [vmem:[#allocation2 + $0x50] sm:$0xff] }
 0x1f0   : > { %v12010_v20 = vadd.f32 %v2111_v42, %v1950_v54  ;;  %10308 = vmatpush3.bf16.msra.mxu0 %v11031_v60  ;;  %v4234_v42 = vld [vmem:[#allocation2 + $0x79] sm:$0xff] }
 0x1f1   : > { %10309 = vmatprep.subr.bf16.mxu0 %v11033_v41 }
 0x1f2   : > { %10272 = vmatpush3.bf16.msra.mxu1 %v11030_v3 }
 0x1f3   : > { %10273 = vmatprep.subr.bf16.mxu1 %v11032_v45 }
 0x1f4   : > { %10310 = vmatpush3.bf16.msra.mxu0 %v11033_v41  ;;  %v4002_v41 = vld [vmem:[#allocation2 + $0x58] sm:$0xff] }
 0x1f5   : > { %10218 = vmatmul.mubr.bf16.gmra.mxu1 %v12012_v23  ;;  %v9963_v56 = vpop.f32.mrf.mxu0  ;;  %10258 = vmatmul.mubr.bf16.gmra.mxu0 %v3796_v4  ;;  %v11041_v4 = vld [vmem:[%s13570_s3 + $0x320] sm:$0xff]  }
 0x1f6   : > { %10221 = vmatprep.mubr.bf16.mxu1 %v12017_v55  ;;  %10274 = vmatpush3.bf16.msra.mxu1 %v11032_v45  ;;  %v4004_v45 = vld [vmem:[#allocation2 + $0x68] sm:$0xff] }
 0x1f7   : > { %10313 = vmatprep.mubr.bf16.mxu0 %v11865_v19  ;;  %v2124_v37 = vpop.f32.mrf.mxu0  ;;  %10275 = vmatprep.subr.bf16.mxu1 %v11034_v53  ;;  %v11040_v19 = vld [vmem:[%s13570_s3 + $0x370] sm:$0xff]  }
 0x1f8   : > { %10311 = vmatprep.subr.bf16.mxu0 %v11035_v44 }
 0x1f9   : > { %10312 = vmatpush3.bf16.msra.mxu0 %v11035_v44  ;;  %v9964_v36 = vpop.f32.mrf.mxu0 }
 0x1fa   : > { %10276 = vmatpush3.bf16.msra.mxu1 %v11034_v53  ;;  %10369 = vmatprep.subr.bf16.mxu0 %v11038_v57  ;;  %v4248_v53 = vpack.c.bf16 %v4234_v42, %v4233_v46  ;;  %v4242_v42 = vld [vmem:[#allocation2 + $0xb9] sm:$0xff] }
 0x1fb   : > { %10333 = vmatprep.subr.bf16.mxu1 %v11036_v27  ;;  %v2127_v10 = vpop.f32.mrf.mxu0 }
 0x1fd   : > { %10222 = vmatmul.mubr.bf16.gmra.mxu1 %v12031_v16  ;;  %10314 = vmatmul.mubr.bf16.vlgmr.msra.gmra.mxu0 %v11870_v40  ;;  %v9967_v28 = vpop.f32.mrf.mxu0 }
 0x1fe   : > { %v9927_v9 = vpop.f32.mrf.mxu1  ;;  %10277 = vmatprep.mubr.bf16.mxu1 %v4015_v1  ;;  %10317 = vmatprep.mubr.bf16.mxu0 %v11882_v2  ;;  %v12048_v2 = vpack.c.bf16 %v3998_v14, %v3997_v47  ;;  %v4005_v1 = vld [vmem:[#allocation2 + $0x70] sm:$0xff]  ;;  %v4238_v47 = vld [vmem:[#allocation2 + $0x99] sm:$0xff]  ;;  %v4008_v14 = vld [vmem:[#allocation2 + $0x88] sm:$0xff] }
 0x1ff   : > { %v12039_v38 = vadd.f32 %v9963_v56, %v9927_v9  ;;  %10370 = vmatpush3.bf16.msra.mxu0 %v11038_v57  ;;  %v2140_v3 = vpop.f32.mrf.mxu0  ;;  %v4235_v57 = vld [vmem:[#allocation2 + $0x81] sm:$0xff]  ;;  %v12098_v30 = vpack.c.bf16 %v4008_v14, %v4007_v24 }
 0x200   : > { %v1963_v11 = vpop.f32.mrf.mxu1  ;;  %10371 = vmatprep.subr.bf16.mxu0 %v11040_v19  ;;  %v4249_v8 = vpack.c.bf16 %v4236_v51, %v4235_v57 }
 0x201   : > { %v12044_v60 = vadd.f32 %v2124_v37, %v1963_v11  ;;  %v9968_v52 = vpop.f32.mrf.mxu0  ;;  %v11045_v37 = vld [vmem:[%s13570_s3 + $0x358] sm:$0xff]  }
 0x202   : > { %v9928_v40 = vpop.f32.mrf.mxu1  ;;  %v4237_v11 = vld [vmem:[#allocation2 + $0x91] sm:$0xff] }
 0x203   : > { %v12046_v25 = vadd.f32 %v9964_v36, %v9928_v40  ;;  %10372 = vmatpush3.bf16.msra.mxu0 %v11040_v19  ;;  %v2143_v62 = vpop.f32.mrf.mxu0  ;;  %v11043_v19 = vld [vmem:[%s13570_s3 + $0x318] sm:$0xff]   ;;  %v4250_v40 = vpack.c.bf16 %v4238_v47, %v4237_v11  ;;  %v4452_v47 = vld [vmem:[#allocation2 + $0x2a] sm:$0xff] }
 0x204   : > { %v1966_v32 = vpop.f32.mrf.mxu1  ;;  %10373 = vmatprep.subr.bf16.mxu0 %v11042_v21 }
 0x205   : > { %v12055_v31 = vadd.f32 %v2127_v10, %v1966_v32  ;;  %10278 = vmatmul.mubr.bf16.vlgmr.msra.gmra.mxu1 %v12048_v2  ;;  %10318 = vmatmul.mubr.bf16.gmra.mxu0 %v11887_v12  ;;  %v4003_v12 = vld [vmem:[#allocation2 + $0x60] sm:$0xff]  ;;  %v4006_v10 = vld [vmem:[#allocation2 + $0x78] sm:$0xff]  ;;  %v11049_v32 = vld [vmem:[%s13570_s3 + $0x348] sm:$0xff]  }
 0x206   : > { %10281 = vmatprep.mubr.bf16.mxu1 %v12053_v17  ;;  %10334 = vmatpush3.bf16.msra.mxu1 %v11036_v27  ;;  %v12076_v56 = vpack.c.bf16 %v4004_v45, %v4003_v12  ;;  %v4012_v12 = vld [vmem:[#allocation2 + $0xa8] sm:$0xff] }
 0x207   : > { %10335 = vmatprep.subr.bf16.mxu1 %v11037_v0  ;;  %10321 = vmatprep.mubr.bf16.mxu0 %v11902_v33  ;;  %v12069_v33 = vpack.c.bf16 %v4002_v41, %v4001_v7  ;;  %v4241_v41 = vld [vmem:[#allocation2 + $0xb1] sm:$0xff] }
 0x208   : > { %10374 = vmatpush3.bf16.msra.mxu0 %v11042_v21  ;;  %v12093_v21 = vpack.c.bf16 %v4006_v10, %v4005_v1  ;;  %v4009_v7 = vld [vmem:[#allocation2 + $0x90] sm:$0xff]  ;;  %v4682_v10 = vld [vmem:[#allocation2 + $0x3b] sm:$0xff] }
 0x209   : > { %v9931_v54 = vpop.f32.mrf.mxu1  ;;  %10375 = vmatprep.subr.bf16.mxu0 %v11044_v6  ;;  %v4013_v1 = vld [vmem:[#allocation2 + $0xb0] sm:$0xff] }
 0x20a   : > { %v12067_v48 = vadd.f32 %v9967_v28, %v9931_v54  ;;  %10336 = vmatpush3.bf16.msra.mxu1 %v11037_v0  ;;  %v11046_v28 = vld [vmem:[%s13570_s3 + $0x310] sm:$0xff]   ;;  %v4011_v54 = vld [vmem:[#allocation2 + $0xa0] sm:$0xff] }
 0x20b   : > { %v1979_v50 = vpop.f32.mrf.mxu1  ;;  %10337 = vmatprep.subr.bf16.mxu1 %v11039_v49 }
 0x20c   : > { %v12074_v44 = vadd.f32 %v2140_v3, %v1979_v50  ;;  %10376 = vmatpush3.bf16.msra.mxu0 %v11044_v6  ;;  %v11048_v3 = vld [vmem:[%s13570_s3 + $0x308] sm:$0xff]   ;;  %v12114_v50 = vpack.c.bf16 %v4012_v12, %v4011_v54 }
 0x20d   : > { %v9932_v27 = vpop.f32.mrf.mxu1  ;;  %10282 = vmatmul.mubr.bf16.gmra.mxu1 %v12069_v33  ;;  %10322 = vmatmul.mubr.bf16.gmra.mxu0 %v4248_v53 }
 0x20e   : > { %v12082_v34 = vadd.f32 %v9968_v52, %v9932_v27  ;;  %10285 = vmatprep.mubr.bf16.mxu1 %v12076_v56  ;;  %10338 = vmatpush3.bf16.msra.mxu1 %v11039_v49  ;;  %v4010_v49 = vld [vmem:[#allocation2 + $0x98] sm:$0xff]  ;;  %v11050_v52 = vld [vmem:[%s13570_s3 + $0x300] sm:$0xff]  }
 0x20f   : > { %v1982_v36 = vpop.f32.mrf.mxu1  ;;  %10339 = vmatprep.subr.bf16.mxu1 %v11041_v4  ;;  %10325 = vmatprep.mubr.bf16.mxu0 %v4249_v8  ;;  %v12109_v46 = vpack.c.bf16 %v4010_v49, %v4009_v7  ;;  %v11054_v27 = vld [vmem:[%s13570_s3 + $0x3f8] sm:$0xff]  }
 0x210   : > { %v12091_v9 = vadd.f32 %v2143_v62, %v1982_v36  ;;  %10377 = vmatprep.subr.bf16.mxu0 %v11045_v37  ;;  %v11052_v62 = vld [vmem:[%s13570_s3 + $0x3b8] sm:$0xff]  }
 0x211   : > { %10378 = vmatpush3.bf16.msra.mxu0 %v11045_v37 }
 0x212   : > { %10340 = vmatpush3.bf16.msra.mxu1 %v11041_v4  ;;  %10379 = vmatprep.subr.bf16.mxu0 %v11047_v61  ;;  %v11051_v4 = vld [vmem:[%s13570_s3 + $0x340] sm:$0xff]  }
 0x213   : > { %10341 = vmatprep.subr.bf16.mxu1 %v11043_v19 }
 0x215   : > { %10286 = vmatmul.mubr.bf16.gmra.mxu1 %v12093_v21  ;;  %v9971_v0 = vpop.f32.mrf.mxu0  ;;  %10326 = vmatmul.mubr.bf16.gmra.mxu0 %v4250_v40 }
 0x216   : > { %10289 = vmatprep.mubr.bf16.mxu1 %v12098_v30  ;;  %10342 = vmatpush3.bf16.msra.mxu1 %v11043_v19  ;;  %v4014_v19 = vld [vmem:[#allocation2 + $0xb8] sm:$0xff] }
 0x217   : > { %10329 = vmatprep.mubr.bf16.mxu0 %v11932_v5  ;;  %10343 = vmatprep.subr.bf16.mxu1 %v11046_v28  ;;  %v2156_v6 = vpop.f32.mrf.mxu0  ;;  %v4252_v5 = vpack.c.bf16 %v4242_v42, %v4241_v41  ;;  %v11056_v41 = vld [vmem:[%s13570_s3 + $0x3f0] sm:$0xff]  }
 0x218   : > { %10380 = vmatpush3.bf16.msra.mxu0 %v11047_v61 }
 0x219   : > { %v9972_v45 = vpop.f32.mrf.mxu0  ;;  %10381 = vmatprep.subr.bf16.mxu0 %v11049_v32 }
 0x21a   : > { %10344 = vmatpush3.bf16.msra.mxu1 %v11046_v28  ;;  %v12134_v28 = vpack.c.bf16 %v4014_v19, %v4013_v1  ;;  %v4453_v19 = vld [vmem:[#allocation2 + $0x32] sm:$0xff] }
 0x21b   : > { %v2159_v51 = vpop.f32.mrf.mxu0  ;;  %10345 = vmatprep.subr.bf16.mxu1 %v11048_v3 }
 0x21c   : > { %10382 = vmatpush3.bf16.msra.mxu0 %v11049_v32 }
 0x21d   : > { %v9935_v53 = vpop.f32.mrf.mxu1  ;;  %10290 = vmatmul.mubr.bf16.gmra.mxu1 %v12109_v46  ;;  %v10027_v57 = vpop.f32.mrf.mxu0  ;;  %10330 = vmatmul.mubr.bf16.gmra.mxu0 %v4252_v5 }
 0x21e   : > { %v12120_v37 = vadd.f32 %v9971_v0, %v9935_v53  ;;  %10293 = vmatprep.mubr.bf16.mxu1 %v12114_v50  ;;  %10346 = vmatpush3.bf16.msra.mxu1 %v11048_v3  ;;  %v4451_v0 = vld [vmem:[#allocation2 + $0x22] sm:$0xff] }
 0x21f   : > { %v1995_v8 = vpop.f32.mrf.mxu1  ;;  %10385 = vmatprep.mubr.bf16.mxu0 %v11944_v58  ;;  %v2528_v61 = vpop.f32.mrf.mxu0  ;;  %10347 = vmatprep.subr.bf16.mxu1 %v11050_v52  ;;  %v4681_v58 = vld [vmem:[#allocation2 + $0x33] sm:$0xff]  ;;  %v4471_v49 = vpack.c.bf16 %v4452_v47, %v4451_v0  ;;  %v11060_v0 = vld [vmem:[%s13570_s3 + $0x3e0] sm:$0xff]  }
 0x220   : > { %v12130_v36 = vadd.f32 %v2156_v6, %v1995_v8  ;;  %10383 = vmatprep.subr.bf16.mxu0 %v11051_v4  ;;  %v4700_v6 = vpack.c.bf16 %v4682_v10, %v4681_v58  ;;  %v4456_v8 = vld [vmem:[#allocation2 + $0x4a] sm:$0xff] }
 0x221   : > { %v9936_v11 = vpop.f32.mrf.mxu1  ;;  %v10028_v14 = vpop.f32.mrf.mxu0  ;;  %10384 = vmatpush3.bf16.msra.mxu0 %v11051_v4  ;;  %v11058_v4 = vld [vmem:[%s13570_s3 + $0x3e8] sm:$0xff]  }
 0x222   : > { %v12132_v24 = vadd.f32 %v9972_v45, %v9936_v11  ;;  %10348 = vmatpush3.bf16.msra.mxu1 %v11050_v52  ;;  %10441 = vmatprep.subr.bf16.mxu0 %v11054_v27  ;;  %v4454_v52 = vld [vmem:[#allocation2 + $0x3a] sm:$0xff] }
 0x223   : > { %v1998_v40 = vpop.f32.mrf.mxu1  ;;  %v2531_v32 = vpop.f32.mrf.mxu0  ;;  %10405 = vmatprep.subr.bf16.mxu1 %v11052_v62 }
 0x224   : > { %v12136_v3 = vadd.f32 %v2159_v51, %v1998_v40 }
 0x225   : > { %v9991_v42 = vpop.f32.mrf.mxu1  ;;  %10294 = vmatmul.mubr.bf16.gmra.mxu1 %v12134_v28  ;;  %v10031_v54 = vpop.f32.mrf.mxu0  ;;  %10386 = vmatmul.mubr.bf16.vlgmr.msra.gmra.mxu0 %v4700_v6 }
 0x226   : > { %v2381_v12 = vadd.f32 %v9991_v42, %v11955_v59  ;;  %10349 = vmatprep.mubr.bf16.mxu1 %v4471_v49  ;;  %10389 = vmatprep.mubr.bf16.mxu0 %v11965_v13 }
 0x227   : > { %v2300_v45 = vpop.f32.mrf.mxu1  ;;  %v2544_v7 = vpop.f32.mrf.mxu0  ;;  %10442 = vmatpush3.bf16.msra.mxu0 %v11054_v27  ;;  %v12153_v27 = vpack.c.bf16 %v4454_v52, %v4453_v19 }
 0x228   : > { %v12144_v51 = vadd.f32 %v10027_v57, %v2381_v12  ;;  %v2379_v5 = vadd.f32 %v2300_v45, %v11961_v63  ;;  %10443 = vmatprep.subr.bf16.mxu0 %v11056_v41  ;;  %v4455_v57 = vld [vmem:[#allocation2 + $0x42] sm:$0xff]  ;;  %v11053_v63 = vld [vmem:[%s13570_s3 + $0x3b0] sm:$0xff]   ;;  %v4458_v12 = vld [vmem:[#allocation2 + $0x5a] sm:$0xff] }
 0x229   : > { %v9992_v53 = vpop.f32.mrf.mxu1  ;;  %v10032_v1 = vpop.f32.mrf.mxu0  ;;  %v12161_v40 = vpack.c.bf16 %v4456_v8, %v4455_v57  ;;  %v4460_v45 = vld [vmem:[#allocation2 + $0x6a] sm:$0xff]  ;;  %v4459_v8 = vld [vmem:[#allocation2 + $0x62] sm:$0xff] }
 0x22a   : > { %v12150_v59 = vadd.f32 %v2528_v61, %v2379_v5  ;;  %v2382_v13 = vadd.f32 %v9992_v53, %v11963_v35  ;;  %v12190_v19 = vpack.c.bf16 %v4460_v45, %v4459_v8  ;;  %v11065_v8 = vld [vmem:[%s13570_s3 + $0x3c8] sm:$0xff]  }
 0x22b   : > { %v2303_v10 = vpop.f32.mrf.mxu1  ;;  %v2547_v11 = vpop.f32.mrf.mxu0  ;;  %10444 = vmatpush3.bf16.msra.mxu0 %v11056_v41 }
 0x22c   : > { %v12158_v47 = vadd.f32 %v10028_v14, %v2382_v13  ;;  %v2380_v58 = vadd.f32 %v2303_v10, %v11975_v22  ;;  %10445 = vmatprep.subr.bf16.mxu0 %v11058_v4 }
 0x22d   : > { %v9995_v61 = vpop.f32.mrf.mxu1  ;;  %10350 = vmatmul.mubr.bf16.vlgmr.msra.gmra.mxu1 %v12153_v27  ;;  %v10035_v35 = vpop.f32.mrf.mxu0  ;;  %10390 = vmatmul.mubr.bf16.gmra.mxu0 %v11970_v18  ;;  %v11055_v18 = vld [vmem:[%s13570_s3 + $0x3a8] sm:$0xff]  }
 0x22e   : > { %v12168_v6 = vadd.f32 %v2531_v32, %v2380_v58  ;;  %v2385_v14 = vadd.f32 %v9995_v61, %v11987_v43  ;;  %10353 = vmatprep.mubr.bf16.mxu1 %v12161_v40  ;;  %10406 = vmatpush3.bf16.msra.mxu1 %v11052_v62  ;;  %v4457_v32 = vld [vmem:[#allocation2 + $0x52] sm:$0xff]  ;;  %v4462_v61 = vld [vmem:[#allocation2 + $0x7a] sm:$0xff] }
 0x22f   : > { %v2316_v22 = vpop.f32.mrf.mxu1  ;;  %10407 = vmatprep.subr.bf16.mxu1 %v11053_v63  ;;  %10393 = vmatprep.mubr.bf16.mxu0 %v11989_v29  ;;  %v2560_v49 = vpop.f32.mrf.mxu0  ;;  %v12182_v53 = vpack.c.bf16 %v4458_v12, %v4457_v32 }
 0x230   : > { %v12176_v41 = vadd.f32 %v10031_v54, %v2385_v14  ;;  %v2383_v42 = vadd.f32 %v2316_v22, %v11994_v15  ;;  %10446 = vmatpush3.bf16.msra.mxu0 %v11058_v4  ;;  %v11057_v15 = vld [vmem:[%s13570_s3 + $0x3a0] sm:$0xff]   ;;  %v4464_v14 = vld [vmem:[#allocation2 + $0x8a] sm:$0xff] }
 0x231   : > { %v9996_v43 = vpop.f32.mrf.mxu1  ;;  %v10036_v5 = vpop.f32.mrf.mxu0  ;;  %10447 = vmatprep.subr.bf16.mxu0 %v11060_v0 }
 0x232   : > { %v12179_v62 = vadd.f32 %v2544_v7, %v2383_v42  ;;  %v2386_v29 = vadd.f32 %v9996_v43, %v12003_v26  ;;  %10408 = vmatpush3.bf16.msra.mxu1 %v11053_v63  ;;  %v11061_v26 = vld [vmem:[%s13570_s3 + $0x3d8] sm:$0xff]  }
 0x233   : > { %v2319_v52 = vpop.f32.mrf.mxu1  ;;  %10409 = vmatprep.subr.bf16.mxu1 %v11055_v18  ;;  %v2563_v54 = vpop.f32.mrf.mxu0 }
 0x234   : > { %v12187_v4 = vadd.f32 %v10032_v1, %v2386_v29  ;;  %v2384_v13 = vadd.f32 %v2319_v52, %v12010_v20  ;;  %10448 = vmatpush3.bf16.msra.mxu0 %v11060_v0  ;;  %v11063_v20 = vld [vmem:[%s13570_s3 + $0x3d0] sm:$0xff]  }
 0x235   : > { %v9999_v7 = vpop.f32.mrf.mxu1  ;;  %10354 = vmatmul.mubr.bf16.gmra.mxu1 %v12182_v53  ;;  %v10039_v10 = vpop.f32.mrf.mxu0  ;;  %10394 = vmatmul.mubr.bf16.gmra.mxu0 %v11996_v39  ;;  %v11059_v39 = vld [vmem:[%s13570_s3 + $0x398] sm:$0xff]  }
 0x236   : > { %v12197_v57 = vadd.f32 %v2547_v11, %v2384_v13  ;;  %v2389_v1 = vadd.f32 %v9999_v7, %v12039_v38  ;;  %10357 = vmatprep.mubr.bf16.mxu1 %v12190_v19  ;;  %10410 = vmatpush3.bf16.msra.mxu1 %v11055_v18 }
 0x237   : > { %v2332_v63 = vpop.f32.mrf.mxu1  ;;  %10411 = vmatprep.subr.bf16.mxu1 %v11057_v15  ;;  %10397 = vmatprep.mubr.bf16.mxu0 %v12012_v23  ;;  %v2576_v58 = vpop.f32.mrf.mxu0  ;;  %v4461_v23 = vld [vmem:[#allocation2 + $0x72] sm:$0xff] }
 0x238   : > { %v12208_v11 = vadd.f32 %v10035_v35, %v2389_v1  ;;  %v2387_v38 = vadd.f32 %v2332_v63, %v12044_v60  ;;  %10449 = vmatprep.subr.bf16.mxu0 %v11061_v26  ;;  %v12214_v12 = vpack.c.bf16 %v4462_v61, %v4461_v23  ;;  %v4463_v35 = vld [vmem:[#allocation2 + $0x82] sm:$0xff]  ;;  %v11062_v60 = vld [vmem:[%s13570_s3 + $0x390] sm:$0xff]   ;;  %v4466_v1 = vld [vmem:[#allocation2 + $0x9a] sm:$0xff] }
 0x239   : > { %v10000_v0 = vpop.f32.mrf.mxu1  ;;  %v10040_v22 = vpop.f32.mrf.mxu0  ;;  %10450 = vmatpush3.bf16.msra.mxu0 %v11061_v26  ;;  %v12222_v29 = vpack.c.bf16 %v4464_v14, %v4463_v35  ;;  %v4698_v63 = vld [vmem:[#allocation2 + $0xbb] sm:$0xff] }
 0x23a   : > { %v12211_v18 = vadd.f32 %v2560_v49, %v2387_v38  ;;  %v2390_v42 = vadd.f32 %v10000_v0, %v12046_v25  ;;  %10412 = vmatpush3.bf16.msra.mxu1 %v11057_v15  ;;  %10451 = vmatprep.subr.bf16.mxu0 %v11063_v20 }
 0x23b   : > { %v2335_v32 = vpop.f32.mrf.mxu1  ;;  %10413 = vmatprep.subr.bf16.mxu1 %v11059_v39  ;;  %v2579_v43 = vpop.f32.mrf.mxu0 }
 0x23c   : > { %v12219_v45 = vadd.f32 %v10036_v5, %v2390_v42  ;;  %v2388_v49 = vadd.f32 %v2335_v32, %v12055_v31  ;;  %v4465_v5 = vld [vmem:[#allocation2 + $0x92] sm:$0xff] }
 0x23d   : > { %v10003_v25 = vpop.f32.mrf.mxu1  ;;  %10358 = vmatmul.mubr.bf16.gmra.mxu1 %v12214_v12  ;;  %v10043_v52 = vpop.f32.mrf.mxu0  ;;  %10398 = vmatmul.mubr.bf16.gmra.mxu0 %v12017_v55  ;;  %v11064_v55 = vld [vmem:[%s13570_s3 + $0x388] sm:$0xff]   ;;  %v12243_v42 = vpack.c.bf16 %v4466_v1, %v4465_v5  ;;  %v4469_v5 = vld [vmem:[#allocation2 + $0xb2] sm:$0xff] }
 0x23e   : > { %v12229_v15 = vadd.f32 %v2563_v54, %v2388_v49  ;;  %v2393_v13 = vadd.f32 %v10003_v25, %v12067_v48  ;;  %10361 = vmatprep.mubr.bf16.mxu1 %v12222_v29  ;;  %10414 = vmatpush3.bf16.msra.mxu1 %v11059_v39  ;;  %v4697_v48 = vld [vmem:[#allocation2 + $0xb3] sm:$0xff]  ;;  %v4468_v39 = vld [vmem:[#allocation2 + $0xaa] sm:$0xff] }
 0x23f   : > { %v2348_v31 = vpop.f32.mrf.mxu1  ;;  %10401 = vmatprep.mubr.bf16.mxu0 %v12031_v16  ;;  %10415 = vmatprep.subr.bf16.mxu1 %v11062_v60  ;;  %v2592_v26 = vpop.f32.mrf.mxu0  ;;  %v4908_v1 = vld [vmem:[#allocation2 + $0x2c] sm:$0xff] }
 0x240   : > { %v12237_v7 = vadd.f32 %v10039_v10, %v2393_v13  ;;  %v2391_v54 = vadd.f32 %v2348_v31, %v12074_v44  ;;  %10452 = vmatpush3.bf16.msra.mxu0 %v11063_v20  ;;  %v4467_v10 = vld [vmem:[#allocation2 + $0xa2] sm:$0xff]  ;;  %v4708_v44 = vpack.c.bf16 %v4698_v63, %v4697_v48  ;;  %v11068_v31 = vld [vmem:[%s13570_s3 + $0x438] sm:$0xff]  }
 0x241   : > { %v10004_v38 = vpop.f32.mrf.mxu1  ;;  %v10044_v61 = vpop.f32.mrf.mxu0  ;;  %10453 = vmatprep.subr.bf16.mxu0 %v11065_v8  ;;  %v11066_v20 = vld [vmem:[%s13570_s3 + $0x380] sm:$0xff]  }
 0x242   : > { %v12240_v0 = vadd.f32 %v2576_v58, %v2391_v54  ;;  %v2394_v16 = vadd.f32 %v10004_v38, %v12082_v34  ;;  %10416 = vmatpush3.bf16.msra.mxu1 %v11062_v60  ;;  %v12251_v58 = vpack.c.bf16 %v4468_v39, %v4467_v10  ;;  %v11067_v34 = vld [vmem:[%s13570_s3 + $0x3c0] sm:$0xff]  }
 0x243   : > { %v2351_v14 = vpop.f32.mrf.mxu1  ;;  %v2595_v23 = vpop.f32.mrf.mxu0  ;;  %10417 = vmatprep.subr.bf16.mxu1 %v11064_v55  ;;  %v4470_v54 = vld [vmem:[#allocation2 + $0xba] sm:$0xff] }
 0x244   : > { %v12248_v32 = vadd.f32 %v10040_v22, %v2394_v16  ;;  %v2392_v35 = vadd.f32 %v2351_v14, %v12091_v9  ;;  %10454 = vmatpush3.bf16.msra.mxu0 %v11065_v8  ;;  %v11070_v9 = vld [vmem:[%s13570_s3 + $0x478] sm:$0xff]   ;;  %v12274_v39 = vpack.c.bf16 %v4470_v54, %v4469_v5 }
 0x245   : > { %v10007_v60 = vpop.f32.mrf.mxu1  ;;  %10362 = vmatmul.mubr.bf16.gmra.mxu1 %v12243_v42  ;;  %v10099_v49 = vpop.f32.mrf.mxu0  ;;  %10402 = vmatmul.mubr.bf16.gmra.mxu0 %v4708_v44  ;;  %v4909_v5 = vld [vmem:[#allocation2 + $0x34] sm:$0xff] }
 0x246   : > { %v12257_v25 = vadd.f32 %v2579_v43, %v2392_v35  ;;  %v2397_v13 = vadd.f32 %v10007_v60, %v12120_v37  ;;  %10365 = vmatprep.mubr.bf16.mxu1 %v12251_v58  ;;  %10418 = vmatpush3.bf16.msra.mxu1 %v11064_v55 }
 0x247   : > { %v2364_v22 = vpop.f32.mrf.mxu1  ;;  %10457 = vmatprep.mubr.bf16.mxu0 %v12048_v2  ;;  %v2984_v8 = vpop.f32.mrf.mxu0  ;;  %10419 = vmatprep.subr.bf16.mxu1 %v11066_v20 }
 0x248   : > { %v12268_v43 = vadd.f32 %v10043_v52, %v2397_v13  ;;  %v2395_v37 = vadd.f32 %v2364_v22, %v12130_v36  ;;  %10455 = vmatprep.subr.bf16.mxu0 %v11067_v34  ;;  %v4907_v52 = vld [vmem:[#allocation2 + $0x24] sm:$0xff]  ;;  %v4910_v13 = vld [vmem:[#allocation2 + $0x3c] sm:$0xff]  ;;  %v4912_v22 = vld [vmem:[#allocation2 + $0x4c] sm:$0xff] }
 0x249   : > { %v10008_v55 = vpop.f32.mrf.mxu1  ;;  %v10100_v48 = vpop.f32.mrf.mxu0  ;;  %10456 = vmatpush3.bf16.msra.mxu0 %v11067_v34  ;;  %v4927_v10 = vpack.c.bf16 %v4908_v1, %v4907_v52  ;;  %v11076_v52 = vld [vmem:[%s13570_s3 + $0x460] sm:$0xff]  }
 0x24a   : > { %v12271_v63 = vadd.f32 %v2592_v26, %v2395_v37  ;;  %v2398_v2 = vadd.f32 %v10008_v55, %v12132_v24  ;;  %10420 = vmatpush3.bf16.msra.mxu1 %v11066_v20  ;;  %10513 = vmatprep.subr.bf16.mxu0 %v11070_v9  ;;  %v11072_v26 = vld [vmem:[%s13570_s3 + $0x470] sm:$0xff]  }
 0x24b   : > { %v2367_v38 = vpop.f32.mrf.mxu1  ;;  %v2987_v16 = vpop.f32.mrf.mxu0  ;;  %10477 = vmatprep.subr.bf16.mxu1 %v11068_v31 }
 0x24c   : > { %v12276_v36 = vadd.f32 %v10044_v61, %v2398_v2  ;;  %v2396_v14 = vadd.f32 %v2367_v38, %v12136_v3 }
 0x24d   : > { %v10063_v44 = vpop.f32.mrf.mxu1  ;;  %10366 = vmatmul.mubr.bf16.gmra.mxu1 %v12274_v39  ;;  %v10103_v24 = vpop.f32.mrf.mxu0  ;;  %10458 = vmatmul.mubr.bf16.vlgmr.msra.gmra.mxu0 %v12053_v17  ;;  %v11074_v17 = vld [vmem:[%s13570_s3 + $0x468] sm:$0xff]  }
 0x24e   : > { %v12284_v20 = vadd.f32 %v2595_v23, %v2396_v14  ;;  %v2837_v35 = vadd.f32 %v10063_v44, %v12144_v51  ;;  %10421 = vmatprep.mubr.bf16.mxu1 %v4927_v10  ;;  %10461 = vmatprep.mubr.bf16.mxu0 %v12069_v33 }
 0x24f   : > { %v2756_v61 = vpop.f32.mrf.mxu1  ;;  %v3000_v3 = vpop.f32.mrf.mxu0  ;;  %10514 = vmatpush3.bf16.msra.mxu0 %v11070_v9  ;;  %v12297_v9 = vpack.c.bf16 %v4910_v13, %v4909_v5 }
 0x250   : > { %v12288_v34 = vadd.f32 %v10099_v49, %v2837_v35  ;;  %v2835_v60 = vadd.f32 %v2756_v61, %v12150_v59  ;;  %10515 = vmatprep.subr.bf16.mxu0 %v11072_v26  ;;  %v4911_v49 = vld [vmem:[#allocation2 + $0x44] sm:$0xff]  ;;  %v11069_v59 = vld [vmem:[%s13570_s3 + $0x430] sm:$0xff]   ;;  %v4914_v35 = vld [vmem:[#allocation2 + $0x5c] sm:$0xff] }
 0x251   : > { %v10064_v23 = vpop.f32.mrf.mxu1  ;;  %v10104_v37 = vpop.f32.mrf.mxu0  ;;  %v12305_v38 = vpack.c.bf16 %v4912_v22, %v4911_v49  ;;  %v4916_v61 = vld [vmem:[#allocation2 + $0x6c] sm:$0xff]  ;;  %v4915_v22 = vld [vmem:[#allocation2 + $0x64] sm:$0xff] }
 0x252   : > { %v12294_v51 = vadd.f32 %v2984_v8, %v2835_v60  ;;  %v2838_v33 = vadd.f32 %v10064_v23, %v12158_v47  ;;  %v12334_v5 = vpack.c.bf16 %v4916_v61, %v4915_v22  ;;  %v11081_v22 = vld [vmem:[%s13570_s3 + $0x448] sm:$0xff]  }
 0x253   : > { %v2759_v54 = vpop.f32.mrf.mxu1  ;;  %v3003_v55 = vpop.f32.mrf.mxu0  ;;  %10516 = vmatpush3.bf16.msra.mxu0 %v11072_v26 }
 0x254   : > { %v12302_v1 = vadd.f32 %v10100_v48, %v2838_v33  ;;  %v2836_v2 = vadd.f32 %v2759_v54, %v12168_v6  ;;  %10517 = vmatprep.subr.bf16.mxu0 %v11074_v17 }
 0x255   : > { %v10067_v8 = vpop.f32.mrf.mxu1  ;;  %10422 = vmatmul.mubr.bf16.vlgmr.msra.gmra.mxu1 %v12297_v9  ;;  %v10107_v47 = vpop.f32.mrf.mxu0  ;;  %10462 = vmatmul.mubr.bf16.gmra.mxu0 %v12076_v56  ;;  %v11071_v56 = vld [vmem:[%s13570_s3 + $0x428] sm:$0xff]  }
 0x256   : > { %v12312_v14 = vadd.f32 %v2987_v16, %v2836_v2  ;;  %v2841_v48 = vadd.f32 %v10067_v8, %v12176_v41  ;;  %10425 = vmatprep.mubr.bf16.mxu1 %v12305_v38  ;;  %10478 = vmatpush3.bf16.msra.mxu1 %v11068_v31  ;;  %v4913_v16 = vld [vmem:[#allocation2 + $0x54] sm:$0xff]  ;;  %v4918_v8 = vld [vmem:[#allocation2 + $0x7c] sm:$0xff] }
 0x257   : > { %v2772_v6 = vpop.f32.mrf.mxu1  ;;  %10479 = vmatprep.subr.bf16.mxu1 %v11069_v59  ;;  %10465 = vmatprep.mubr.bf16.mxu0 %v12093_v21  ;;  %v3016_v10 = vpop.f32.mrf.mxu0  ;;  %v12326_v23 = vpack.c.bf16 %v4914_v35, %v4913_v16 }
 0x258   : > { %v12320_v26 = vadd.f32 %v10103_v24, %v2841_v48  ;;  %v2839_v44 = vadd.f32 %v2772_v6, %v12179_v62  ;;  %10518 = vmatpush3.bf16.msra.mxu0 %v11074_v17  ;;  %v11073_v62 = vld [vmem:[%s13570_s3 + $0x420] sm:$0xff]   ;;  %v4920_v48 = vld [vmem:[#allocation2 + $0x8c] sm:$0xff] }
 0x259   : > { %v10068_v41 = vpop.f32.mrf.mxu1  ;;  %v10108_v60 = vpop.f32.mrf.mxu0  ;;  %10519 = vmatprep.subr.bf16.mxu0 %v11076_v52 }
 0x25a   : > { %v12323_v31 = vadd.f32 %v3000_v3, %v2839_v44  ;;  %v2842_v21 = vadd.f32 %v10068_v41, %v12187_v4  ;;  %10480 = vmatpush3.bf16.msra.mxu1 %v11069_v59  ;;  %v11077_v4 = vld [vmem:[%s13570_s3 + $0x458] sm:$0xff]  }
 0x25b   : > { %v2775_v13 = vpop.f32.mrf.mxu1  ;;  %10481 = vmatprep.subr.bf16.mxu1 %v11071_v56  ;;  %v3019_v24 = vpop.f32.mrf.mxu0 }
 0x25c   : > { %v12331_v17 = vadd.f32 %v10104_v37, %v2842_v21  ;;  %v2840_v33 = vadd.f32 %v2775_v13, %v12197_v57  ;;  %10520 = vmatpush3.bf16.msra.mxu0 %v11076_v52  ;;  %v11079_v57 = vld [vmem:[%s13570_s3 + $0x450] sm:$0xff]  }
 0x25d   : > { %v10071_v3 = vpop.f32.mrf.mxu1  ;;  %10426 = vmatmul.mubr.bf16.gmra.mxu1 %v12326_v23  ;;  %v10111_v54 = vpop.f32.mrf.mxu0  ;;  %10466 = vmatmul.mubr.bf16.gmra.mxu0 %v12098_v30  ;;  %v11075_v30 = vld [vmem:[%s13570_s3 + $0x418] sm:$0xff]  }
 0x25e   : > { %v12341_v49 = vadd.f32 %v3003_v55, %v2840_v33  ;;  %v2845_v37 = vadd.f32 %v10071_v3, %v12208_v11  ;;  %10429 = vmatprep.mubr.bf16.mxu1 %v12334_v5  ;;  %10482 = vmatpush3.bf16.msra.mxu1 %v11071_v56 }
 0x25f   : > { %v2788_v59 = vpop.f32.mrf.mxu1  ;;  %10483 = vmatprep.subr.bf16.mxu1 %v11073_v62  ;;  %10469 = vmatprep.mubr.bf16.mxu0 %v12109_v46  ;;  %v3032_v2 = vpop.f32.mrf.mxu0  ;;  %v4917_v46 = vld [vmem:[#allocation2 + $0x74] sm:$0xff] }
 0x260   : > { %v12352_v55 = vadd.f32 %v10107_v47, %v2845_v37  ;;  %v2843_v11 = vadd.f32 %v2788_v59, %v12211_v18  ;;  %10521 = vmatprep.subr.bf16.mxu0 %v11077_v4  ;;  %v12358_v35 = vpack.c.bf16 %v4918_v8, %v4917_v46  ;;  %v4919_v47 = vld [vmem:[#allocation2 + $0x84] sm:$0xff]  ;;  %v11078_v18 = vld [vmem:[%s13570_s3 + $0x410] sm:$0xff]   ;;  %v4922_v37 = vld [vmem:[#allocation2 + $0x9c] sm:$0xff] }
 0x261   : > { %v10072_v52 = vpop.f32.mrf.mxu1  ;;  %v10112_v6 = vpop.f32.mrf.mxu0  ;;  %10522 = vmatpush3.bf16.msra.mxu0 %v11077_v4  ;;  %v12366_v21 = vpack.c.bf16 %v4920_v48, %v4919_v47  ;;  %v5154_v59 = vld [vmem:[#allocation2 + $0xc8] sm:$0xff] }
 0x262   : > { %v12355_v56 = vadd.f32 %v3016_v10, %v2843_v11  ;;  %v2846_v44 = vadd.f32 %v10072_v52, %v12219_v45  ;;  %10484 = vmatpush3.bf16.msra.mxu1 %v11073_v62  ;;  %10523 = vmatprep.subr.bf16.mxu0 %v11079_v57 }
 0x263   : > { %v2791_v16 = vpop.f32.mrf.mxu1  ;;  %10485 = vmatprep.subr.bf16.mxu1 %v11075_v30  ;;  %v3035_v41 = vpop.f32.mrf.mxu0 }
 0x264   : > { %v12363_v61 = vadd.f32 %v10108_v60, %v2846_v44  ;;  %v2844_v10 = vadd.f32 %v2791_v16, %v12229_v15  ;;  %v4921_v60 = vld [vmem:[#allocation2 + $0x94] sm:$0xff] }
 0x265   : > { %v10075_v45 = vpop.f32.mrf.mxu1  ;;  %10430 = vmatmul.mubr.bf16.gmra.mxu1 %v12358_v35  ;;  %v10115_v13 = vpop.f32.mrf.mxu0  ;;  %10470 = vmatmul.mubr.bf16.gmra.mxu0 %v12114_v50  ;;  %v11080_v50 = vld [vmem:[%s13570_s3 + $0x408] sm:$0xff]   ;;  %v12387_v44 = vpack.c.bf16 %v4922_v37, %v4921_v60  ;;  %v4925_v60 = vld [vmem:[#allocation2 + $0xb4] sm:$0xff] }
 0x266   : > { %v12373_v62 = vadd.f32 %v3019_v24, %v2844_v10  ;;  %v2849_v33 = vadd.f32 %v10075_v45, %v12237_v7  ;;  %10433 = vmatprep.mubr.bf16.mxu1 %v12366_v21  ;;  %10486 = vmatpush3.bf16.msra.mxu1 %v11075_v30  ;;  %v5153_v7 = vld [vmem:[#allocation2 + $0xc0] sm:$0xff]  ;;  %v4924_v30 = vld [vmem:[#allocation2 + $0xac] sm:$0xff] }
 0x267   : > { %v2804_v15 = vpop.f32.mrf.mxu1  ;;  %10473 = vmatprep.mubr.bf16.mxu0 %v12134_v28  ;;  %10487 = vmatprep.subr.bf16.mxu1 %v11078_v18  ;;  %v3048_v4 = vpop.f32.mrf.mxu0  ;;  %v5364_v37 = vld [vmem:[#allocation2 + $0x39] sm:$0xff] }
 0x268   : > { %v12381_v3 = vadd.f32 %v10111_v54, %v2849_v33  ;;  %v2847_v24 = vadd.f32 %v2804_v15, %v12240_v0  ;;  %10524 = vmatpush3.bf16.msra.mxu0 %v11079_v57  ;;  %v4923_v54 = vld [vmem:[#allocation2 + $0xa4] sm:$0xff]  ;;  %v5164_v0 = vpack.c.bf16 %v5154_v59, %v5153_v7  ;;  %v11084_v15 = vld [vmem:[%s13570_s3 + $0x4b8] sm:$0xff]  }
 0x269   : > { %v10076_v11 = vpop.f32.mrf.mxu1  ;;  %v10116_v8 = vpop.f32.mrf.mxu0  ;;  %10525 = vmatprep.subr.bf16.mxu0 %v11081_v22  ;;  %v11082_v57 = vld [vmem:[%s13570_s3 + $0x400] sm:$0xff]  }
 0x26a   : > { %v12384_v52 = vadd.f32 %v3032_v2, %v2847_v24  ;;  %v2850_v28 = vadd.f32 %v10076_v11, %v12248_v32  ;;  %10488 = vmatpush3.bf16.msra.mxu1 %v11078_v18  ;;  %v12395_v2 = vpack.c.bf16 %v4924_v30, %v4923_v54  ;;  %v11083_v32 = vld [vmem:[%s13570_s3 + $0x440] sm:$0xff]  }
 0x26b   : > { %v2807_v48 = vpop.f32.mrf.mxu1  ;;  %v3051_v46 = vpop.f32.mrf.mxu0  ;;  %10489 = vmatprep.subr.bf16.mxu1 %v11080_v50  ;;  %v4926_v24 = vld [vmem:[#allocation2 + $0xbc] sm:$0xff] }
 0x26c   : > { %v12392_v16 = vadd.f32 %v10112_v6, %v2850_v28  ;;  %v2848_v47 = vadd.f32 %v2807_v48, %v12257_v25  ;;  %10526 = vmatpush3.bf16.msra.mxu0 %v11081_v22  ;;  %v11086_v25 = vld [vmem:[%s13570_s3 + $0x4f8] sm:$0xff]   ;;  %v12418_v30 = vpack.c.bf16 %v4926_v24, %v4925_v60  ;;  %v5365_v24 = vld [vmem:[#allocation2 + $0x41] sm:$0xff] }
 0x26d   : > { %v10079_v18 = vpop.f32.mrf.mxu1  ;;  %10434 = vmatmul.mubr.bf16.gmra.mxu1 %v12387_v44  ;;  %v10171_v10 = vpop.f32.mrf.mxu0  ;;  %10474 = vmatmul.mubr.bf16.gmra.mxu0 %v5164_v0 }
 0x26e   : > { %v12401_v45 = vadd.f32 %v3035_v41, %v2848_v47  ;;  %v2853_v33 = vadd.f32 %v10079_v18, %v12268_v43  ;;  %10437 = vmatprep.mubr.bf16.mxu1 %v12395_v2  ;;  %10490 = vmatpush3.bf16.msra.mxu1 %v11080_v50 }
 0x26f   : > { %v2820_v6 = vpop.f32.mrf.mxu1  ;;  %10529 = vmatprep.mubr.bf16.mxu0 %v12153_v27  ;;  %v3440_v22 = vpop.f32.mrf.mxu0  ;;  %10491 = vmatprep.subr.bf16.mxu1 %v11082_v57 }
 0x270   : > { %v12412_v41 = vadd.f32 %v10115_v13, %v2853_v33  ;;  %v2851_v43 = vadd.f32 %v2820_v6, %v12271_v63  ;;  %10527 = vmatprep.subr.bf16.mxu0 %v11083_v32  ;;  %v5363_v13 = vld [vmem:[#allocation2 + $0x31] sm:$0xff]  ;;  %v5366_v33 = vld [vmem:[#allocation2 + $0x49] sm:$0xff] }
 0x271   : > { %v10080_v50 = vpop.f32.mrf.mxu1  ;;  %v10172_v7 = vpop.f32.mrf.mxu0  ;;  %10528 = vmatpush3.bf16.msra.mxu0 %v11083_v32  ;;  %v5383_v54 = vpack.c.bf16 %v5364_v37, %v5363_v13  ;;  %v5367_v6 = vld [vmem:[#allocation2 + $0x51] sm:$0xff]  ;;  %v11092_v13 = vld [vmem:[%s13570_s3 + $0x4e0] sm:$0xff]  }
 0x272   : > { %v12415_v59 = vadd.f32 %v3048_v4, %v2851_v43  ;;  %v2854_v27 = vadd.f32 %v10080_v50, %v12276_v36  ;;  %10492 = vmatpush3.bf16.msra.mxu1 %v11082_v57  ;;  %10585 = vmatprep.subr.bf16.mxu0 %v11086_v25  ;;  %v11088_v4 = vld [vmem:[%s13570_s3 + $0x4f0] sm:$0xff]   ;;  %v5368_v43 = vld [vmem:[#allocation2 + $0x59] sm:$0xff] }
 0x273   : > { %v2823_v11 = vpop.f32.mrf.mxu1  ;;  %v3443_v28 = vpop.f32.mrf.mxu0  ;;  %10549 = vmatprep.subr.bf16.mxu1 %v11084_v15 }
 0x274   : > { %v12420_v63 = vadd.f32 %v10116_v8, %v2854_v27  ;;  %v2852_v48 = vadd.f32 %v2823_v11, %v12284_v20  ;;  %v12449_v11 = vpack.c.bf16 %v5368_v43, %v5367_v6  ;;  %v5371_v6 = vld [vmem:[#allocation2 + $0x71] sm:$0xff] }
 0x275   : > { %v10135_v0 = vpop.f32.mrf.mxu1  ;;  %10438 = vmatmul.mubr.bf16.gmra.mxu1 %v12418_v30  ;;  %v10175_v36 = vpop.f32.mrf.mxu0  ;;  %10530 = vmatmul.mubr.bf16.vlgmr.msra.gmra.mxu0 %v12161_v40  ;;  %v11090_v40 = vld [vmem:[%s13570_s3 + $0x4e8] sm:$0xff]  }
 0x276   : > { %v12428_v57 = vadd.f32 %v3051_v46, %v2852_v48  ;;  %v3293_v47 = vadd.f32 %v10135_v0, %v12288_v34  ;;  %10493 = vmatprep.mubr.bf16.mxu1 %v5383_v54  ;;  %10533 = vmatprep.mubr.bf16.mxu0 %v12182_v53 }
 0x277   : > { %v3212_v8 = vpop.f32.mrf.mxu1  ;;  %v3456_v20 = vpop.f32.mrf.mxu0  ;;  %10586 = vmatpush3.bf16.msra.mxu0 %v11086_v25 }
 0x278   : > { %v12432_v32 = vadd.f32 %v10171_v10, %v3293_v47  ;;  %v3291_v18 = vadd.f32 %v3212_v8, %v12294_v51  ;;  %10587 = vmatprep.subr.bf16.mxu0 %v11088_v4  ;;  %v12441_v10 = vpack.c.bf16 %v5366_v33, %v5365_v24  ;;  %v11085_v51 = vld [vmem:[%s13570_s3 + $0x4b0] sm:$0xff]  }
 0x279   : > { %v10136_v46 = vpop.f32.mrf.mxu1  ;;  %v10176_v34 = vpop.f32.mrf.mxu0 }
 0x27a   : > { %v12438_v60 = vadd.f32 %v3440_v22, %v3291_v18  ;;  %v3294_v53 = vadd.f32 %v10136_v46, %v12302_v1 }
 0x27b   : > { %v3215_v25 = vpop.f32.mrf.mxu1  ;;  %v3459_v50 = vpop.f32.mrf.mxu0  ;;  %10588 = vmatpush3.bf16.msra.mxu0 %v11088_v4 }
 0x27c   : > { %v12446_v37 = vadd.f32 %v10172_v7, %v3294_v53  ;;  %v3292_v27 = vadd.f32 %v3215_v25, %v12312_v14  ;;  %10589 = vmatprep.subr.bf16.mxu0 %v11090_v40 }
 0x27d   : > { %v10139_v22 = vpop.f32.mrf.mxu1  ;;  %10494 = vmatmul.mubr.bf16.vlgmr.msra.gmra.mxu1 %v12441_v10  ;;  %v10179_v1 = vpop.f32.mrf.mxu0  ;;  %10534 = vmatmul.mubr.bf16.gmra.mxu0 %v12190_v19  ;;  %v11087_v19 = vld [vmem:[%s13570_s3 + $0x4a8] sm:$0xff]  }
 0x27e   : > { %v12456_v48 = vadd.f32 %v3443_v28, %v3292_v27  ;;  %v3297_v7 = vadd.f32 %v10139_v22, %v12320_v26  ;;  %10497 = vmatprep.mubr.bf16.mxu1 %v12449_v11  ;;  %10550 = vmatpush3.bf16.msra.mxu1 %v11084_v15  ;;  %v5370_v28 = vld [vmem:[#allocation2 + $0x69] sm:$0xff]  ;;  %v5372_v26 = vld [vmem:[#allocation2 + $0x79] sm:$0xff] }
 0x27f   : > { %v3228_v14 = vpop.f32.mrf.mxu1  ;;  %10551 = vmatprep.subr.bf16.mxu1 %v11085_v51  ;;  %10537 = vmatprep.mubr.bf16.mxu0 %v12214_v12  ;;  %v3472_v54 = vpop.f32.mrf.mxu0  ;;  %v5369_v12 = vld [vmem:[#allocation2 + $0x61] sm:$0xff]  ;;  %v5374_v22 = vld [vmem:[#allocation2 + $0x89] sm:$0xff] }
 0x280   : > { %v12464_v4 = vadd.f32 %v10175_v36, %v3297_v7  ;;  %v3295_v0 = vadd.f32 %v3228_v14, %v12323_v31  ;;  %10590 = vmatpush3.bf16.msra.mxu0 %v11090_v40  ;;  %v12470_v46 = vpack.c.bf16 %v5370_v28, %v5369_v12  ;;  %v11089_v31 = vld [vmem:[%s13570_s3 + $0x4a0] sm:$0xff]   ;;  %v5375_v7 = vld [vmem:[#allocation2 + $0x91] sm:$0xff] }
 0x281   : > { %v10140_v47 = vpop.f32.mrf.mxu1  ;;  %v10180_v8 = vpop.f32.mrf.mxu0  ;;  %10591 = vmatprep.subr.bf16.mxu0 %v11092_v13  ;;  %v5376_v14 = vld [vmem:[#allocation2 + $0x99] sm:$0xff]  ;;  %v5373_v28 = vld [vmem:[#allocation2 + $0x81] sm:$0xff] }
 0x282   : > { %v12467_v15 = vadd.f32 %v3456_v20, %v3295_v0  ;;  %v3298_v18 = vadd.f32 %v10140_v47, %v12331_v17  ;;  %10552 = vmatpush3.bf16.msra.mxu1 %v11085_v51  ;;  %v12478_v20 = vpack.c.bf16 %v5372_v26, %v5371_v6  ;;  %v11093_v17 = vld [vmem:[%s13570_s3 + $0x4d8] sm:$0xff]   ;;  %v12502_v26 = vpack.c.bf16 %v5374_v22, %v5373_v28  ;;  %v11097_v6 = vld [vmem:[%s13570_s3 + $0x4c8] sm:$0xff]  }
 0x283   : > { %v3231_v33 = vpop.f32.mrf.mxu1  ;;  %10553 = vmatprep.subr.bf16.mxu1 %v11087_v19  ;;  %v3475_v36 = vpop.f32.mrf.mxu0 }
 0x284   : > { %v12475_v40 = vadd.f32 %v10176_v34, %v3298_v18  ;;  %v3296_v43 = vadd.f32 %v3231_v33, %v12341_v49  ;;  %10592 = vmatpush3.bf16.msra.mxu0 %v11092_v13  ;;  %v11095_v49 = vld [vmem:[%s13570_s3 + $0x4d0] sm:$0xff]  }
 0x285   : > { %v10143_v53 = vpop.f32.mrf.mxu1  ;;  %10498 = vmatmul.mubr.bf16.gmra.mxu1 %v12470_v46  ;;  %v10183_v24 = vpop.f32.mrf.mxu0  ;;  %10538 = vmatmul.mubr.bf16.gmra.mxu0 %v12222_v29  ;;  %v11091_v29 = vld [vmem:[%s13570_s3 + $0x498] sm:$0xff]  }
 0x286   : > { %v12485_v25 = vadd.f32 %v3459_v50, %v3296_v43  ;;  %v3301_v34 = vadd.f32 %v10143_v53, %v12352_v55  ;;  %10501 = vmatprep.mubr.bf16.mxu1 %v12478_v20  ;;  %10554 = vmatpush3.bf16.msra.mxu1 %v11087_v19 }
 0x287   : > { %v3244_v51 = vpop.f32.mrf.mxu1  ;;  %10555 = vmatprep.subr.bf16.mxu1 %v11089_v31  ;;  %10541 = vmatprep.mubr.bf16.mxu0 %v12243_v42  ;;  %v3488_v27 = vpop.f32.mrf.mxu0 }
 0x288   : > { %v12496_v50 = vadd.f32 %v10179_v1, %v3301_v34  ;;  %v3299_v55 = vadd.f32 %v3244_v51, %v12355_v56  ;;  %10593 = vmatprep.subr.bf16.mxu0 %v11093_v17  ;;  %v11094_v56 = vld [vmem:[%s13570_s3 + $0x490] sm:$0xff]   ;;  %v5609_v34 = vld [vmem:[#allocation2 + $0xc2] sm:$0xff] }
 0x289   : > { %v10144_v13 = vpop.f32.mrf.mxu1  ;;  %v10184_v19 = vpop.f32.mrf.mxu0  ;;  %10594 = vmatpush3.bf16.msra.mxu0 %v11093_v17 }
 0x28a   : > { %v12499_v0 = vadd.f32 %v3472_v54, %v3299_v55  ;;  %v3302_v42 = vadd.f32 %v10144_v13, %v12363_v61  ;;  %10556 = vmatpush3.bf16.msra.mxu1 %v11089_v31  ;;  %10595 = vmatprep.subr.bf16.mxu0 %v11095_v49  ;;  %v12510_v54 = vpack.c.bf16 %v5376_v14, %v5375_v7  ;;  %v5379_v55 = vld [vmem:[#allocation2 + $0xb1] sm:$0xff]  ;;  %v5377_v7 = vld [vmem:[#allocation2 + $0xa1] sm:$0xff] }
 0x28b   : > { %v3247_v47 = vpop.f32.mrf.mxu1  ;;  %10557 = vmatprep.subr.bf16.mxu1 %v11091_v29  ;;  %v3491_v1 = vpop.f32.mrf.mxu0 }
 0x28c   : > { %v12507_v18 = vadd.f32 %v10180_v8, %v3302_v42  ;;  %v3300_v12 = vadd.f32 %v3247_v47, %v12373_v62 }
 0x28d   : > { %v10147_v33 = vpop.f32.mrf.mxu1  ;;  %10502 = vmatmul.mubr.bf16.gmra.mxu1 %v12502_v26  ;;  %v10187_v61 = vpop.f32.mrf.mxu0  ;;  %10542 = vmatmul.mubr.bf16.gmra.mxu0 %v12251_v58  ;;  %v11096_v58 = vld [vmem:[%s13570_s3 + $0x488] sm:$0xff]  }
 0x28e   : > { %v12517_v31 = vadd.f32 %v3475_v36, %v3300_v12  ;;  %v3305_v43 = vadd.f32 %v10147_v33, %v12381_v3  ;;  %10505 = vmatprep.mubr.bf16.mxu1 %v12510_v54  ;;  %10558 = vmatpush3.bf16.msra.mxu1 %v11091_v29  ;;  %v5378_v36 = vld [vmem:[#allocation2 + $0xa9] sm:$0xff]  ;;  %v5380_v29 = vld [vmem:[#allocation2 + $0xb9] sm:$0xff] }
 0x28f   : > { %v3260_v62 = vpop.f32.mrf.mxu1  ;;  %10545 = vmatprep.mubr.bf16.mxu0 %v12274_v39  ;;  %10559 = vmatprep.subr.bf16.mxu1 %v11094_v56  ;;  %v3504_v8 = vpop.f32.mrf.mxu0  ;;  %v5610_v3 = vld [vmem:[#allocation2 + $0xca] sm:$0xff] }
 0x290   : > { %v12525_v17 = vadd.f32 %v10183_v24, %v3305_v43  ;;  %v3303_v53 = vadd.f32 %v3260_v62, %v12384_v52  ;;  %10596 = vmatpush3.bf16.msra.mxu0 %v11095_v49  ;;  %v12531_v24 = vpack.c.bf16 %v5378_v36, %v5377_v7  ;;  %v5620_v52 = vpack.c.bf16 %v5610_v3, %v5609_v34  ;;  %v11098_v49 = vld [vmem:[%s13570_s3 + $0x480] sm:$0xff]   ;;  %v11100_v62 = vld [vmem:[%s13570_s3 + $0x538] sm:$0xff]   ;;  %v5382_v36 = vld [vmem:[#allocation2 + $0xc9] sm:$0xff] }
 0x291   : > { %v10148_v51 = vpop.f32.mrf.mxu1  ;;  %v10188_v22 = vpop.f32.mrf.mxu0  ;;  %10597 = vmatprep.subr.bf16.mxu0 %v11097_v6  ;;  %v5820_v34 = vld [vmem:[#allocation2 + $0x3b] sm:$0xff] }
 0x292   : > { %v12528_v39 = vadd.f32 %v3488_v27, %v3303_v53  ;;  %v3306_v13 = vadd.f32 %v10148_v51, %v12392_v16  ;;  %10560 = vmatpush3.bf16.msra.mxu1 %v11094_v56  ;;  %v12539_v27 = vpack.c.bf16 %v5380_v29, %v5379_v55  ;;  %v11099_v16 = vld [vmem:[%s13570_s3 + $0x4c0] sm:$0xff]  }
 0x293   : > { %v3263_v14 = vpop.f32.mrf.mxu1  ;;  %v3507_v42 = vpop.f32.mrf.mxu0  ;;  %10561 = vmatprep.subr.bf16.mxu1 %v11096_v58  ;;  %v5381_v53 = vld [vmem:[#allocation2 + $0xc1] sm:$0xff] }
 0x294   : > { %v12536_v28 = vadd.f32 %v10184_v19, %v3306_v13  ;;  %v3304_v47 = vadd.f32 %v3263_v14, %v12401_v45  ;;  %10598 = vmatpush3.bf16.msra.mxu0 %v11097_v6  ;;  %v11102_v45 = vld [vmem:[%s13570_s3 + $0x578] sm:$0xff]   ;;  %v12562_v29 = vpack.c.bf16 %v5382_v36, %v5381_v53  ;;  %v5821_v36 = vld [vmem:[#allocation2 + $0x43] sm:$0xff] }
 0x295   : > { %v10151_v56 = vpop.f32.mrf.mxu1  ;;  %10506 = vmatmul.mubr.bf16.gmra.mxu1 %v12531_v24  ;;  %v10243_v12 = vpop.f32.mrf.mxu0  ;;  %10546 = vmatmul.mubr.bf16.gmra.mxu0 %v5620_v52 }
 0x296   : > { %v12545_v33 = vadd.f32 %v3491_v1, %v3304_v47  ;;  %v3309_v43 = vadd.f32 %v10151_v56, %v12412_v41  ;;  %10509 = vmatprep.mubr.bf16.mxu1 %v12539_v27  ;;  %10562 = vmatpush3.bf16.msra.mxu1 %v11096_v58 }
 0x297   : > { %v3276_v19 = vpop.f32.mrf.mxu1  ;;  %10601 = vmatprep.mubr.bf16.mxu0 %v12297_v9  ;;  %v3896_v6 = vpop.f32.mrf.mxu0  ;;  %10563 = vmatprep.subr.bf16.mxu1 %v11098_v49 }
 0x298   : > { %v12556_v1 = vadd.f32 %v10187_v61, %v3309_v43  ;;  %v3307_v41 = vadd.f32 %v3276_v19, %v12415_v59  ;;  %10599 = vmatprep.subr.bf16.mxu0 %v11099_v16  ;;  %v5819_v61 = vld [vmem:[#allocation2 + $0x33] sm:$0xff]  ;;  %v5822_v43 = vld [vmem:[#allocation2 + $0x4b] sm:$0xff] }
 0x299   : > { %v10152_v58 = vpop.f32.mrf.mxu1  ;;  %v10244_v3 = vpop.f32.mrf.mxu0  ;;  %10600 = vmatpush3.bf16.msra.mxu0 %v11099_v16  ;;  %v5839_v14 = vpack.c.bf16 %v5820_v34, %v5819_v61  ;;  %v5823_v19 = vld [vmem:[#allocation2 + $0x53] sm:$0xff]  ;;  %v11108_v61 = vld [vmem:[%s13570_s3 + $0x560] sm:$0xff]  }
 0x29a   : > { %v12559_v51 = vadd.f32 %v3504_v8, %v3307_v41  ;;  %v3310_v9 = vadd.f32 %v10152_v58, %v12420_v63  ;;  %10564 = vmatpush3.bf16.msra.mxu1 %v11098_v49  ;;  %10657 = vmatprep.subr.bf16.mxu0 %v11102_v45  ;;  %v11104_v8 = vld [vmem:[%s13570_s3 + $0x570] sm:$0xff]   ;;  %v5824_v41 = vld [vmem:[#allocation2 + $0x5b] sm:$0xff] }
 0x29b   : > { %v3279_v55 = vpop.f32.mrf.mxu1  ;;  %v3899_v13 = vpop.f32.mrf.mxu0  ;;  %10621 = vmatprep.subr.bf16.mxu1 %v11100_v62 }
 0x29c   : > { %v12564_v59 = vadd.f32 %v10188_v22, %v3310_v9  ;;  %v3308_v7 = vadd.f32 %v3279_v55, %v12428_v57  ;;  %v12593_v55 = vpack.c.bf16 %v5824_v41, %v5823_v19  ;;  %v5827_v19 = vld [vmem:[#allocation2 + $0x73] sm:$0xff] }
 0x29d   : > { %v10207_v52 = vpop.f32.mrf.mxu1  ;;  %10510 = vmatmul.mubr.bf16.gmra.mxu1 %v12562_v29  ;;  %v10247_v63 = vpop.f32.mrf.mxu0  ;;  %10602 = vmatmul.mubr.bf16.vlgmr.msra.gmra.mxu0 %v12305_v38  ;;  %v11106_v38 = vld [vmem:[%s13570_s3 + $0x568] sm:$0xff]  }
 0x29e   : > { %v12572_v49 = vadd.f32 %v3507_v42, %v3308_v7  ;;  %v3749_v47 = vadd.f32 %v10207_v52, %v12432_v32  ;;  %10565 = vmatprep.mubr.bf16.mxu1 %v5839_v14  ;;  %10605 = vmatprep.mubr.bf16.mxu0 %v12326_v23 }
 0x29f   : > { %v3668_v22 = vpop.f32.mrf.mxu1  ;;  %v3912_v57 = vpop.f32.mrf.mxu0  ;;  %10658 = vmatpush3.bf16.msra.mxu0 %v11102_v45 }
 0x2a0   : > { %v12576_v16 = vadd.f32 %v10243_v12, %v3749_v47  ;;  %v3747_v56 = vadd.f32 %v3668_v22, %v12438_v60  ;;  %10659 = vmatprep.subr.bf16.mxu0 %v11104_v8  ;;  %v12585_v12 = vpack.c.bf16 %v5822_v43, %v5821_v36  ;;  %v11101_v60 = vld [vmem:[%s13570_s3 + $0x530] sm:$0xff]  }
 0x2a1   : > { %v10208_v42 = vpop.f32.mrf.mxu1  ;;  %v10248_v32 = vpop.f32.mrf.mxu0 }
 0x2a2   : > { %v12582_v53 = vadd.f32 %v3896_v6, %v3747_v56  ;;  %v3750_v23 = vadd.f32 %v10208_v42, %v12446_v37 }
 0x2a3   : > { %v3671_v45 = vpop.f32.mrf.mxu1  ;;  %v3915_v58 = vpop.f32.mrf.mxu0  ;;  %10660 = vmatpush3.bf16.msra.mxu0 %v11104_v8 }
 0x2a4   : > { %v12590_v34 = vadd.f32 %v10244_v3, %v3750_v23  ;;  %v3748_v9 = vadd.f32 %v3671_v45, %v12456_v48  ;;  %10661 = vmatprep.subr.bf16.mxu0 %v11106_v38 }
 0x2a5   : > { %v10211_v6 = vpop.f32.mrf.mxu1  ;;  %10566 = vmatmul.mubr.bf16.vlgmr.msra.gmra.mxu1 %v12585_v12  ;;  %v10251_v37 = vpop.f32.mrf.mxu0  ;;  %10606 = vmatmul.mubr.bf16.gmra.mxu0 %v12334_v5  ;;  %v11103_v5 = vld [vmem:[%s13570_s3 + $0x528] sm:$0xff]  }
 0x2a6   : > { %v12600_v7 = vadd.f32 %v3899_v13, %v3748_v9  ;;  %v3753_v3 = vadd.f32 %v10211_v6, %v12464_v4  ;;  %10569 = vmatprep.mubr.bf16.mxu1 %v12593_v55  ;;  %10622 = vmatpush3.bf16.msra.mxu1 %v11100_v62  ;;  %v5826_v13 = vld [vmem:[#allocation2 + $0x6b] sm:$0xff]  ;;  %v5828_v4 = vld [vmem:[#allocation2 + $0x7b] sm:$0xff] }
 0x2a7   : > { %v3684_v48 = vpop.f32.mrf.mxu1  ;;  %10623 = vmatprep.subr.bf16.mxu1 %v11101_v60  ;;  %10609 = vmatprep.mubr.bf16.mxu0 %v12358_v35  ;;  %v3928_v14 = vpop.f32.mrf.mxu0  ;;  %v5825_v35 = vld [vmem:[#allocation2 + $0x63] sm:$0xff]  ;;  %v5830_v6 = vld [vmem:[#allocation2 + $0x8b] sm:$0xff] }
 0x2a8   : > { %v12608_v8 = vadd.f32 %v10247_v63, %v3753_v3  ;;  %v3751_v52 = vadd.f32 %v3684_v48, %v12467_v15  ;;  %10662 = vmatpush3.bf16.msra.mxu0 %v11106_v38  ;;  %v12614_v42 = vpack.c.bf16 %v5826_v13, %v5825_v35  ;;  %v11105_v15 = vld [vmem:[%s13570_s3 + $0x520] sm:$0xff]   ;;  %v5831_v3 = vld [vmem:[#allocation2 + $0x93] sm:$0xff] }
 0x2a9   : > { %v10212_v47 = vpop.f32.mrf.mxu1  ;;  %v10252_v22 = vpop.f32.mrf.mxu0  ;;  %10663 = vmatprep.subr.bf16.mxu0 %v11108_v61  ;;  %v5832_v48 = vld [vmem:[#allocation2 + $0x9b] sm:$0xff]  ;;  %v5829_v13 = vld [vmem:[#allocation2 + $0x83] sm:$0xff] }
 0x2aa   : > { %v12611_v62 = vadd.f32 %v3912_v57, %v3751_v52  ;;  %v3754_v56 = vadd.f32 %v10212_v47, %v12475_v40  ;;  %10624 = vmatpush3.bf16.msra.mxu1 %v11101_v60  ;;  %v12622_v57 = vpack.c.bf16 %v5828_v4, %v5827_v19  ;;  %v11109_v40 = vld [vmem:[%s13570_s3 + $0x558] sm:$0xff]   ;;  %v12646_v4 = vpack.c.bf16 %v5830_v6, %v5829_v13  ;;  %v11113_v19 = vld [vmem:[%s13570_s3 + $0x548] sm:$0xff]  }
 0x2ab   : > { %v3687_v43 = vpop.f32.mrf.mxu1  ;;  %10625 = vmatprep.subr.bf16.mxu1 %v11103_v5  ;;  %v3931_v63 = vpop.f32.mrf.mxu0 }
 0x2ac   : > { %v12619_v38 = vadd.f32 %v10248_v32, %v3754_v56  ;;  %v3752_v41 = vadd.f32 %v3687_v43, %v12485_v25  ;;  %10664 = vmatpush3.bf16.msra.mxu0 %v11108_v61  ;;  %v11111_v25 = vld [vmem:[%s13570_s3 + $0x550] sm:$0xff]  }
 0x2ad   : > { %v10215_v23 = vpop.f32.mrf.mxu1  ;;  %10570 = vmatmul.mubr.bf16.gmra.mxu1 %v12614_v42  ;;  %v10255_v36 = vpop.f32.mrf.mxu0  ;;  %10610 = vmatmul.mubr.bf16.gmra.mxu0 %v12366_v21  ;;  %v11107_v21 = vld [vmem:[%s13570_s3 + $0x518] sm:$0xff]  }
 0x2ae   : > { %v12629_v45 = vadd.f32 %v3915_v58, %v3752_v41  ;;  %v3757_v32 = vadd.f32 %v10215_v23, %v12496_v50  ;;  %10573 = vmatprep.mubr.bf16.mxu1 %v12622_v57  ;;  %10626 = vmatpush3.bf16.msra.mxu1 %v11103_v5 }
 0x2af   : > { %v3700_v60 = vpop.f32.mrf.mxu1  ;;  %10627 = vmatprep.subr.bf16.mxu1 %v11105_v15  ;;  %10613 = vmatprep.mubr.bf16.mxu0 %v12387_v44  ;;  %v3944_v9 = vpop.f32.mrf.mxu0 }
 0x2b0   : > { %v12640_v58 = vadd.f32 %v10251_v37, %v3757_v32  ;;  %v3755_v50 = vadd.f32 %v3700_v60, %v12499_v0  ;;  %10665 = vmatprep.subr.bf16.mxu0 %v11109_v40  ;;  %v11110_v0 = vld [vmem:[%s13570_s3 + $0x510] sm:$0xff]   ;;  %v6065_v32 = vld [vmem:[#allocation2 + $0xc4] sm:$0xff] }
 0x2b1   : > { %v10216_v61 = vpop.f32.mrf.mxu1  ;;  %v10256_v5 = vpop.f32.mrf.mxu0  ;;  %10666 = vmatpush3.bf16.msra.mxu0 %v11109_v40 }
 0x2b2   : > { %v12643_v52 = vadd.f32 %v3928_v14, %v3755_v50  ;;  %v3758_v44 = vadd.f32 %v10216_v61, %v12507_v18  ;;  %10628 = vmatpush3.bf16.msra.mxu1 %v11105_v15  ;;  %10667 = vmatprep.subr.bf16.mxu0 %v11111_v25  ;;  %v12654_v14 = vpack.c.bf16 %v5832_v48, %v5831_v3  ;;  %v5835_v50 = vld [vmem:[#allocation2 + $0xb3] sm:$0xff]  ;;  %v5833_v3 = vld [vmem:[#allocation2 + $0xa3] sm:$0xff] }
 0x2b3   : > { %v3703_v47 = vpop.f32.mrf.mxu1  ;;  %10629 = vmatprep.subr.bf16.mxu1 %v11107_v21  ;;  %v3947_v37 = vpop.f32.mrf.mxu0 }
 0x2b4   : > { %v12651_v56 = vadd.f32 %v10252_v22, %v3758_v44  ;;  %v3756_v35 = vadd.f32 %v3703_v47, %v12517_v31 }
 0x2b5   : > { %v10219_v43 = vpop.f32.mrf.mxu1  ;;  %10574 = vmatmul.mubr.bf16.gmra.mxu1 %v12646_v4  ;;  %v10259_v18 = vpop.f32.mrf.mxu0  ;;  %10614 = vmatmul.mubr.bf16.gmra.mxu0 %v12395_v2  ;;  %v11112_v2 = vld [vmem:[%s13570_s3 + $0x508] sm:$0xff]  }
 0x2b6   : > { %v12661_v15 = vadd.f32 %v3931_v63, %v3756_v35  ;;  %v3761_v41 = vadd.f32 %v10219_v43, %v12525_v17  ;;  %10577 = vmatprep.mubr.bf16.mxu1 %v12654_v14  ;;  %10630 = vmatpush3.bf16.msra.mxu1 %v11107_v21  ;;  %v5834_v63 = vld [vmem:[#allocation2 + $0xab] sm:$0xff]  ;;  %v5836_v21 = vld [vmem:[#allocation2 + $0xbb] sm:$0xff] }
 0x2b7   : > { %v3716_v31 = vpop.f32.mrf.mxu1  ;;  %10617 = vmatprep.mubr.bf16.mxu0 %v12418_v30  ;;  %10631 = vmatprep.subr.bf16.mxu1 %v11110_v0  ;;  %v3960_v22 = vpop.f32.mrf.mxu0  ;;  %v6066_v17 = vld [vmem:[#allocation2 + $0xcc] sm:$0xff] }
 0x2b8   : > { %v12669_v40 = vadd.f32 %v10255_v36, %v3761_v41  ;;  %v3759_v23 = vadd.f32 %v3716_v31, %v12528_v39  ;;  %10668 = vmatpush3.bf16.msra.mxu0 %v11111_v25  ;;  %v12675_v36 = vpack.c.bf16 %v5834_v63, %v5833_v3  ;;  %v6076_v39 = vpack.c.bf16 %v6066_v17, %v6065_v32  ;;  %v11114_v25 = vld [vmem:[%s13570_s3 + $0x500] sm:$0xff]   ;;  %v11116_v31 = vld [vmem:[%s13570_s3 + $0x5b8] sm:$0xff]   ;;  %v5838_v63 = vld [vmem:[#allocation2 + $0xcb] sm:$0xff] }
 0x2b9   : > { %v10220_v60 = vpop.f32.mrf.mxu1  ;;  %v10260_v6 = vpop.f32.mrf.mxu0  ;;  %10669 = vmatprep.subr.bf16.mxu0 %v11113_v19  ;;  %v6276_v32 = vld [vmem:[#allocation2 + $0x48] sm:$0xff] }
 0x2ba   : > { %v12672_v30 = vadd.f32 %v3944_v9, %v3759_v23  ;;  %v3762_v61 = vadd.f32 %v10220_v60, %v12536_v28  ;;  %10632 = vmatpush3.bf16.msra.mxu1 %v11110_v0  ;;  %v12683_v9 = vpack.c.bf16 %v5836_v21, %v5835_v50  ;;  %v11115_v28 = vld [vmem:[%s13570_s3 + $0x540] sm:$0xff]  }
 0x2bb   : > { %v3719_v48 = vpop.f32.mrf.mxu1  ;;  %v3963_v44 = vpop.f32.mrf.mxu0  ;;  %10633 = vmatprep.subr.bf16.mxu1 %v11112_v2  ;;  %v5837_v23 = vld [vmem:[#allocation2 + $0xc3] sm:$0xff] }
 0x2bc   : > { %v12680_v13 = vadd.f32 %v10256_v5, %v3762_v61  ;;  %v3760_v47 = vadd.f32 %v3719_v48, %v12545_v33  ;;  %10670 = vmatpush3.bf16.msra.mxu0 %v11113_v19  ;;  %v11118_v33 = vld [vmem:[%s13570_s3 + $0x5f8] sm:$0xff]   ;;  %v12706_v21 = vpack.c.bf16 %v5838_v63, %v5837_v23  ;;  %v6277_v63 = vld [vmem:[#allocation2 + $0x50] sm:$0xff] }
 0x2bd   : > { %v10223_v0 = vpop.f32.mrf.mxu1  ;;  %10578 = vmatmul.mubr.bf16.gmra.mxu1 %v12675_v36  ;;  %v10315_v35 = vpop.f32.mrf.mxu0  ;;  %10618 = vmatmul.mubr.bf16.gmra.mxu0 %v6076_v39 }
 0x2be   : > { %v12689_v43 = vadd.f32 %v3947_v37, %v3760_v47  ;;  %v3765_v41 = vadd.f32 %v10223_v0, %v12556_v1  ;;  %10581 = vmatprep.mubr.bf16.mxu1 %v12683_v9  ;;  %10634 = vmatpush3.bf16.msra.mxu1 %v11112_v2 }
 0x2bf   : > { %v3732_v5 = vpop.f32.mrf.mxu1  ;;  %10673 = vmatprep.mubr.bf16.mxu0 %v12441_v10  ;;  %v4352_v19 = vpop.f32.mrf.mxu0  ;;  %10635 = vmatprep.subr.bf16.mxu1 %v11114_v25 }
 0x2c0   : > { %v12700_v37 = vadd.f32 %v10259_v18, %v3765_v41  ;;  %v3763_v1 = vadd.f32 %v3732_v5, %v12559_v51  ;;  %10671 = vmatprep.subr.bf16.mxu0 %v11115_v28  ;;  %v6275_v18 = vld [vmem:[#allocation2 + $0x40] sm:$0xff]  ;;  %v6278_v41 = vld [vmem:[#allocation2 + $0x58] sm:$0xff] }
 0x2c1   : > { %v10224_v2 = vpop.f32.mrf.mxu1  ;;  %v10316_v17 = vpop.f32.mrf.mxu0  ;;  %10672 = vmatpush3.bf16.msra.mxu0 %v11115_v28  ;;  %v6295_v48 = vpack.c.bf16 %v6276_v32, %v6275_v18  ;;  %v6279_v5 = vld [vmem:[#allocation2 + $0x60] sm:$0xff] }
 0x2c2   : > { %v12703_v60 = vadd.f32 %v3960_v22, %v3763_v1  ;;  %v3766_v10 = vadd.f32 %v10224_v2, %v12564_v59  ;;  %10636 = vmatpush3.bf16.msra.mxu1 %v11114_v25  ;;  %10729 = vmatprep.subr.bf16.mxu0 %v11118_v33  ;;  %v11120_v22 = vld [vmem:[%s13570_s3 + $0x5f0] sm:$0xff]   ;;  %v6280_v1 = vld [vmem:[#allocation2 + $0x68] sm:$0xff] }
 0x2c3   : > { %v3735_v50 = vpop.f32.mrf.mxu1  ;;  %v4355_v61 = vpop.f32.mrf.mxu0  ;;  %10693 = vmatprep.subr.bf16.mxu1 %v11116_v31 }
 0x2c4   : > { %v12708_v51 = vadd.f32 %v10260_v6, %v3766_v10  ;;  %v3764_v3 = vadd.f32 %v3735_v50, %v12572_v49  ;;  %v6297_v50 = vpack.c.bf16 %v6280_v1, %v6279_v5  ;;  %v6283_v5 = vld [vmem:[#allocation2 + $0x80] sm:$0xff] }
 0x2c5   : > { %v10279_v39 = vpop.f32.mrf.mxu1  ;;  %10582 = vmatmul.mubr.bf16.gmra.mxu1 %v12706_v21  ;;  %v10319_v59 = vpop.f32.mrf.mxu0  ;;  %10674 = vmatmul.mubr.bf16.vlgmr.msra.gmra.mxu0 %v12449_v11  ;;  %v11122_v11 = vld [vmem:[%s13570_s3 + $0x5e8] sm:$0xff]  }
 0x2c6   : > { %v12716_v25 = vadd.f32 %v3963_v44, %v3764_v3  ;;  %v4205_v47 = vadd.f32 %v10279_v39, %v12576_v16  ;;  %10637 = vmatprep.mubr.bf16.mxu1 %v6295_v48  ;;  %10677 = vmatprep.mubr.bf16.mxu0 %v12470_v46 }
 0x2c7   : > { %v4124_v6 = vpop.f32.mrf.mxu1  ;;  %v4368_v49 = vpop.f32.mrf.mxu0  ;;  %10730 = vmatpush3.bf16.msra.mxu0 %v11118_v33 }
 0x2c8   : > { %v12720_v28 = vadd.f32 %v10315_v35, %v4205_v47  ;;  %v4203_v0 = vadd.f32 %v4124_v6, %v12582_v53  ;;  %10731 = vmatprep.subr.bf16.mxu0 %v11120_v22  ;;  %v6296_v35 = vpack.c.bf16 %v6278_v41, %v6277_v63  ;;  %v11117_v53 = vld [vmem:[%s13570_s3 + $0x5b0] sm:$0xff]  }
 0x2c9   : > { %v10280_v44 = vpop.f32.mrf.mxu1  ;;  %v10320_v16 = vpop.f32.mrf.mxu0  ;;  %v6281_v47 = vld [vmem:[#allocation2 + $0x70] sm:$0xff] }
 0x2ca   : > { %v12726_v23 = vadd.f32 %v4352_v19, %v4203_v0  ;;  %v4206_v46 = vadd.f32 %v10280_v44, %v12590_v34  ;;  %v11124_v34 = vld [vmem:[%s13570_s3 + $0x5e0] sm:$0xff]  }
 0x2cb   : > { %v4127_v33 = vpop.f32.mrf.mxu1  ;;  %v4371_v2 = vpop.f32.mrf.mxu0  ;;  %10732 = vmatpush3.bf16.msra.mxu0 %v11120_v22  ;;  %v11119_v22 = vld [vmem:[%s13570_s3 + $0x5a8] sm:$0xff]  }
 0x2cc   : > { %v12732_v32 = vadd.f32 %v10316_v17, %v4206_v46  ;;  %v4204_v10 = vadd.f32 %v4127_v33, %v12600_v7  ;;  %10733 = vmatprep.subr.bf16.mxu0 %v11122_v11 }
 0x2cd   : > { %v10283_v18 = vpop.f32.mrf.mxu1  ;;  %10638 = vmatmul.mubr.bf16.vlgmr.msra.gmra.mxu1 %v6296_v35  ;;  %v10323_v19 = vpop.f32.mrf.mxu0  ;;  %10678 = vmatmul.mubr.bf16.gmra.mxu0 %v12478_v20 }
 0x2ce   : > { %v12739_v3 = vadd.f32 %v4355_v61, %v4204_v10  ;;  %v4209_v48 = vadd.f32 %v10283_v18, %v12608_v8  ;;  %10641 = vmatprep.mubr.bf16.mxu1 %v6297_v50  ;;  %10694 = vmatpush3.bf16.msra.mxu1 %v11116_v31  ;;  %v6282_v61 = vld [vmem:[#allocation2 + $0x78] sm:$0xff]  ;;  %v6284_v8 = vld [vmem:[#allocation2 + $0x88] sm:$0xff]  ;;  %v6287_v18 = vld [vmem:[#allocation2 + $0xa0] sm:$0xff] }
 0x2cf   : > { %v4140_v17 = vpop.f32.mrf.mxu1  ;;  %10695 = vmatprep.subr.bf16.mxu1 %v11117_v53  ;;  %10681 = vmatprep.mubr.bf16.mxu0 %v12502_v26  ;;  %v4384_v7 = vpop.f32.mrf.mxu0  ;;  %v6298_v44 = vpack.c.bf16 %v6282_v61, %v6281_v47  ;;  %v6299_v46 = vpack.c.bf16 %v6284_v8, %v6283_v5  ;;  %v11123_v10 = vld [vmem:[%s13570_s3 + $0x598] sm:$0xff]   ;;  %v6289_v5 = vld [vmem:[#allocation2 + $0xb0] sm:$0xff] }
 0x2d0   : > { %v12746_v20 = vadd.f32 %v10319_v59, %v4209_v48  ;;  %v4207_v39 = vadd.f32 %v4140_v17, %v12611_v62  ;;  %10734 = vmatpush3.bf16.msra.mxu0 %v11122_v11  ;;  %v11121_v62 = vld [vmem:[%s13570_s3 + $0x5a0] sm:$0xff]  }
 0x2d1   : > { %v10284_v6 = vpop.f32.mrf.mxu1  ;;  %v10324_v0 = vpop.f32.mrf.mxu0  ;;  %10735 = vmatprep.subr.bf16.mxu0 %v11124_v34 }
 0x2d2   : > { %v12749_v31 = vadd.f32 %v4368_v49, %v4207_v39  ;;  %v4210_v26 = vadd.f32 %v10284_v6, %v12619_v38  ;;  %10696 = vmatpush3.bf16.msra.mxu1 %v11117_v53  ;;  %v11125_v38 = vld [vmem:[%s13570_s3 + $0x5d8] sm:$0xff]  }
 0x2d3   : > { %v4143_v41 = vpop.f32.mrf.mxu1  ;;  %10697 = vmatprep.subr.bf16.mxu1 %v11119_v22  ;;  %v4387_v59 = vpop.f32.mrf.mxu0 }
 0x2d4   : > { %v12755_v1 = vadd.f32 %v10320_v16, %v4210_v26  ;;  %v4208_v11 = vadd.f32 %v4143_v41, %v12629_v45  ;;  %10736 = vmatpush3.bf16.msra.mxu0 %v11124_v34  ;;  %v11127_v45 = vld [vmem:[%s13570_s3 + $0x5d0] sm:$0xff]   ;;  %v6288_v34 = vld [vmem:[#allocation2 + $0xa8] sm:$0xff] }
 0x2d5   : > { %v10287_v49 = vpop.f32.mrf.mxu1  ;;  %10642 = vmatmul.mubr.bf16.gmra.mxu1 %v6298_v44  ;;  %v10327_v63 = vpop.f32.mrf.mxu0  ;;  %10682 = vmatmul.mubr.bf16.gmra.mxu0 %v12510_v54  ;;  %v6301_v8 = vpack.c.bf16 %v6288_v34, %v6287_v18 }
 0x2d6   : > { %v12762_v33 = vadd.f32 %v4371_v2, %v4208_v11  ;;  %v4213_v35 = vadd.f32 %v10287_v49, %v12640_v58  ;;  %10645 = vmatprep.mubr.bf16.mxu1 %v6299_v46  ;;  %10698 = vmatpush3.bf16.msra.mxu1 %v11119_v22  ;;  %v6286_v58 = vld [vmem:[#allocation2 + $0x98] sm:$0xff]  ;;  %v6285_v22 = vld [vmem:[#allocation2 + $0x90] sm:$0xff]  ;;  %v6291_v49 = vld [vmem:[#allocation2 + $0xc0] sm:$0xff] }
 0x2d7   : > { %v4156_v16 = vpop.f32.mrf.mxu1  ;;  %10699 = vmatprep.subr.bf16.mxu1 %v11121_v62  ;;  %10685 = vmatprep.mubr.bf16.mxu0 %v12531_v24  ;;  %v4400_v53 = vpop.f32.mrf.mxu0  ;;  %v6300_v47 = vpack.c.bf16 %v6286_v58, %v6285_v22  ;;  %v6521_v46 = vld [vmem:[#allocation2 + $0xd1] sm:$0xff] }
 0x2d8   : > { %v12772_v54 = vadd.f32 %v10323_v19, %v4213_v35  ;;  %v4211_v2 = vadd.f32 %v4156_v16, %v12643_v52  ;;  %10737 = vmatprep.subr.bf16.mxu0 %v11125_v38  ;;  %v11126_v52 = vld [vmem:[%s13570_s3 + $0x590] sm:$0xff]   ;;  %v6292_v35 = vld [vmem:[#allocation2 + $0xc8] sm:$0xff] }
 0x2d9   : > { %v10288_v50 = vpop.f32.mrf.mxu1  ;;  %v10328_v48 = vpop.f32.mrf.mxu0  ;;  %10738 = vmatpush3.bf16.msra.mxu0 %v11125_v38  ;;  %v6303_v34 = vpack.c.bf16 %v6292_v35, %v6291_v49 }
 0x2da   : > { %v12775_v17 = vadd.f32 %v4384_v7, %v4211_v2  ;;  %v4214_v24 = vadd.f32 %v10288_v50, %v12651_v56  ;;  %10700 = vmatpush3.bf16.msra.mxu1 %v11121_v62  ;;  %10739 = vmatprep.subr.bf16.mxu0 %v11127_v45  ;;  %v11129_v56 = vld [vmem:[%s13570_s3 + $0x5c8] sm:$0xff]  }
 0x2db   : > { %v4159_v39 = vpop.f32.mrf.mxu1  ;;  %10701 = vmatprep.subr.bf16.mxu1 %v11123_v10  ;;  %v4403_v19 = vpop.f32.mrf.mxu0 }
 0x2dc   : > { %v12781_v61 = vadd.f32 %v10324_v0, %v4214_v24  ;;  %v4212_v6 = vadd.f32 %v4159_v39, %v12661_v15 }
 0x2dd   : > { %v10291_v7 = vpop.f32.mrf.mxu1  ;;  %10646 = vmatmul.mubr.bf16.gmra.mxu1 %v6300_v47  ;;  %v10331_v26 = vpop.f32.mrf.mxu0  ;;  %10686 = vmatmul.mubr.bf16.gmra.mxu0 %v12539_v27  ;;  %v11128_v27 = vld [vmem:[%s13570_s3 + $0x588] sm:$0xff]   ;;  %v11132_v47 = vld [vmem:[%s13570_s3 + $0x638] sm:$0xff]  }
 0x2de   : > { %v12788_v41 = vadd.f32 %v4387_v59, %v4212_v6  ;;  %v4217_v44 = vadd.f32 %v10291_v7, %v12669_v40  ;;  %10649 = vmatprep.mubr.bf16.mxu1 %v6301_v8  ;;  %10702 = vmatpush3.bf16.msra.mxu1 %v11123_v10  ;;  %v6290_v59 = vld [vmem:[#allocation2 + $0xb8] sm:$0xff]  ;;  %v6293_v8 = vld [vmem:[#allocation2 + $0xd0] sm:$0xff] }
 0x2df   : > { %v4172_v0 = vpop.f32.mrf.mxu1  ;;  %10689 = vmatprep.mubr.bf16.mxu0 %v12562_v29  ;;  %10703 = vmatprep.subr.bf16.mxu1 %v11126_v52  ;;  %v4416_v15 = vpop.f32.mrf.mxu0  ;;  %v6522_v40 = vld [vmem:[#allocation2 + $0xd9] sm:$0xff]  ;;  %v6302_v58 = vpack.c.bf16 %v6290_v59, %v6289_v5 }
 0x2e0   : > { %v12795_v62 = vadd.f32 %v10327_v63, %v4217_v44  ;;  %v4215_v11 = vadd.f32 %v4172_v0, %v12672_v30  ;;  %10740 = vmatpush3.bf16.msra.mxu0 %v11127_v45  ;;  %v6532_v50 = vpack.c.bf16 %v6522_v40, %v6521_v46  ;;  %v11130_v30 = vld [vmem:[%s13570_s3 + $0x580] sm:$0xff]  }
 0x2e1   : > { %v10292_v38 = vpop.f32.mrf.mxu1  ;;  %v10332_v16 = vpop.f32.mrf.mxu0  ;;  %10741 = vmatprep.subr.bf16.mxu0 %v11129_v56 }
 0x2e2   : > { %v12798_v29 = vadd.f32 %v4400_v53, %v4215_v11  ;;  %v4218_v10 = vadd.f32 %v10292_v38, %v12680_v13  ;;  %10704 = vmatpush3.bf16.msra.mxu1 %v11126_v52  ;;  %v11131_v13 = vld [vmem:[%s13570_s3 + $0x5c0] sm:$0xff]  }
 0x2e3   : > { %v4175_v2 = vpop.f32.mrf.mxu1  ;;  %v4419_v63 = vpop.f32.mrf.mxu0  ;;  %10705 = vmatprep.subr.bf16.mxu1 %v11128_v27 }
 0x2e4   : > { %v12804_v45 = vadd.f32 %v10328_v48, %v4218_v10  ;;  %v4216_v18 = vadd.f32 %v4175_v2, %v12689_v43  ;;  %10742 = vmatpush3.bf16.msra.mxu0 %v11129_v56  ;;  %v6734_v10 = vld [vmem:[#allocation2 + $0x5a] sm:$0xff] }
 0x2e5   : > { %v10295_v53 = vpop.f32.mrf.mxu1  ;;  %10650 = vmatmul.mubr.bf16.gmra.mxu1 %v6302_v58  ;;  %v10387_v24 = vpop.f32.mrf.mxu0  ;;  %10690 = vmatmul.mubr.bf16.gmra.mxu0 %v6532_v50  ;;  %v6736_v58 = vld [vmem:[#allocation2 + $0x6a] sm:$0xff] }
 0x2e6   : > { %v12810_v22 = vadd.f32 %v4403_v19, %v4216_v18  ;;  %v4221_v39 = vadd.f32 %v10295_v53, %v12700_v37  ;;  %10653 = vmatprep.mubr.bf16.mxu1 %v6303_v34  ;;  %10706 = vmatpush3.bf16.msra.mxu1 %v11128_v27  ;;  %v6294_v19 = vld [vmem:[#allocation2 + $0xd8] sm:$0xff]  ;;  %v6732_v37 = vld [vmem:[#allocation2 + $0x4a] sm:$0xff]  ;;  %v6731_v27 = vld [vmem:[#allocation2 + $0x42] sm:$0xff] }
 0x2e7   : > { %v4188_v48 = vpop.f32.mrf.mxu1  ;;  %10745 = vmatprep.mubr.bf16.mxu0 %v12585_v12  ;;  %v4808_v43 = vpop.f32.mrf.mxu0  ;;  %10707 = vmatprep.subr.bf16.mxu1 %v11130_v30  ;;  %v6304_v5 = vpack.c.bf16 %v6294_v19, %v6293_v8  ;;  %v6751_v59 = vpack.c.bf16 %v6732_v37, %v6731_v27  ;;  %v6735_v18 = vld [vmem:[#allocation2 + $0x62] sm:$0xff]  ;;  %v6740_v37 = vld [vmem:[#allocation2 + $0x8a] sm:$0xff] }
 0x2e8   : > { %v12817_v52 = vadd.f32 %v10331_v26, %v4221_v39  ;;  %v4219_v6 = vadd.f32 %v4188_v48, %v12703_v60  ;;  %10743 = vmatprep.subr.bf16.mxu0 %v11131_v13  ;;  %v6753_v53 = vpack.c.bf16 %v6736_v58, %v6735_v18  ;;  %v6744_v58 = vld [vmem:[#allocation2 + $0xaa] sm:$0xff] }
 0x2e9   : > { %v10296_v7 = vpop.f32.mrf.mxu1  ;;  %v10388_v56 = vpop.f32.mrf.mxu0  ;;  %10744 = vmatpush3.bf16.msra.mxu0 %v11131_v13 }
 0x2ea   : > { %v12820_v44 = vadd.f32 %v4416_v15, %v4219_v6  ;;  %v4222_v12 = vadd.f32 %v10296_v7, %v12708_v51  ;;  %10708 = vmatpush3.bf16.msra.mxu1 %v11130_v30 }
 0x2eb   : > { %v4191_v0 = vpop.f32.mrf.mxu1  ;;  %v4811_v11 = vpop.f32.mrf.mxu0  ;;  %10765 = vmatprep.subr.bf16.mxu1 %v11132_v47 }
 0x2ec   : > { %v12823_v26 = vadd.f32 %v10332_v16, %v4222_v12  ;;  %v4220_v60 = vadd.f32 %v4191_v0, %v12716_v25  ;;  %v6733_v25 = vld [vmem:[#allocation2 + $0x52] sm:$0xff] }
 0x2ed   : > { %v10351_v46 = vpop.f32.mrf.mxu1  ;;  %10654 = vmatmul.mubr.bf16.gmra.mxu1 %v6304_v5  ;;  %v10391_v40 = vpop.f32.mrf.mxu0  ;;  %10746 = vmatmul.mubr.bf16.vlgmr.msra.gmra.mxu0 %v12593_v55  ;;  %v6737_v12 = vld [vmem:[#allocation2 + $0x72] sm:$0xff]  ;;  %v6739_v5 = vld [vmem:[#allocation2 + $0x82] sm:$0xff] }
 0x2ee   : > { %v12827_v15 = vadd.f32 %v4419_v63, %v4220_v60  ;;  %v4661_v51 = vadd.f32 %v10351_v46, %v12720_v28  ;;  %10709 = vmatprep.mubr.bf16.mxu1 %v6751_v59  ;;  %10749 = vmatprep.mubr.bf16.mxu0 %v12614_v42  ;;  %v6752_v28 = vpack.c.bf16 %v6734_v10, %v6733_v25  ;;  %v11133_v42 = vld [vmem:[%s13570_s3 + $0x630] sm:$0xff]   ;;  %v6742_v10 = vld [vmem:[#allocation2 + $0x9a] sm:$0xff] }
 0x2ef   : > { %v4580_v38 = vpop.f32.mrf.mxu1  ;;  %v4824_v49 = vpop.f32.mrf.mxu0  ;;  %v6755_v59 = vpack.c.bf16 %v6740_v37, %v6739_v5  ;;  %v6748_v37 = vld [vmem:[#allocation2 + $0xca] sm:$0xff] }
 0x2f0   : > { %v12831_v35 = vadd.f32 %v10387_v24, %v4661_v51  ;;  %v4659_v16 = vadd.f32 %v4580_v38, %v12726_v23 }
 0x2f1   : > { %v10352_v2 = vpop.f32.mrf.mxu1  ;;  %v10392_v50 = vpop.f32.mrf.mxu0 }
 0x2f2   : > { %v12834_v30 = vadd.f32 %v4808_v43, %v4659_v16  ;;  %v4662_v55 = vadd.f32 %v10352_v2, %v12732_v32 }
 0x2f3   : > { %v4583_v63 = vpop.f32.mrf.mxu1  ;;  %v4827_v34 = vpop.f32.mrf.mxu0 }
 0x2f4   : > { %v12840_v13 = vadd.f32 %v10388_v56, %v4662_v55  ;;  %v4660_v23 = vadd.f32 %v4583_v63, %v12739_v3  ;;  %v11134_v3 = vld [vmem:[%s13570_s3 + $0x628] sm:$0xff]  }
 0x2f5   : > { %v10355_v24 = vpop.f32.mrf.mxu1  ;;  %10710 = vmatmul.mubr.bf16.vlgmr.msra.gmra.mxu1 %v6752_v28  ;;  %v10395_v39 = vpop.f32.mrf.mxu0  ;;  %10750 = vmatmul.mubr.bf16.gmra.mxu0 %v12622_v57  ;;  %v6738_v57 = vld [vmem:[#allocation2 + $0x7a] sm:$0xff]  ;;  %v6743_v28 = vld [vmem:[#allocation2 + $0xa2] sm:$0xff] }
 0x2f6   : > { %v12844_v48 = vadd.f32 %v4811_v11, %v4660_v23  ;;  %v4665_v32 = vadd.f32 %v10355_v24, %v12746_v20  ;;  %10713 = vmatprep.mubr.bf16.mxu1 %v6753_v53  ;;  %10766 = vmatpush3.bf16.msra.mxu1 %v11132_v47  ;;  %v6754_v0 = vpack.c.bf16 %v6738_v57, %v6737_v12  ;;  %v6978_v57 = vld [vmem:[#allocation2 + $0xdb] sm:$0xff] }
 0x2f7   : > { %v4596_v43 = vpop.f32.mrf.mxu1  ;;  %10767 = vmatprep.subr.bf16.mxu1 %v11133_v42  ;;  %10753 = vmatprep.mubr.bf16.mxu0 %v12646_v4  ;;  %v4840_v6 = vpop.f32.mrf.mxu0  ;;  %v6757_v23 = vpack.c.bf16 %v6744_v58, %v6743_v28 }
 0x2f8   : > { %v12851_v8 = vadd.f32 %v10391_v40, %v4665_v32  ;;  %v4663_v19 = vadd.f32 %v4596_v43, %v12749_v31  ;;  %v11135_v31 = vld [vmem:[%s13570_s3 + $0x620] sm:$0xff]   ;;  %v6745_v32 = vld [vmem:[#allocation2 + $0xb2] sm:$0xff] }
 0x2f9   : > { %v10356_v7 = vpop.f32.mrf.mxu1  ;;  %v10396_v56 = vpop.f32.mrf.mxu0 }
 0x2fa   : > { %v12854_v20 = vadd.f32 %v4824_v49, %v4663_v19  ;;  %v4666_v47 = vadd.f32 %v10356_v7, %v12755_v1  ;;  %10768 = vmatpush3.bf16.msra.mxu1 %v11133_v42  ;;  %v6746_v19 = vld [vmem:[#allocation2 + $0xba] sm:$0xff]  ;;  %v6747_v7 = vld [vmem:[#allocation2 + $0xc2] sm:$0xff] }
 0x2fb   : > { %v4599_v4 = vpop.f32.mrf.mxu1  ;;  %10769 = vmatprep.subr.bf16.mxu1 %v11134_v3  ;;  %v12857_v27 = vpop.f32.mrf.mxu0 }
 0x2fc   : > { %v12862_v11 = vadd.f32 %v10392_v50, %v4666_v47  ;;  %v4664_v60 = vadd.f32 %v4599_v4, %v12762_v33  ;;  %v11136_v33 = vld [vmem:[%s13570_s3 + $0x618] sm:$0xff]   ;;  %v6758_v4 = vpack.c.bf16 %v6746_v19, %v6745_v32  ;;  %v7192_v19 = vld [vmem:[#allocation2 + $0x6c] sm:$0xff] }
 0x2fd   : > { %v10359_v46 = vpop.f32.mrf.mxu1  ;;  %10714 = vmatmul.mubr.bf16.gmra.mxu1 %v6754_v0  ;;  %v10399_v1 = vpop.f32.mrf.mxu0  ;;  %10754 = vmatmul.mubr.bf16.gmra.mxu0 %v12654_v14  ;;  %v6741_v14 = vld [vmem:[#allocation2 + $0x92] sm:$0xff] }
 0x2fe   : > { %v12866_v40 = vadd.f32 %v4827_v34, %v4664_v60  ;;  %v4669_v51 = vadd.f32 %v10359_v46, %v12772_v54  ;;  %10717 = vmatprep.mubr.bf16.mxu1 %v6755_v59  ;;  %10770 = vmatpush3.bf16.msra.mxu1 %v11134_v3  ;;  %v6756_v63 = vpack.c.bf16 %v6742_v10, %v6741_v14  ;;  %v6750_v14 = vld [vmem:[#allocation2 + $0xda] sm:$0xff]  ;;  %v7188_v10 = vld [vmem:[#allocation2 + $0x4c] sm:$0xff] }
 0x2ff   : > { %v4612_v38 = vpop.f32.mrf.mxu1  ;;  %10771 = vmatprep.subr.bf16.mxu1 %v11135_v31  ;;  %10757 = vmatprep.mubr.bf16.mxu0 %v12675_v36  ;;  %v4856_v49 = vpop.f32.mrf.mxu0  ;;  %v6759_v59 = vpack.c.bf16 %v6748_v37, %v6747_v7  ;;  %v7191_v37 = vld [vmem:[#allocation2 + $0x64] sm:$0xff] }
 0x300   : > { %v12873_v16 = vadd.f32 %v10395_v39, %v4669_v51  ;;  %v4667_v25 = vadd.f32 %v4612_v38, %v12775_v17  ;;  %v11137_v17 = vld [vmem:[%s13570_s3 + $0x610] sm:$0xff]  }
 0x301   : > { %v10360_v2 = vpop.f32.mrf.mxu1  ;;  %v10400_v54 = vpop.f32.mrf.mxu0 }
 0x302   : > { %v12876_v50 = vadd.f32 %v4840_v6, %v4667_v25  ;;  %v4670_v55 = vadd.f32 %v10360_v2, %v12781_v61  ;;  %10772 = vmatpush3.bf16.msra.mxu1 %v11135_v31  ;;  %v6749_v25 = vld [vmem:[#allocation2 + $0xd2] sm:$0xff] }
 0x303   : > { %v4615_v36 = vpop.f32.mrf.mxu1  ;;  %10773 = vmatprep.subr.bf16.mxu1 %v11136_v33  ;;  %v12879_v18 = vpop.f32.mrf.mxu0 }
 0x304   : > { %v12884_v42 = vadd.f32 %v10396_v56, %v4670_v55  ;;  %v12887_v34 = vadd.f32 %v4615_v36, %v12788_v41  ;;  %v11138_v41 = vld [vmem:[%s13570_s3 + $0x608] sm:$0xff]   ;;  %v6760_v55 = vpack.c.bf16 %v6750_v14, %v6749_v25  ;;  %v7193_v14 = vld [vmem:[#allocation2 + $0x74] sm:$0xff] }
 0x305   : > { %v10363_v53 = vpop.f32.mrf.mxu1  ;;  %10718 = vmatmul.mubr.bf16.gmra.mxu1 %v6756_v63  ;;  %v10403_v61 = vpop.f32.mrf.mxu0  ;;  %10758 = vmatmul.mubr.bf16.gmra.mxu0 %v12683_v9  ;;  %v6977_v9 = vld [vmem:[#allocation2 + $0xd3] sm:$0xff]  ;;  %v7187_v36 = vld [vmem:[#allocation2 + $0x44] sm:$0xff] }
 0x306   : > { %v4673_v24 = vadd.f32 %v10363_v53, %v12795_v62  ;;  %10721 = vmatprep.mubr.bf16.mxu1 %v6757_v23  ;;  %10774 = vmatpush3.bf16.msra.mxu1 %v11136_v33  ;;  %v6988_v5 = vpack.c.bf16 %v6978_v57, %v6977_v9 }
 0x307   : > { %v4628_v39 = vpop.f32.mrf.mxu1  ;;  %10761 = vmatprep.mubr.bf16.mxu0 %v12706_v21  ;;  %10775 = vmatprep.subr.bf16.mxu1 %v11137_v17  ;;  %v4872_v43 = vpop.f32.mrf.mxu0 }
 0x308   : > { %v12895_v6 = vadd.f32 %v10399_v1, %v4673_v24  ;;  %v4671_v3 = vadd.f32 %v4628_v39, %v12798_v29  ;;  %v11139_v29 = vld [vmem:[%s13570_s3 + $0x600] sm:$0xff]  }
 0x309   : > { %v10364_v62 = vpop.f32.mrf.mxu1  ;;  %v10404_v56 = vpop.f32.mrf.mxu0 }
 0x30a   : > { %v12898_v47 = vadd.f32 %v4856_v49, %v4671_v3  ;;  %v4674_v21 = vadd.f32 %v10364_v62, %v12804_v45  ;;  %10776 = vmatpush3.bf16.msra.mxu1 %v11137_v17 }
 0x30b   : > { %v4631_v12 = vpop.f32.mrf.mxu1  ;;  %v12901_v0 = vpop.f32.mrf.mxu0  ;;  %10777 = vmatprep.subr.bf16.mxu1 %v11138_v41 }
 0x30c   : > { %v12906_v31 = vadd.f32 %v10400_v54, %v4674_v21  ;;  %v12909_v60 = vadd.f32 %v4631_v12, %v12810_v22  ;;  %v7209_v12 = vpack.c.bf16 %v7192_v19, %v7191_v37 }
 0x30d   : > { %v10367_v46 = vpop.f32.mrf.mxu1  ;;  %10722 = vmatmul.mubr.bf16.gmra.mxu1 %v6758_v4  ;;  %v10459_v45 = vpop.f32.mrf.mxu0  ;;  %10762 = vmatmul.mubr.bf16.gmra.mxu0 %v6988_v5 }
 0x30e   : > { %v4677_v1 = vadd.f32 %v10367_v46, %v12817_v52  ;;  %10725 = vmatprep.mubr.bf16.mxu1 %v6759_v59  ;;  %10778 = vmatpush3.bf16.msra.mxu1 %v11138_v41  ;;  %v7190_v41 = vld [vmem:[#allocation2 + $0x5c] sm:$0xff] }
 0x30f   : > { %v4644_v51 = vpop.f32.mrf.mxu1  ;;  %v5264_v38 = vpop.f32.mrf.mxu0  ;;  %10779 = vmatprep.subr.bf16.mxu1 %v11139_v29 }
 0x310   : > { %v12912_v49 = vadd.f32 %v10403_v61, %v4677_v1  ;;  %v4675_v33 = vadd.f32 %v4644_v51, %v12820_v44  ;;  %v7207_v44 = vpack.c.bf16 %v7188_v10, %v7187_v36  ;;  %v7194_v1 = vld [vmem:[#allocation2 + $0x7c] sm:$0xff] }
 0x311   : > { %v10368_v22 = vpop.f32.mrf.mxu1  ;;  %v10460_v2 = vpop.f32.mrf.mxu0  ;;  %v7210_v10 = vpack.c.bf16 %v7194_v1, %v7193_v14  ;;  %v7204_v1 = vld [vmem:[#allocation2 + $0xcc] sm:$0xff] }
 0x312   : > { %v12915_v58 = vadd.f32 %v4872_v43, %v4675_v33  ;;  %v4678_v54 = vadd.f32 %v10368_v22, %v12823_v26  ;;  %10780 = vmatpush3.bf16.msra.mxu1 %v11139_v29  ;;  %v7189_v43 = vld [vmem:[#allocation2 + $0x54] sm:$0xff] }
 0x313   : > { %v4647_v52 = vpop.f32.mrf.mxu1  ;;  %v5267_v63 = vpop.f32.mrf.mxu0  ;;  %v7208_v7 = vpack.c.bf16 %v7190_v41, %v7189_v43  ;;  %v7200_v43 = vld [vmem:[#allocation2 + $0xac] sm:$0xff]  ;;  %v4896_v41 = vadd.f32 %v12857_v27, %v12887_v34 }
 0x314   : > { %v12918_v28 = vadd.f32 %v10404_v56, %v4678_v54  ;;  %v12921_v17 = vadd.f32 %v4647_v52, %v12827_v15 }
 0x315   : > { %v10423_v23 = vpop.f32.mrf.mxu1  ;;  %10726 = vmatmul.mubr.bf16.gmra.mxu1 %v6760_v55  ;;  %v10463_v53 = vpop.f32.mrf.mxu0 }
 0x316   : > { %v5117_v61 = vadd.f32 %v10423_v23, %v12831_v35  ;;  %10781 = vmatprep.mubr.bf16.mxu1 %v7207_v44 }
 0x317   : > { %v5036_v24 = vpop.f32.mrf.mxu1  ;;  %v5280_v39 = vpop.f32.mrf.mxu0 }
 0x318   : > { %v12924_v26 = vadd.f32 %v10459_v45, %v5117_v61  ;;  %v5115_v32 = vadd.f32 %v5036_v24, %v12834_v30  ;;  %v7197_v24 = vld [vmem:[#allocation2 + $0x94] sm:$0xff] }
 0x319   : > { %v10424_v3 = vpop.f32.mrf.mxu1  ;;  %v10464_v9 = vpop.f32.mrf.mxu0 }
 0x31a   : > { %v12927_v15 = vadd.f32 %v5264_v38, %v5115_v32  ;;  %v5118_v57 = vadd.f32 %v10424_v3, %v12840_v13  ;;  %v7196_v38 = vld [vmem:[#allocation2 + $0x8c] sm:$0xff] }
 0x31b   : > { %v5039_v62 = vpop.f32.mrf.mxu1  ;;  %v5283_v35 = vpop.f32.mrf.mxu0 }
 0x31c   : > { %v12930_v56 = vadd.f32 %v10460_v2, %v5118_v57  ;;  %v5116_v21 = vadd.f32 %v5039_v62, %v12844_v48  ;;  %v7195_v2 = vld [vmem:[#allocation2 + $0x84] sm:$0xff] }
 0x31d   : > { %v10427_v4 = vpop.f32.mrf.mxu1  ;;  %10782 = vmatmul.mubr.bf16.vlgmr.msra.gmra.mxu1 %v7208_v7  ;;  %v10467_v30 = vpop.f32.mrf.mxu0  ;;  %v7211_v55 = vpack.c.bf16 %v7196_v38, %v7195_v2  ;;  %v7199_v57 = vld [vmem:[#allocation2 + $0xa4] sm:$0xff]  ;;  %v4900_v38 = vadd.f32 %v12879_v18, %v12909_v60 }
 0x31e   : > { %v12933_v5 = vadd.f32 %v5267_v63, %v5116_v21  ;;  %v5121_v29 = vadd.f32 %v10427_v4, %v12851_v8  ;;  %10785 = vmatprep.mubr.bf16.mxu1 %v7209_v12 }
 0x31f   : > { %v5052_v59 = vpop.f32.mrf.mxu1  ;;  %v5296_v46 = vpop.f32.mrf.mxu0 }
 0x320   : > { %v12936_v13 = vadd.f32 %v10463_v53, %v5121_v29  ;;  %v5119_v45 = vadd.f32 %v5052_v59, %v12854_v20  ;;  %v7201_v29 = vld [vmem:[#allocation2 + $0xb4] sm:$0xff]  ;;  %v7202_v59 = vld [vmem:[#allocation2 + $0xbc] sm:$0xff] }
 0x321   : > { %v10428_v51 = vpop.f32.mrf.mxu1  ;;  %v10468_v33 = vpop.f32.mrf.mxu0  ;;  %v7214_v14 = vpack.c.bf16 %v7202_v59, %v7201_v29 }
 0x322   : > { %v12939_v48 = vadd.f32 %v5280_v39, %v5119_v45  ;;  %v5122_v25 = vadd.f32 %v10428_v51, %v12862_v11  ;;  %v7198_v39 = vld [vmem:[#allocation2 + $0x9c] sm:$0xff]  ;;  %v7203_v45 = vld [vmem:[#allocation2 + $0xc4] sm:$0xff] }
 0x323   : > { %v5055_v22 = vpop.f32.mrf.mxu1  ;;  %v5299_v8 = vpop.f32.mrf.mxu0 }
 0x324   : > { %v12942_v54 = vadd.f32 %v10464_v9, %v5122_v25  ;;  %v5120_v52 = vadd.f32 %v5055_v22, %v12866_v40  ;;  %v7212_v9 = vpack.c.bf16 %v7198_v39, %v7197_v24  ;;  %v4904_v24 = vadd.f32 %v12901_v0, %v12921_v17 }
 0x325   : > { %v10431_v36 = vpop.f32.mrf.mxu1  ;;  %10786 = vmatmul.mubr.bf16.gmra.mxu1 %v7210_v10  ;;  %v10471_v20 = vpop.f32.mrf.mxu0 }
 0x326   : > { %v12945_v63 = vadd.f32 %v5283_v35, %v5120_v52  ;;  %v5125_v44 = vadd.f32 %v10431_v36, %v12873_v16  ;;  %10789 = vmatprep.mubr.bf16.mxu1 %v7211_v55 }
 0x327   : > { %v5068_v23 = vpop.f32.mrf.mxu1  ;;  %v5312_v11 = vpop.f32.mrf.mxu0 }
 0x328   : > { %v12948_v53 = vadd.f32 %v10467_v30, %v5125_v44  ;;  %v5123_v61 = vadd.f32 %v5068_v23, %v12876_v50  ;;  %v7213_v50 = vpack.c.bf16 %v7200_v43, %v7199_v57  ;;  %v7205_v44 = vld [vmem:[#allocation2 + $0xd4] sm:$0xff]  ;;  %v7206_v23 = vld [vmem:[#allocation2 + $0xdc] sm:$0xff] }
 0x329   : > { %v10432_v32 = vpop.f32.mrf.mxu1  ;;  %v10472_v40 = vpop.f32.mrf.mxu0 }
 0x32a   : > { %v12953_v3 = vadd.f32 %v5296_v46, %v5123_v61  ;;  %v5126_v19 = vadd.f32 %v10432_v32, %v12884_v42 }
 0x32b   : > { %v5071_v16 = vpop.f32.mrf.mxu1  ;;  %v5315_v62 = vpop.f32.mrf.mxu0 }
 0x32c   : > { %v12956_v7 = vadd.f32 %v10468_v33, %v5126_v19  ;;  %v5124_v37 = vadd.f32 %v5071_v16, %v4896_v41 }
 0x32d   : > { %v10435_v35 = vpop.f32.mrf.mxu1  ;;  %10790 = vmatmul.mubr.bf16.gmra.mxu1 %v7212_v9  ;;  %v10475_v21 = vpop.f32.mrf.mxu0 }
 0x32e   : > { %v12958_v12 = vadd.f32 %v5299_v8, %v5124_v37  ;;  %v5129_v4 = vadd.f32 %v10435_v35, %v12895_v6  ;;  %10793 = vmatprep.mubr.bf16.mxu1 %v7213_v50 }
 0x32f   : > { %v5084_v27 = vpop.f32.mrf.mxu1  ;;  %v5328_v34 = vpop.f32.mrf.mxu0 }
 0x330   : > { %v12961_v30 = vadd.f32 %v10471_v20, %v5129_v4  ;;  %v5127_v42 = vadd.f32 %v5084_v27, %v12898_v47  ;;  %v7215_v47 = vpack.c.bf16 %v7204_v1, %v7203_v45 }
 0x331   : > { %v10436_v46 = vpop.f32.mrf.mxu1  ;;  %v10476_v51 = vpop.f32.mrf.mxu0 }
 0x332   : > { %v12966_v33 = vadd.f32 %v5312_v11, %v5127_v42  ;;  %v5130_v6 = vadd.f32 %v10436_v46, %v12906_v31 }
 0x333   : > { %v5087_v25 = vpop.f32.mrf.mxu1  ;;  %v5331_v22 = vpop.f32.mrf.mxu0 }
 0x334   : > { %v12969_v10 = vadd.f32 %v10472_v40, %v5130_v6  ;;  %v5128_v2 = vadd.f32 %v5087_v25, %v4900_v38 }
 0x335   : > { %v10439_v8 = vpop.f32.mrf.mxu1  ;;  %10794 = vmatmul.mubr.bf16.gmra.mxu1 %v7214_v14  ;;  %v10531_v52 = vpop.f32.mrf.mxu0 }
 0x336   : > { %v12971_v55 = vadd.f32 %v5315_v62, %v5128_v2  ;;  %v5133_v36 = vadd.f32 %v10439_v8, %v12912_v49  ;;  %10797 = vmatprep.mubr.bf16.mxu1 %v7215_v47  ;;  %v7216_v49 = vpack.c.bf16 %v7206_v23, %v7205_v44 }
 0x337   : > { %v5100_v18 = vpop.f32.mrf.mxu1  ;;  %v5720_v60 = vpop.f32.mrf.mxu0 }
 0x338   : > { %v12974_v20 = vadd.f32 %v10475_v21, %v5133_v36  ;;  %v5131_v31 = vadd.f32 %v5100_v18, %v12915_v58 }
 0x339   : > { %v10440_v11 = vpop.f32.mrf.mxu1  ;;  %v10532_v61 = vpop.f32.mrf.mxu0 }
 0x33a   : > { %v12979_v39 = vadd.f32 %v5328_v34, %v5131_v31  ;;  %v5134_v32 = vadd.f32 %v10440_v11, %v12918_v28 }
 0x33b   : > { %v5103_v43 = vpop.f32.mrf.mxu1  ;;  %v5723_v40 = vpop.f32.mrf.mxu0 }
 0x33c   : > { %v12982_v41 = vadd.f32 %v10476_v51, %v5134_v32  ;;  %v5132_v19 = vadd.f32 %v5103_v43, %v4904_v24 }
 0x33d   : > { %v10495_v16 = vpop.f32.mrf.mxu1  ;;  %10798 = vmatmul.mubr.bf16.gmra.mxu1 %v7216_v49  ;;  %v10535_v58 = vpop.f32.mrf.mxu0 }
 0x33e   : > { %v12984_v9 = vadd.f32 %v5331_v22, %v5132_v19  ;;  %v5573_v57 = vadd.f32 %v10495_v16, %v12924_v26 }
 0x33f   : > { %v5492_v62 = vpop.f32.mrf.mxu1  ;;  %v5736_v37 = vpop.f32.mrf.mxu0 }
 0x340   : > { %v12987_v0 = vadd.f32 %v10531_v52, %v5573_v57  ;;  %v5571_v17 = vadd.f32 %v5492_v62, %v12927_v15 }
 0x341   : > { %v10496_v28 = vpop.f32.mrf.mxu1  ;;  %v10536_v50 = vpop.f32.mrf.mxu0 }
 0x342   : > { %v12990_v35 = vadd.f32 %v5720_v60, %v5571_v17  ;;  %v5574_v21 = vadd.f32 %v10496_v28, %v12930_v56 }
 0x343   : > { %v5495_v4 = vpop.f32.mrf.mxu1  ;;  %v5739_v27 = vpop.f32.mrf.mxu0 }
 0x344   : > { %v12993_v34 = vadd.f32 %v10532_v61, %v5574_v21  ;;  %v5572_v42 = vadd.f32 %v5495_v4, %v12933_v5 }
 0x345   : > { %v10499_v29 = vpop.f32.mrf.mxu1  ;;  %v10539_v26 = vpop.f32.mrf.mxu0 }
 0x346   : > { %v12996_v59 = vadd.f32 %v5723_v40, %v5572_v42  ;;  %v5577_v46 = vadd.f32 %v10499_v29, %v12936_v13 }
 0x347   : > { %v5508_v45 = vpop.f32.mrf.mxu1  ;;  %v5752_v15 = vpop.f32.mrf.mxu0 }
 0x348   : > { %v12999_v1 = vadd.f32 %v10535_v58, %v5577_v46  ;;  %v5575_v51 = vadd.f32 %v5508_v45, %v12939_v48 }
 0x349   : > { %v10500_v38 = vpop.f32.mrf.mxu1  ;;  %v10540_v56 = vpop.f32.mrf.mxu0 }
 0x34a   : > { %v13002_v6 = vadd.f32 %v5736_v37, %v5575_v51  ;;  %v5578_v25 = vadd.f32 %v10500_v38, %v12942_v54 }
 0x34b   : > { %v5511_v14 = vpop.f32.mrf.mxu1  ;;  %v5755_v5 = vpop.f32.mrf.mxu0 }
 0x34c   : > { %v13005_v22 = vadd.f32 %v10536_v50, %v5578_v25  ;;  %v5576_v2 = vadd.f32 %v5511_v14, %v12945_v63 }
 0x34d   : > { %v10503_v47 = vpop.f32.mrf.mxu1  ;;  %v10543_v13 = vpop.f32.mrf.mxu0 }
 0x34e   : > { %v13008_v8 = vadd.f32 %v5739_v27, %v5576_v2  ;;  %v5581_v52 = vadd.f32 %v10503_v47, %v12948_v53 }
 0x34f   : > { %v5524_v36 = vpop.f32.mrf.mxu1  ;;  %v5768_v48 = vpop.f32.mrf.mxu0 }
 0x350   : > { %v13011_v18 = vadd.f32 %v10539_v26, %v5581_v52  ;;  %v5579_v60 = vadd.f32 %v5524_v36, %v12953_v3 }
 0x351   : > { %v10504_v31 = vpop.f32.mrf.mxu1  ;;  %v10544_v54 = vpop.f32.mrf.mxu0 }
 0x352   : > { %v13014_v44 = vadd.f32 %v5752_v15, %v5579_v60  ;;  %v5582_v23 = vadd.f32 %v10504_v31, %v12956_v7 }
 0x353   : > { %v5527_v11 = vpop.f32.mrf.mxu1  ;;  %v5771_v63 = vpop.f32.mrf.mxu0 }
 0x354   : > { %v13017_v61 = vadd.f32 %v10540_v56, %v5582_v23  ;;  %v5580_v24 = vadd.f32 %v5527_v11, %v12958_v12 }
 0x355   : > { %v10507_v32 = vpop.f32.mrf.mxu1  ;;  %v10547_v53 = vpop.f32.mrf.mxu0 }
 0x356   : > { %v13020_v43 = vadd.f32 %v5755_v5, %v5580_v24  ;;  %v5585_v49 = vadd.f32 %v10507_v32, %v12961_v30 }
 0x357   : > { %v5540_v40 = vpop.f32.mrf.mxu1  ;;  %v5784_v3 = vpop.f32.mrf.mxu0 }
 0x358   : > { %v13023_v19 = vadd.f32 %v10543_v13, %v5585_v49  ;;  %v5583_v16 = vadd.f32 %v5540_v40, %v12966_v33 }
 0x359   : > { %v10508_v58 = vpop.f32.mrf.mxu1  ;;  %v10548_v7 = vpop.f32.mrf.mxu0 }
 0x35a   : > { %v13026_v57 = vadd.f32 %v5768_v48, %v5583_v16  ;;  %v5586_v62 = vadd.f32 %v10508_v58, %v12969_v10 }
 0x35b   : > { %v5543_v37 = vpop.f32.mrf.mxu1  ;;  %v5787_v12 = vpop.f32.mrf.mxu0 }
 0x35c   : > { %v13029_v17 = vadd.f32 %v10544_v54, %v5586_v62  ;;  %v5584_v28 = vadd.f32 %v5543_v37, %v12971_v55 }
 0x35d   : > { %v10511_v50 = vpop.f32.mrf.mxu1  ;;  %v10603_v30 = vpop.f32.mrf.mxu0 }
 0x35e   : > { %v13032_v21 = vadd.f32 %v5771_v63, %v5584_v28  ;;  %v5589_v4 = vadd.f32 %v10511_v50, %v12974_v20 }
 0x35f   : > { %v5556_v27 = vpop.f32.mrf.mxu1  ;;  %v6176_v33 = vpop.f32.mrf.mxu0 }
 0x360   : > { %v13035_v42 = vadd.f32 %v10547_v53, %v5589_v4  ;;  %v5587_v29 = vadd.f32 %v5556_v27, %v12979_v39 }
 0x361   : > { %v10512_v26 = vpop.f32.mrf.mxu1  ;;  %v10604_v10 = vpop.f32.mrf.mxu0 }
 0x362   : > { %v13038_v46 = vadd.f32 %v5784_v3, %v5587_v29  ;;  %v5590_v45 = vadd.f32 %v10512_v26, %v12982_v41 }
 0x363   : > { %v5559_v15 = vpop.f32.mrf.mxu1  ;;  %v6179_v55 = vpop.f32.mrf.mxu0 }
 0x364   : > { %v13041_v51 = vadd.f32 %v10548_v7, %v5590_v45  ;;  %v5588_v38 = vadd.f32 %v5559_v15, %v12984_v9 }
 0x365   : > { %v10567_v56 = vpop.f32.mrf.mxu1  ;;  %v10607_v20 = vpop.f32.mrf.mxu0 }
 0x366   : > { %v13044_v25 = vadd.f32 %v5787_v12, %v5588_v38  ;;  %v6029_v14 = vadd.f32 %v10567_v56, %v12987_v0 }
 0x367   : > { %v5948_v5 = vpop.f32.mrf.mxu1  ;;  %v6192_v39 = vpop.f32.mrf.mxu0 }
 0x368   : > { %v13047_v2 = vadd.f32 %v10603_v30, %v6029_v14  ;;  %v6027_v47 = vadd.f32 %v5948_v5, %v12990_v35 }
 0x369   : > { %v10568_v13 = vpop.f32.mrf.mxu1  ;;  %v10608_v41 = vpop.f32.mrf.mxu0 }
 0x36a   : > { %v13050_v52 = vadd.f32 %v6176_v33, %v6027_v47  ;;  %v6030_v36 = vadd.f32 %v10568_v13, %v12993_v34 }
 0x36b   : > { %v5951_v48 = vpop.f32.mrf.mxu1  ;;  %v6195_v9 = vpop.f32.mrf.mxu0 }
 0x36c   : > { %v13053_v60 = vadd.f32 %v10604_v10, %v6030_v36  ;;  %v6028_v31 = vadd.f32 %v5951_v48, %v12996_v59 }
 0x36d   : > { %v10571_v54 = vpop.f32.mrf.mxu1  ;;  %v10611_v0 = vpop.f32.mrf.mxu0 }
 0x36e   : > { %v13056_v23 = vadd.f32 %v6179_v55, %v6028_v31  ;;  %v6033_v11 = vadd.f32 %v10571_v54, %v12999_v1 }
 0x36f   : > { %v5964_v63 = vpop.f32.mrf.mxu1  ;;  %v6208_v35 = vpop.f32.mrf.mxu0 }
 0x370   : > { %v13059_v24 = vadd.f32 %v10607_v20, %v6033_v11  ;;  %v6031_v32 = vadd.f32 %v5964_v63, %v13002_v6 }
 0x371   : > { %v10572_v53 = vpop.f32.mrf.mxu1  ;;  %v10612_v34 = vpop.f32.mrf.mxu0 }
 0x372   : > { %v13062_v49 = vadd.f32 %v6192_v39, %v6031_v32  ;;  %v6034_v40 = vadd.f32 %v10572_v53, %v13005_v22 }
 0x373   : > { %v5967_v3 = vpop.f32.mrf.mxu1  ;;  %v6211_v59 = vpop.f32.mrf.mxu0 }
 0x374   : > { %v13065_v16 = vadd.f32 %v10608_v41, %v6034_v40  ;;  %v6032_v58 = vadd.f32 %v5967_v3, %v13008_v8 }
 0x375   : > { %v10575_v7 = vpop.f32.mrf.mxu1  ;;  %v10615_v1 = vpop.f32.mrf.mxu0 }
 0x376   : > { %v13068_v62 = vadd.f32 %v6195_v9, %v6032_v58  ;;  %v6037_v37 = vadd.f32 %v10575_v7, %v13011_v18 }
 0x377   : > { %v5980_v12 = vpop.f32.mrf.mxu1  ;;  %v6224_v6 = vpop.f32.mrf.mxu0 }
 0x378   : > { %v13071_v28 = vadd.f32 %v10611_v0, %v6037_v37  ;;  %v6035_v50 = vadd.f32 %v5980_v12, %v13014_v44 }
 0x379   : > { %v10576_v30 = vpop.f32.mrf.mxu1  ;;  %v10616_v22 = vpop.f32.mrf.mxu0 }
 0x37a   : > { %v13074_v4 = vadd.f32 %v6208_v35, %v6035_v50  ;;  %v6038_v27 = vadd.f32 %v10576_v30, %v13017_v61  ;;  %v11141_v50 = vld [vmem:[%s13572_s5 + $0x38] sm:$0xff]  }
 0x37b   : > { %v5983_v33 = vpop.f32.mrf.mxu1  ;;  %v6227_v8 = vpop.f32.mrf.mxu0 }
 0x37c   : > { %v13077_v29 = vadd.f32 %v10612_v34, %v6038_v27  ;;  %v6036_v26 = vadd.f32 %v5983_v33, %v13020_v43  ;;  %v11145_v27 = vld [vmem:[%s13572_s5 + $0xb8] sm:$0xff]  }
 0x37d   : > { %v10579_v10 = vpop.f32.mrf.mxu1  ;;  %v10619_v18 = vpop.f32.mrf.mxu0 }
 0x37e   : > { %v13080_v45 = vadd.f32 %v6211_v59, %v6036_v26  ;;  %v6041_v15 = vadd.f32 %v10579_v10, %v13023_v19  ;;  %v11148_v26 = vld [vmem:[%s13572_s5 + $0xf0] sm:$0xff]  }
 0x37f   : > { %v5996_v55 = vpop.f32.mrf.mxu1  ;;  %v6240_v44 = vpop.f32.mrf.mxu0 }
 0x380   : > { %v13083_v38 = vadd.f32 %v10615_v1, %v6041_v15  ;;  %v6039_v56 = vadd.f32 %v5996_v55, %v13026_v57 }
 0x381   : > { %v10580_v20 = vpop.f32.mrf.mxu1  ;;  %v10620_v61 = vpop.f32.mrf.mxu0 }
 0x382   : > { %v13086_v14 = vadd.f32 %v6224_v6, %v6039_v56  ;;  %v6042_v5 = vadd.f32 %v10580_v20, %v13029_v17  ;;  %v11152_v20 = vld [vmem:[%s13572_s5 + $0xe8] sm:$0xff]  }
 0x383   : > { %v5999_v39 = vpop.f32.mrf.mxu1  ;;  %v6243_v43 = vpop.f32.mrf.mxu0 }
 0x384   : > { %v13089_v47 = vadd.f32 %v10616_v22, %v6042_v5  ;;  %v6040_v13 = vadd.f32 %v5999_v39, %v13032_v21 }
 0x385   : > { %v10583_v41 = vpop.f32.mrf.mxu1  ;;  %v10675_v19 = vpop.f32.mrf.mxu0 }
 0x386   : > { %v13092_v36 = vadd.f32 %v6227_v8, %v6040_v13  ;;  %v6045_v48 = vadd.f32 %v10583_v41, %v13035_v42 }
 0x387   : > { %v6012_v9 = vpop.f32.mrf.mxu1  ;;  %v6632_v57 = vpop.f32.mrf.mxu0 }
 0x388   : > { %v13095_v31 = vadd.f32 %v10619_v18, %v6045_v48  ;;  %v6043_v54 = vadd.f32 %v6012_v9, %v13038_v46  ;;  %v11143_v18 = vld [vmem:[%s13572_s5 + $0x30] sm:$0xff]   ;;  %v11155_v48 = vld [vmem:[%s13572_s5 + $0xe0] sm:$0xff]  }
 0x389   : > { %v10584_v0 = vpop.f32.mrf.mxu1  ;;  %v10676_v17 = vpop.f32.mrf.mxu0 }
 0x38a   : > { %v13098_v11 = vadd.f32 %v6240_v44, %v6043_v54  ;;  %v6046_v63 = vadd.f32 %v10584_v0, %v13041_v51  ;;  %v11146_v44 = vld [vmem:[%s13572_s5 + $0x68] sm:$0xff]   ;;  %v11151_v0 = vld [vmem:[%s13572_s5 + $0x20] sm:$0xff]  }
 0x38b   : > { %v6015_v35 = vpop.f32.mrf.mxu1  ;;  %v6635_v21 = vpop.f32.mrf.mxu0 }
 0x38c   : > { %v13101_v32 = vadd.f32 %v10620_v61, %v6046_v63  ;;  %v6044_v53 = vadd.f32 %v6015_v35, %v13044_v25  ;;  %v11157_v35 = vld [vmem:[%s13572_s5 + $0xa0] sm:$0xff]  }
 0x38d   : > { %v10639_v34 = vpop.f32.mrf.mxu1  ;;  %v13104_v42 = vpop.f32.mrf.mxu0 }
 0x38e   : > { %v13106_v40 = vadd.f32 %v6243_v43, %v6044_v53  ;;  %v6485_v3 = vadd.f32 %v10639_v34, %v13047_v2  ;;  %v11140_v2 = vld [vmem:[%s13572_s5 + $0x78] sm:$0xff]   ;;  %v11147_v43 = vld [vmem:[%s13572_s5 + $0x28] sm:$0xff]  }
 0x38f   : > { %v6404_v46 = vpop.f32.mrf.mxu1  ;;  %v13109_v59 = vpop.f32.mrf.mxu0  ;;  %9606 = vmatprep.subr.bf16.mxu0 %v11140_v2 }
 0x390   : > { %v13111_v58 = vadd.f32 %v10675_v19, %v6485_v3  ;;  %v6483_v51 = vadd.f32 %v6404_v46, %v13050_v52  ;;  %v11142_v52 = vld [vmem:[%s13572_s5 + $0x70] sm:$0xff]   ;;  %9607 = vmatpush3.bf16.msra.mxu0 %v11141_v50  ;;  %v11153_v19 = vld [vmem:[%s13572_s5 + $0xa8] sm:$0xff]   ;;  %v11156_v46 = vld [vmem:[%s13572_s5 + $0x18] sm:$0xff]  }
 0x391   : > { %v10640_v7 = vpop.f32.mrf.mxu1  ;;  %v13114_v1 = vpop.f32.mrf.mxu0  ;;  %9608 = vmatprep.subr.bf16.mxu0 %v11142_v52 }
 0x392   : > { %v13116_v37 = vadd.f32 %v6632_v57, %v6483_v51  ;;  %v6486_v25 = vadd.f32 %v10640_v7, %v13053_v60  ;;  %v11144_v60 = vld [vmem:[%s13572_s5 + $0xf8] sm:$0xff]  }
 0x393   : > { %v6407_v12 = vpop.f32.mrf.mxu1  ;;  %v13119_v6 = vpop.f32.mrf.mxu0  ;;  %9628 = vmatprep.subr.bf16.mxu1 %v11144_v60 }
 0x394   : > { %v13130_v30 = vadd.f32 %v10676_v17, %v6486_v25  ;;  %v6484_v22 = vadd.f32 %v6407_v12, %v13056_v23  ;;  %9629 = vmatpush3.bf16.msra.mxu1 %v11145_v27  ;;  %9609 = vmatpush3.bf16.msra.mxu0 %v11143_v18 }
 0x395   : > { %v10643_v33 = vpop.f32.mrf.mxu1  ;;  %v13139_v8 = vpop.f32.mrf.mxu0  ;;  %9630 = vmatprep.subr.bf16.mxu1 %v11148_v26  ;;  %9610 = vmatprep.subr.bf16.mxu0 %v11146_v44 }
 0x396   : > { %v13144_v10 = vadd.f32 %v6635_v21, %v6484_v22  ;;  %v13147_v23 = vadd.f32 %v10643_v33, %v13059_v24  ;;  %v11149_v24 = vld [vmem:[%s13572_s5 + $0xb0] sm:$0xff]   ;;  %v11158_v21 = vld [vmem:[%s13572_s5 + $0xd8] sm:$0xff]  }
 0x397   : > { %v6420_v15 = vpop.f32.mrf.mxu1  ;;  %v13152_v55 = vpop.f32.mrf.mxu0 }
 0x398   : > { %v13161_v56 = vadd.f32 %v6420_v15, %v13062_v49  ;;  %9631 = vmatpush3.bf16.msra.mxu1 %v11149_v24  ;;  %v11150_v49 = vld [vmem:[%s13572_s5 + $0x60] sm:$0xff]   ;;  %9611 = vmatpush3.bf16.msra.mxu0 %v11147_v43 }
 0x399   : > { %v10644_v61 = vpop.f32.mrf.mxu1  ;;  %v13166_v5 = vpop.f32.mrf.mxu0  ;;  %9632 = vmatprep.subr.bf16.mxu1 %v11152_v20  ;;  %9612 = vmatprep.subr.bf16.mxu0 %v11150_v49 }
 0x39a   : > { %v13169_v39 = vadd.f32 %v10644_v61, %v13065_v16 }
 0x39b   : > { %v6423_v13 = vpop.f32.mrf.mxu1  ;;  %v13174_v41 = vpop.f32.mrf.mxu0 }
 0x39c   : > { %v13183_v16 = vadd.f32 %v6423_v13, %v13068_v62  ;;  %9633 = vmatpush3.bf16.msra.mxu1 %v11153_v19  ;;  %v11154_v62 = vld [vmem:[%s13572_s5 + $0x58] sm:$0xff]   ;;  %9613 = vmatpush3.bf16.msra.mxu0 %v11151_v0 }
 0x39d   : > { %v10647_v9 = vpop.f32.mrf.mxu1  ;;  %v13188_v57 = vpop.f32.mrf.mxu0  ;;  %9634 = vmatprep.subr.bf16.mxu1 %v11155_v48  ;;  %9614 = vmatprep.subr.bf16.mxu0 %v11154_v62 }
 0x39e   : > { %v13191_v54 = vadd.f32 %v10647_v9, %v13071_v28 }
 0x39f   : > { %v6436_v17 = vpop.f32.mrf.mxu1  ;;  %v13196_v63 = vpop.f32.mrf.mxu0 }
 0x3a0   : > { %v13205_v28 = vadd.f32 %v6436_v17, %v13074_v4  ;;  %9635 = vmatpush3.bf16.msra.mxu1 %v11157_v35  ;;  %9615 = vmatpush3.bf16.msra.mxu0 %v11156_v46 }
 0x3a1   : > { %v10648_v53 = vpop.f32.mrf.mxu1  ;;  %v13210_v34 = vpop.f32.mrf.mxu0  ;;  %9636 = vmatprep.subr.bf16.mxu1 %v11158_v21 }
 0x3a2   : > { %v13213_v3 = vadd.f32 %v10648_v53, %v13077_v29 }
 0x3a3   : > { %v6439_v51 = vpop.f32.mrf.mxu1  ;;  %v13218_v7 = vpop.f32.mrf.mxu0 }
 0x3a4   : > { %v13221_v4 = vadd.f32 %v6439_v51, %v13080_v45 }
 0x3a5   : > { %v10651_v25 = vpop.f32.mrf.mxu1  ;;  %v13223_v12 = vpop.f32.mrf.mxu0 }
 0x3a6   : > { %13579 = vst [vmem:[#allocation3_spill] sm:$0xff] %v13223_v12  ;;  %v13226_v29 = vadd.f32 %v10651_v25, %v13083_v38 }
 0x3a7   : > { %v6452_v2 = vpop.f32.mrf.mxu1  ;;  %v13231_v22 = vpop.f32.mrf.mxu0 }
 0x3a8   : > { %v13229_v50 = vadd.f32 %v6452_v2, %v13086_v14  ;;  %13580 = vst [vmem:[#allocation4_spill] sm:$0xff] %v13231_v22  ;;  %v6715_v22 = vadd.f32 %v13109_v59, %v13161_v56  ;;  %v6716_v59 = vadd.f32 %v13119_v6, %v13183_v16 }
 0x3a9   : > { %v10652_v52 = vpop.f32.mrf.mxu1  ;;  %v13239_v26 = vpop.f32.mrf.mxu0 }
 0x3aa   : > { %v13234_v60 = vadd.f32 %v10652_v52, %v13089_v47  ;;  %13581 = vst [vmem:[#allocation5_spill] sm:$0xff] %v13239_v26  ;;  %v6717_v26 = vadd.f32 %v13104_v42, %v13147_v23  ;;  %v6718_v42 = vadd.f32 %v13114_v1, %v13169_v39 }
 0x3ab   : > { %v6455_v45 = vpop.f32.mrf.mxu1  ;;  %v13247_v44 = vpop.f32.mrf.mxu0 }
 0x3ac   : > { %v13237_v27 = vadd.f32 %v6455_v45, %v13092_v36  ;;  %13583 = vst [vmem:[#allocation7_spill] sm:$0xff] %v13247_v44 }
 0x3ad   : > { %v10655_v33 = vpop.f32.mrf.mxu1  ;;  %v10747_v61 = vpop.f32.mrf.mxu0 }
 0x3ae   : > { %v13242_v38 = vadd.f32 %v10655_v33, %v13095_v31 }
 0x3af   : > { %v6468_v18 = vpop.f32.mrf.mxu1  ;;  %v7088_v49 = vpop.f32.mrf.mxu0 }
 0x3b0   : > { %v13245_v14 = vadd.f32 %v6468_v18, %v13098_v11 }
 0x3b1   : > { %v10656_v15 = vpop.f32.mrf.mxu1 }
 0x3b2   : > { %13582 = vst [vmem:[#allocation6_spill] sm:$0xff] %v13245_v14  ;;  %v13250_v47 = vadd.f32 %v10656_v15, %v13101_v32  ;;  %v10748_v32 = vpop.f32.mrf.mxu0 }
 0x3b3   : > { %v6471_v24 = vpop.f32.mrf.mxu1 }
 0x3b4   : > { %13584 = vst [vmem:[#allocation8_spill] sm:$0xff] %v13250_v47  ;;  %v13253_v36 = vadd.f32 %v6471_v24, %v13106_v40  ;;  %v7091_v62 = vpop.f32.mrf.mxu0 }
 0x3b5   : > { %v10711_v20 = vpop.f32.mrf.mxu1 }
 0x3b6   : > { %13585 = vst [vmem:[#allocation9_spill] sm:$0xff] %v13253_v36  ;;  %v6941_v43 = vadd.f32 %v10711_v20, %v13111_v58  ;;  %v10751_v21 = vpop.f32.mrf.mxu0 }
 0x3b7   : > { %v6860_v31 = vpop.f32.mrf.mxu1 }
 0x3b8   : > { %v6939_v13 = vadd.f32 %v6860_v31, %v13116_v37  ;;  %v7104_v58 = vpop.f32.mrf.mxu0  ;;  %v7169_v44 = vadd.f32 %v10747_v61, %v6941_v43 }
 0x3b9   : > { %v10712_v11 = vpop.f32.mrf.mxu1 }
 0x3ba   : > { %v6942_v19 = vadd.f32 %v10712_v11, %v13130_v30  ;;  %v10752_v25 = vpop.f32.mrf.mxu0  ;;  %v7167_v36 = vadd.f32 %v7088_v49, %v6939_v13 }
 0x3bb   : > { %v6863_v48 = vpop.f32.mrf.mxu1 }
 0x3bc   : > { %v6940_v9 = vadd.f32 %v6863_v48, %v13144_v10  ;;  %v7107_v10 = vpop.f32.mrf.mxu0 }
 0x3bd   : > { %v10715_v0 = vpop.f32.mrf.mxu1 }
 0x3be   : > { %v10755_v33 = vpop.f32.mrf.mxu0  ;;  %v6945_v14 = vadd.f32 %v10715_v0, %v6717_v26 }
 0x3bf   : > { %v6876_v17 = vpop.f32.mrf.mxu1 }
 0x3c0   : > { %v7120_v24 = vpop.f32.mrf.mxu0  ;;  %v6943_v12 = vadd.f32 %v6876_v17, %v6715_v22  ;;  %v6721_v22 = vadd.f32 %v13139_v8, %v13191_v54  ;;  %v6720_v8 = vadd.f32 %v13174_v41, %v13221_v4  ;;  %v6725_v41 = vadd.f32 %v13188_v57, %v13226_v29 }
 0x3c1   : > { %v10716_v40 = vpop.f32.mrf.mxu1  ;;  %v6723_v4 = vadd.f32 %v13196_v63, %v13229_v50  ;;  %v6726_v63 = vadd.f32 %v13210_v34, %v13234_v60  ;;  %v6724_v29 = vadd.f32 %v13218_v7, %v13237_v27 }
 0x3c2   : > { %v13279_v11 = vpop.f32.mrf.mxu0  ;;  %v6946_v13 = vadd.f32 %v10716_v40, %v6718_v42  ;;  %v6722_v40 = vadd.f32 %v13166_v5, %v13213_v3 }
 0x3c3   : > { %v6879_v35 = vpop.f32.mrf.mxu1 }
 0x3c4   : > { %v6944_v49 = vadd.f32 %v6879_v35, %v6716_v59  ;;  %v7174_v17 = vadd.f32 %v10752_v25, %v6946_v13 }
 0x3c5   : > { %v10719_v53 = vpop.f32.mrf.mxu1 }
 0x3c6   : > { %v6949_v0 = vadd.f32 %v10719_v53, %v6721_v22 }
 0x3c7   : > { %v6892_v46 = vpop.f32.mrf.mxu1 }
 0x3c8   : > { %v7177_v35 = vadd.f32 %v10755_v33, %v6949_v0  ;;  %v13598_v0 = vld [vmem:[#allocation5_spill] sm:$0xff] }
 0x3c9   : > { %v13259_v51 = vpop.f32.mrf.mxu1 }
 0x3cb   : > { %v13261_v37 = vpop.f32.mrf.mxu1 }
 0x3cc   : > { %v6948_v5 = vadd.f32 %v13261_v37, %v6720_v8 }
 0x3cd   : > { %v13263_v2 = vpop.f32.mrf.mxu1 }
 0x3cf   : > { %v13265_v30 = vpop.f32.mrf.mxu1 }
 0x3d1   : > { %v13267_v52 = vpop.f32.mrf.mxu1 }
 0x3d2   : > { %13586 = vst [vmem:[#allocation10_spill] sm:$0xff] %v13267_v52  ;;  %v7168_v52 = vadd.f32 %v7091_v62, %v6940_v9 }
 0x3d3   : > { %v13269_v45 = vpop.f32.mrf.mxu1 }
 0x3d4   : > { %13587 = vst [vmem:[#allocation11_spill] sm:$0xff] %v13269_v45 }
 0x3d5   : > { %v13271_v18 = vpop.f32.mrf.mxu1 }
 0x3d6   : > { %13588 = vst [vmem:[#allocation12_spill] sm:$0xff] %v13271_v18 }
 0x3d7   : > { %v13273_v15 = vpop.f32.mrf.mxu1 }
 0x3d8   : > { %13589 = vst [vmem:[#allocation13_spill] sm:$0xff] %v13273_v15 }
 0x3d9   : > { %v13275_v20 = vpop.f32.mrf.mxu1 }
 0x3da   : > { %13590 = vst [vmem:[#allocation14_spill] sm:$0xff] %v13275_v20  ;;  %v7123_v20 = vpop.f32.mrf.mxu0 }
 0x3db   : > { %v13277_v31 = vpop.f32.mrf.mxu1  ;;  %v7176_v59 = vadd.f32 %v7123_v20, %v6948_v5  ;;  %v13601_v5 = vld [vmem:[#allocation9_spill] sm:$0xff] }
 0x3dc   : > { %13591 = vst [vmem:[#allocation15_spill] sm:$0xff] %v13277_v31  ;;  %v7170_v31 = vadd.f32 %v10748_v32, %v6942_v19  ;;  %v6719_v32 = vadd.f32 %v13152_v55, %v13205_v28  ;;  %v13306_v55 = vld [vmem:[%s13571_s4] ss:$0 sm:$0xff] }
 0x3dd   : > { %v10783_v48 = vpop.f32.mrf.mxu1  ;;  %v13599_v8 = vld [vmem:[#allocation12_spill] sm:$0xff] }
 0x3de   : > { %v13285_v18 = vadd.f32 %v10783_v48, %v7169_v44  ;;  %v7173_v44 = vadd.f32 %v10751_v21, %v6945_v14  ;;  %v7172_v14 = vadd.f32 %v7107_v10, %v6944_v49  ;;  %v6947_v62 = vadd.f32 %v6892_v46, %v6719_v32  ;;  %v13595_v32 = vld [vmem:[#allocation6_spill] sm:$0xff] }
 0x3df   : > { %v7316_v47 = vpop.f32.mrf.mxu1  ;;  %v6950_v10 = vadd.f32 %v13259_v51, %v6722_v40  ;;  %v6953_v48 = vadd.f32 %v13263_v2, %v6725_v41  ;;  %v13592_v2 = vld [vmem:[#allocation3_spill] sm:$0xff] }
 0x3e0   : > { %v13287_v15 = vadd.f32 %v7316_v47, %v7167_v36  ;;  %v10759_v47 = vpop.f32.mrf.mxu0  ;;  %v7171_v36 = vadd.f32 %v7104_v58, %v6943_v12  ;;  %v7175_v25 = vadd.f32 %v7120_v24, %v6947_v62  ;;  %v6951_v24 = vadd.f32 %v13265_v30, %v6723_v4 }
 0x3e1   : > { %v10784_v45 = vpop.f32.mrf.mxu1  ;;  %v7178_v37 = vadd.f32 %v13279_v11, %v6950_v10  ;;  %v13593_v11 = vld [vmem:[#allocation10_spill] sm:$0xff] }
 0x3e2   : > { %v7416_v61 = vmax.f32 %v13287_v15, %v13285_v18  ;;  %v7398_v23 = vadd.f32 %v10784_v45, %v7170_v31  ;;  %v7136_v6 = vpop.f32.mrf.mxu0  ;;  %v6954_v20 = vadd.f32 %v13593_v11, %v6726_v63 }
 0x3e3   : > { %v7319_v43 = vpop.f32.mrf.mxu1  ;;  %v7179_v13 = vadd.f32 %v7136_v6, %v6951_v24 }
 0x3e4   : > { %v7396_v56 = vadd.f32 %v7319_v43, %v7168_v52  ;;  %v10760_v53 = vpop.f32.mrf.mxu0 }
 0x3e5   : > { %v10787_v26 = vpop.f32.mrf.mxu1  ;;  %v7182_v40 = vadd.f32 %v10760_v53, %v6954_v20 }
 0x3e6   : > { %v7417_v19 = vmax.f32 %v7396_v56, %v7398_v23  ;;  %v7401_v1 = vadd.f32 %v10787_v26, %v7173_v44  ;;  %v7139_v43 = vpop.f32.mrf.mxu0  ;;  %v6729_v56 = vadd.f32 %v13592_v2, %v13242_v38  ;;  %v13597_v38 = vld [vmem:[#allocation8_spill] sm:$0xff] }
 0x3e7   : > { %v7332_v9 = vpop.f32.mrf.mxu1 }
 0x3e8   : > { %v7399_v39 = vadd.f32 %v7332_v9, %v7171_v36  ;;  %v7433_v58 = vadd.f32 %v13306_v55, %v7417_v19  ;;  %v7181_v36 = vadd.f32 %v10759_v47, %v6953_v48  ;;  %v10763_v49 = vpop.f32.mrf.mxu0  ;;  %v13594_v9 = vld [vmem:[#allocation11_spill] sm:$0xff]  ;;  %v7432_v47 = vadd.f32 %v13306_v55, %v7416_v61 }
 0x3e9   : > { %v10788_v16 = vpop.f32.mrf.mxu1  ;;  %v6952_v34 = vadd.f32 %v13594_v9, %v6724_v29 }
 0x3ea   : > { %v7418_v21 = vmax.f32 %v7399_v39, %v7401_v1  ;;  %v7402_v54 = vadd.f32 %v10788_v16, %v7174_v17  ;;  %v7443_v51 = vmax.f32 %v7433_v58, 0.0  ;;  %v13596_v1 = vld [vmem:[#allocation4_spill] sm:$0xff]  ;;  %v6730_v16 = vadd.f32 %v13598_v0, %v13597_v38  ;;  %v7152_v58 = vpop.f32.mrf.mxu0  ;;  %v11159_v0 = vld [vmem:[%s13572_s5 + $0x50] sm:$0xff]  }
 0x3eb   : > { %v7335_v12 = vpop.f32.mrf.mxu1  ;;  %v6727_v39 = vadd.f32 %v13596_v1, %v13595_v32  ;;  %v7180_v10 = vadd.f32 %v7139_v43, %v6952_v34  ;;  %v7442_v4 = vmax.f32 %v7432_v47, 0.0  ;;  %v11161_v47 = vld [vmem:[%s13572_s5 + $0x10] sm:$0xff]   ;;  %9616 = vmatprep.subr.bf16.mxu0 %v11159_v0 }
 0x3ec   : > { %v7400_v28 = vadd.f32 %v7335_v12, %v7172_v14  ;;  %v7565_v19 = vrot.slane %v7443_v51, 1  ;;  %v7434_v60 = vadd.f32 %v13306_v55, %v7418_v21  ;;  %9617 = vmatpush3.bf16.msra.mxu0 %v11161_v47 }
 0x3ed   : > { %v10791_v46 = vpop.f32.mrf.mxu1 }
 0x3ee   : > { %v7419_v3 = vmax.f32 %v7400_v28, %v7402_v54  ;;  %v7405_v33 = vadd.f32 %v10791_v46, %v7177_v35  ;;  %v6957_v54 = vadd.f32 %v13599_v8, %v6729_v56  ;;  %v13600_v28 = vld [vmem:[#allocation13_spill] sm:$0xff]  ;;  %v7575_v46 = vmax.f32 %v7443_v51, %v7565_v19 }
 0x3ef   : > { %v7348_v52 = vpop.f32.mrf.mxu1  ;;  %v6955_v35 = vadd.f32 %v13600_v28, %v6727_v39  ;;  %v7444_v18 = vmax.f32 %v7434_v60, 0.0 }
 0x3f0   : > { %v7435_v45 = vadd.f32 %v13306_v55, %v7419_v3  ;;  %v7403_v31 = vadd.f32 %v7348_v52, %v7175_v25  ;;  %v13602_v3 = vld [vmem:[#allocation7_spill] sm:$0xff] }
 0x3f1   : > { %v10792_v42 = vpop.f32.mrf.mxu1  ;;  %v6728_v41 = vadd.f32 %v13602_v3, %v13601_v5  ;;  %v7183_v51 = vadd.f32 %v7152_v58, %v6955_v35  ;;  %v7458_v29 = vrot.slane %v7444_v18, 1 }
 0x3f2   : > { %v7445_v23 = vmax.f32 %v7435_v45, 0.0  ;;  %v7420_v57 = vmax.f32 %v7403_v31, %v7405_v33  ;;  %v7406_v44 = vadd.f32 %v10792_v42, %v7178_v37  ;;  %v7185_v42 = vadd.f32 %v10763_v49, %v6957_v54  ;;  %v13603_v37 = vld [vmem:[#allocation14_spill] sm:$0xff] }
 0x3f3   : > { %v7351_v50 = vpop.f32.mrf.mxu1  ;;  %v6958_v43 = vadd.f32 %v13603_v37, %v6730_v16  ;;  %v13347_v60 = vmax.f32 %v7444_v18, %v7458_v29  ;;  %v11160_v16 = vld [vmem:[%s13572_s5 + $0x98] sm:$0xff]  }
 0x3f4   : > { %v7566_v30 = vrot.slane %v7445_v23, 1  ;;  %v7404_v26 = vadd.f32 %v7351_v50, %v7176_v59  ;;  %v7436_v6 = vadd.f32 %v13306_v55, %v7420_v57  ;;  %v10764_v59 = vpop.f32.mrf.mxu0  ;;  %9637 = vmatpush3.bf16.msra.mxu1 %v11160_v16 }
 0x3f5   : > { %v10795_v22 = vpop.f32.mrf.mxu1  ;;  %v7186_v49 = vadd.f32 %v10764_v59, %v6958_v43  ;;  %v7478_v28 = vrot.slane %v13347_v60, 1  ;;  %v7534_v35 = vrot.slane %v13347_v60, 5 }
 0x3f6   : > { %v7576_v7 = vmax.f32 %v7445_v23, %v7566_v30  ;;  %v7421_v27 = vmax.f32 %v7404_v26, %v7406_v44  ;;  %v7409_v21 = vadd.f32 %v10795_v22, %v7181_v36  ;;  %v7446_v52 = vmax.f32 %v7436_v6, 0.0  ;;  %v13604_v23 = vld [vmem:[#allocation15_spill] sm:$0xff]  ;;  %v7155_v19 = vpop.f32.mrf.mxu0 }
 0x3f7   : > { %v7364_v17 = vpop.f32.mrf.mxu1  ;;  %v6956_v57 = vadd.f32 %v13604_v23, %v6728_v41  ;;  %v7457_v30 = vrot.slane %v7442_v4, 1 }
 0x3f8   : > { %v7585_v14 = vrot.slane %v7576_v7, 7  ;;  %v7437_v62 = vadd.f32 %v13306_v55, %v7421_v27  ;;  %v7407_v12 = vadd.f32 %v7364_v17, %v7179_v13  ;;  %v7459_v44 = vrot.slane %v7446_v52, 1 }
 0x3f9   : > { %v10796_v25 = vpop.f32.mrf.mxu1  ;;  %v7184_v34 = vadd.f32 %v7155_v19, %v6956_v57  ;;  %v13349_v32 = vmax.f32 %v7442_v4, %v7457_v30  ;;  %v11169_v19 = vld [vmem:[%s13572_s5] sm:$0xff]  }
 0x3fa   : > { %v7447_v15 = vmax.f32 %v7437_v62, 0.0  ;;  %v7422_v61 = vmax.f32 %v7407_v12, %v7409_v21  ;;  %v7586_v33 = vsel %vm7479_vm0, %v7585_v14, %v7575_v46  ;;  %v7410_v48 = vadd.f32 %v10796_v25, %v7182_v40  ;;  %v11162_v21 = vld [vmem:[%s13572_s5 + $0xd0] sm:$0xff]  }
 0x3fb   : > { %v7367_v45 = vpop.f32.mrf.mxu1  ;;  %v13351_v1 = vmax.f32 %v7446_v52, %v7459_v44  ;;  %9638 = vmatprep.subr.bf16.mxu1 %v11162_v21  ;;  %v7477_v58 = vrot.slane %v13349_v32, 2  ;;  %v7507_v43 = vrot.slane %v13349_v32, 4  ;;  %v11165_v44 = vld [vmem:[%s13572_s5 + $0x8] sm:$0xff]  }
 0x3fc   : > { %v7567_v53 = vrot.slane %v7447_v15, 1  ;;  %v7438_v31 = vadd.f32 %v13306_v55, %v7422_v61  ;;  %v7408_v24 = vadd.f32 %v7367_v45, %v7180_v10 }
 0x3fd   : > { %v10799_v63 = vpop.f32.mrf.mxu1  ;;  %v7536_v18 = vrot.slane %v13351_v1, 4  ;;  %v7480_v4 = vsel %vm7479_vm0, %v7478_v28, %v7477_v58 }
 0x3fe   : > { %v7577_v50 = vmax.f32 %v7447_v15, %v7567_v53  ;;  %v7448_v2 = vmax.f32 %v7438_v31, 0.0  ;;  %v7423_v56 = vmax.f32 %v7408_v24, %v7410_v48  ;;  %v7413_v11 = vadd.f32 %v10799_v63, %v7185_v42 }
 0x3ff   : > { %v7380_v26 = vpop.f32.mrf.mxu1  ;;  %v7533_v15 = vrot.slane %v13349_v32, 6  ;;  %v7510_v53 = vrot.slane %v13351_v1, 2 }
 0x400   : > { %v7587_v36 = vrot.slane %v7577_v50, 6  ;;  %v7439_v13 = vadd.f32 %v13306_v55, %v7423_v56  ;;  %v7411_v20 = vadd.f32 %v7380_v26, %v7183_v51  ;;  %v7460_v22 = vrot.slane %v7448_v2, 1  ;;  %v11163_v50 = vld [vmem:[%s13572_s5 + $0x90] sm:$0xff]   ;;  %v11166_v26 = vld [vmem:[%s13572_s5 + $0xc8] sm:$0xff]  }
 0x401   : > { %v10800_v9 = vpop.f32.mrf.mxu1  ;;  %v7535_v45 = vsel %vm7479_vm0, %v7534_v35, %v7533_v15  ;;  %9639 = vmatpush3.bf16.msra.mxu1 %v11163_v50 }
 0x402   : > { %v7449_v7 = vmax.f32 %v7439_v13, 0.0  ;;  %v7424_v27 = vmax.f32 %v7411_v20, %v7413_v11  ;;  %v7588_v38 = vsel %vm7481_vm1, %v7587_v36, %v7586_v33  ;;  %v7414_v14 = vadd.f32 %v10800_v9, %v7186_v49  ;;  %v11167_v13 = vld [vmem:[%s13572_s5 + $0x88] sm:$0xff]   ;;  %v11168_v11 = vld [vmem:[%s13572_s5 + $0x40] sm:$0xff]   ;;  %9640 = vmatprep.subr.bf16.mxu1 %v11166_v26  ;;  %v11181_v26 = vld [vmem:[%s13574_s7 + $0x30] sm:$0xff]  }
 0x403   : > { %v7383_v39 = vpop.f32.mrf.mxu1  ;;  %v13367_v12 = vmax.f32 %v7448_v2, %v7460_v22  ;;  %v7508_v33 = vrot.slane %v13347_v60, 3  ;;  %v7537_v48 = vsel %vm7481_vm1, %v7536_v18, %v7535_v45  ;;  %v11164_v2 = vld [vmem:[%s13572_s5 + $0x48] sm:$0xff]   ;;  %v11170_v22 = vld [vmem:[%s13572_s5 + $0xc0] sm:$0xff]  }
 0x404   : > { %v7568_v6 = vrot.slane %v7449_v7, 1  ;;  %v7440_v17 = vadd.f32 %v13306_v55, %v7424_v27  ;;  %v7412_v62 = vadd.f32 %v7383_v39, %v7184_v34  ;;  %9618 = vmatprep.subr.bf16.mxu0 %v11164_v2  ;;  %v11171_v9 = vld [vmem:[%s13572_s5 + $0x80] sm:$0xff]  }
 0x405   : > { %v7538_v61 = vrot.slane %v13367_v12, 3  ;;  %v7483_v5 = vrot.slane %v13367_v12, 7  ;;  %v7512_v59 = vrot.slane %v13367_v12, 1  ;;  %v7509_v29 = vsel %vm7479_vm0, %v7508_v33, %v7507_v43  ;;  %9619 = vmatpush3.bf16.msra.mxu0 %v11165_v44  ;;  %9641 = vmatpush3.bf16.msra.mxu1 %v11167_v13  ;;  %v13428_v34 = vld [vmem:[#allocation2 + $0xe0] sm:$0xff]  ;;  %v11180_v44 = vld [vmem:[%s13574_s7 + $0x38] sm:$0xff]  }
 0x406   : > { %v7578_v40 = vmax.f32 %v7449_v7, %v7568_v6  ;;  %v7450_v8 = vmax.f32 %v7440_v17, 0.0  ;;  %v7425_v54 = vmax.f32 %v7412_v62, %v7414_v14  ;;  %v7511_v30 = vsel %vm7481_vm1, %v7510_v53, %v7509_v29  ;;  %9620 = vmatprep.subr.bf16.mxu0 %v11168_v11  ;;  %9642 = vmatprep.subr.bf16.mxu1 %v11170_v22  ;;  %v11172_v53 = vld [vmem:[%s13572_s5 + $0x138] sm:$0xff]   ;;  %v11178_v29 = vld [vmem:[%s13572_s5 + $0x108] sm:$0xff]   ;;  %v11179_v2 = vld [vmem:[%s13572_s5 + $0x100] sm:$0xff]  }
 0x407   : > { %v7539_v51 = vsel %vm7484_vm2, %v7538_v61, %v7537_v48  ;;  %v7513_v36 = vsel %vm7484_vm2, %v7512_v59, %v7511_v30  ;;  %v11173_v48 = vld [vmem:[%s13572_s5 + $0x130] sm:$0xff]   ;;  %v11183_v13 = vld [vmem:[%s13574_s7 + $0x20] sm:$0xff]   ;;  %v11184_v11 = vld [vmem:[%s13574_s7 + $0x18] sm:$0xff]  }
 0x408   : > { %v7589_v46 = vrot.slane %v7578_v40, 5  ;;  %v7461_v25 = vrot.slane %v7450_v8, 1  ;;  %v7441_v10 = vadd.f32 %v13306_v55, %v7425_v54  ;;  %v7482_v55 = vsel %vm7481_vm1, %v13351_v1, %v7480_v4  ;;  %v11188_v22 = vld [vmem:[%s13576_s9 + $0x38] sm:$0xff]  }
 0x409   : > { %v7485_v37 = vsel %vm7484_vm2, %v7483_v5, %v7482_v55  ;;  %9621 = vmatpush3.bf16.msra.mxu0 %v11169_v19  ;;  %9643 = vmatpush3.bf16.msra.mxu1 %v11171_v9  ;;  %v11187_v19 = vld [vmem:[%s13574_s7] sm:$0xff]   ;;  %v11189_v9 = vld [vmem:[%s13576_s9 + $0x30] sm:$0xff]  }
 0x40a   : > { %v13377_v3 = vmax.f32 %v7450_v8, %v7461_v25  ;;  %v7451_v41 = vmax.f32 %v7441_v10, 0.0  ;;  %v7590_v52 = vsel %vm7484_vm2, %v7589_v46, %v7588_v38  ;;  %10801 = vmatprep.subr.bf16.mxu0 %v13428_v34  ;;  %10821 = vmatprep.subr.bf16.mxu1 %v13428_v34 }
 0x40c   : > { %v7569_v31 = vrot.slane %v7451_v41, 1  ;;  %v7540_v24 = vrot.slane %v13377_v3, 2  ;;  %v7486_v42 = vrot.slane %v13377_v3, 6  ;;  %v7514_v49 = vsel %vm7487_vm3, %v13377_v3, %v7513_v36  ;;  %v11182_v36 = vld [vmem:[%s13574_s7 + $0x28] sm:$0xff]  }
 0x40e   : > { %v7541_v23 = vsel %vm7487_vm3, %v7540_v24, %v7539_v51  ;;  %v7488_v57 = vsel %vm7487_vm3, %v7486_v42, %v7485_v37  ;;  %v7579_v63 = vmax.f32 %v7451_v41, %v7569_v31  ;;  %v11174_v24 = vld [vmem:[%s13572_s5 + $0x128] sm:$0xff]   ;;  %v11175_v42 = vld [vmem:[%s13572_s5 + $0x120] sm:$0xff]   ;;  %v11176_v37 = vld [vmem:[%s13572_s5 + $0x118] sm:$0xff]  }
 0x40f   : > { %7543 = vrot.lane.b32.xlu1 %v7541_v23, %s11206_s13  ;;  %7490 = vrot.lane.b32.xlu0 %v7488_v57, %s11207_s14  ;;  %s11208_s14 = smov 64   ;;  %v11177_v23 = vld [vmem:[%s13572_s5 + $0x110] sm:$0xff]  }
 0x410   : > { %v7591_v56 = vrot.slane %v7579_v63, 4 }
 0x412   : > { %v7592_v20 = vsel %vm7487_vm3, %v7591_v56, %v7590_v52 }
 0x413   : > { %7594 = vrot.lane.b32.xlu1 %v7592_v20, %s11208_s14  ;;  %7516 = vrot.lane.b32.xlu0 %v7514_v49, %s11209_s15  ;;  %v11185_v20 = vld [vmem:[%s13574_s7 + $0x10] sm:$0xff]   ;;  %v11186_v49 = vld [vmem:[%s13574_s7 + $0x8] sm:$0xff]  }
 0x481   : > { %v13432_v7 = vpop.permute.xlu1 %7543  ;;  %v7491_v27 = vpop.permute.xlu0 %7490 }
 0x482   : > { %v7493_v39 = vrot.slane %v7491_v27, 1  ;;  %v7494_v38 = vrot.slane %v7491_v27, 2  ;;  %v7495_v0 = vrot.slane %v7491_v27, 3  ;;  %v7502_v47 = vadd.f32 %v7491_v27, %v13349_v32 }
 0x483   : > { %v7547_v54 = vrot.slane %v13432_v7, 2  ;;  %v7546_v35 = vrot.slane %v13432_v7, 1  ;;  %v7548_v32 = vrot.slane %v13432_v7, 3  ;;  %v7496_v51 = vrot.slane %v7491_v27, 4  ;;  %v11191_v27 = vld [vmem:[%s13576_s9 + $0x20] sm:$0xff]  }
 0x484   : > { %v7503_v6 = vadd.f32 %v7493_v39, %v13347_v60  ;;  %v7504_v17 = vadd.f32 %v7494_v38, %v13351_v1  ;;  %v7505_v62 = vadd.f32 %v7495_v0, %v13367_v12  ;;  %v7549_v63 = vrot.slane %v13432_v7, 4  ;;  %v11192_v39 = vld [vmem:[%s13576_s9 + $0x18] sm:$0xff]   ;;  %v11193_v38 = vld [vmem:[%s13576_s9 + $0x10] sm:$0xff]  }
 0x485   : > { %v7517_v16 = vpop.permute.xlu0 %7516  ;;  %v13437_v14 = vpop.permute.xlu1 %7594  ;;  %v7506_v59 = vadd.f32 %v7496_v51, %v13377_v3 }
 0x486   : > { %v7519_v21 = vrot.slane %v7517_v16, 1  ;;  %v7520_v40 = vrot.slane %v7517_v16, 2  ;;  %v7521_v8 = vrot.slane %v7517_v16, 3  ;;  %v7528_v28 = vadd.f32 %v7517_v16, %v7502_v47 }
 0x487   : > { %v7597_v60 = vrot.slane %v13437_v14, 1  ;;  %v7598_v1 = vrot.slane %v13437_v14, 2  ;;  %v7599_v12 = vrot.slane %v13437_v14, 3  ;;  %v7522_v43 = vrot.slane %v7517_v16, 4 }
 0x488   : > { %v7529_v58 = vadd.f32 %v7519_v21, %v7503_v6  ;;  %v7530_v46 = vadd.f32 %v7520_v40, %v7504_v17  ;;  %v7531_v25 = vadd.f32 %v7521_v8, %v7505_v62  ;;  %v7555_v10 = vadd.f32 %v13432_v7, %v7528_v28  ;;  %v11190_v7 = vld [vmem:[%s13576_s9 + $0x28] sm:$0xff]   ;;  %v7696_v8 = vld [vmem:[%s13573_s6] sm:$0x1] }
 0x489   : > { %v7532_v57 = vadd.f32 %v7522_v43, %v7506_v59  ;;  %v7600_v3 = vrot.slane %v13437_v14, 4 }
 0x48a   : > { %v7557_v18 = vadd.f32 %v7547_v54, %v7530_v46  ;;  %v7556_v15 = vadd.f32 %v7546_v35, %v7529_v58  ;;  %v7558_v61 = vadd.f32 %v7548_v32, %v7531_v25  ;;  %v7606_v5 = vadd.f32 %v13437_v14, %v7555_v10 }
 0x48b   : > { %v7559_v50 = vadd.f32 %v7549_v63, %v7532_v57 }
 0x48c   : > { %v7608_v41 = vadd.f32 %v7598_v1, %v7557_v18  ;;  %v7607_v4 = vadd.f32 %v7597_v60, %v7556_v15  ;;  %v7609_v52 = vadd.f32 %v7599_v12, %v7558_v61  ;;  %v7611_v31 = vpack.c.bf16 %v7606_v5, %v7606_v5  ;;  %v11194_v12 = vld [vmem:[%s13576_s9 + $0x8] sm:$0xff]   ;;  %v11195_v18 = vld [vmem:[%s13576_s9] sm:$0xff]  }
 0x48d   : > { %v7610_v56 = vadd.f32 %v7600_v3, %v7559_v50  ;;  %v8075_v15 = vld [vmem:[%s13575_s8] sm:$0x1] }
 0x48e   : > { %v7613_v45 = vpack.c.bf16 %v7608_v41, %v7608_v41  ;;  %v7612_v55 = vpack.c.bf16 %v7607_v4, %v7607_v4  ;;  %v7614_v33 = vpack.c.bf16 %v7609_v52, %v7609_v52 }
 0x48f   : > { %v7615_v30 = vpack.c.bf16 %v7610_v56, %v7610_v56 }
 0x490   : > { %7969 = vmatprep.mubr.bf16.mxu0 %v7612_v55  ;;  %8009 = vmatprep.mubr.bf16.mxu1 %v7614_v33  ;;  %v8271_v33 = vlaneseq }
 0x491   : > { %7970 = vmatmul.mubr.bf16.vlgmr.msra.gmra.mxu0 %v7611_v31  ;;  %8010 = vmatmul.mubr.bf16.vlgmr.msra.gmra.mxu1 %v7613_v45  ;;  %v8182_v31 = vld [vmem:[%s13577_s10] sm:$0x1] }
 0x492   : > { %10802 = vmatpush3.bf16.msra.mxu0 %v11172_v53  ;;  %10817 = vmatprep.mubr.msk.bf16.mxu0 %vm11210_vm4, %v13428_v34  ;;  %v8272_v53 = vshrl.u32 %v8271_v33, 7 }
 0x493   : > { %10803 = vmatprep.subr.bf16.mxu0 %v13428_v34  ;;  %10837 = vmatprep.mubr.msk.bf16.mxu1 %vm11210_vm4, %v13428_v34 }
 0x494   : > { %10822 = vmatpush3.bf16.msra.mxu1 %v11180_v44 }
 0x495   : > { %10823 = vmatprep.subr.bf16.mxu1 %v13428_v34 }
 0x496   : > { %10804 = vmatpush3.bf16.msra.mxu0 %v11173_v48 }
 0x497   : > { %10805 = vmatprep.subr.bf16.mxu0 %v13428_v34 }
 0x498   : > { %10824 = vmatpush3.bf16.msra.mxu1 %v11181_v26 }
 0x499   : > { %10825 = vmatprep.subr.bf16.mxu1 %v13428_v34 }
 0x49a   : > { %10806 = vmatpush3.bf16.msra.mxu0 %v11174_v24 }
 0x49b   : > { %10807 = vmatprep.subr.bf16.mxu0 %v13428_v34 }
 0x49c   : > { %10826 = vmatpush3.bf16.msra.mxu1 %v11182_v36 }
 0x49d   : > { %10827 = vmatprep.subr.bf16.mxu1 %v13428_v34 }
 0x49e   : > { %10808 = vmatpush3.bf16.msra.mxu0 %v11175_v42 }
 0x49f   : > { %10809 = vmatprep.subr.bf16.mxu0 %v13428_v34 }
 0x4a0   : > { %10828 = vmatpush3.bf16.msra.mxu1 %v11183_v13 }
 0x4a1   : > { %10829 = vmatprep.subr.bf16.mxu1 %v13428_v34 }
 0x4a2   : > { %10810 = vmatpush3.bf16.msra.mxu0 %v11176_v37 }
 0x4a3   : > { %10811 = vmatprep.subr.bf16.mxu0 %v13428_v34 }
 0x4a4   : > { %10830 = vmatpush3.bf16.msra.mxu1 %v11184_v11 }
 0x4a5   : > { %10831 = vmatprep.subr.bf16.mxu1 %v13428_v34 }
 0x4a6   : > { %10812 = vmatpush3.bf16.msra.mxu0 %v11177_v23 }
 0x4a7   : > { %10813 = vmatprep.subr.bf16.mxu0 %v13428_v34 }
 0x4a8   : > { %10832 = vmatpush3.bf16.msra.mxu1 %v11185_v20 }
 0x4a9   : > { %10833 = vmatprep.subr.bf16.mxu1 %v13428_v34 }
 0x4aa   : > { %10814 = vmatpush3.bf16.msra.mxu0 %v11178_v29 }
 0x4ab   : > { %10815 = vmatprep.subr.bf16.mxu0 %v13428_v34 }
 0x4ac   : > { %10834 = vmatpush3.bf16.msra.mxu1 %v11186_v49 }
 0x4ad   : > { %10835 = vmatprep.subr.bf16.mxu1 %v13428_v34 }
 0x4ae   : > { %10816 = vmatpush3.bf16.msra.mxu0 %v11179_v2 }
 0x4af   : > { %10841 = vmatprep.subr.bf16.mxu0 %v13428_v34 }
 0x4b0   : > { %10836 = vmatpush3.bf16.msra.mxu1 %v11187_v19 }
 0x4b1   : > { %10818 = vmatmul.mubr.bf16.vlgmr.msra.gmra.mxu0 %v7615_v30 }
 0x4b2   : > { %10857 = vmatprep.mubr.msk.bf16.mxu0 %vm11210_vm4, %v13428_v34  ;;  %10842 = vmatpush3.bf16.msra.mxu0 %v11188_v22 }
 0x4b3   : > { %10843 = vmatprep.subr.bf16.mxu0 %v13428_v34 }
 0x4b6   : > { %10844 = vmatpush3.bf16.msra.mxu0 %v11189_v9 }
 0x4b7   : > { %10845 = vmatprep.subr.bf16.mxu0 %v13428_v34 }
 0x4ba   : > { %10846 = vmatpush3.bf16.msra.mxu0 %v11190_v7 }
 0x4bb   : > { %10847 = vmatprep.subr.bf16.mxu0 %v13428_v34 }
 0x4be   : > { %10848 = vmatpush3.bf16.msra.mxu0 %v11191_v27 }
 0x4bf   : > { %10849 = vmatprep.subr.bf16.mxu0 %v13428_v34 }
 0x4c2   : > { %10850 = vmatpush3.bf16.msra.mxu0 %v11192_v39 }
 0x4c3   : > { %10851 = vmatprep.subr.bf16.mxu0 %v13428_v34 }
 0x4c6   : > { %10852 = vmatpush3.bf16.msra.mxu0 %v11193_v38 }
 0x4c7   : > { %10853 = vmatprep.subr.bf16.mxu0 %v13428_v34 }
 0x4ca   : > { %10854 = vmatpush3.bf16.msra.mxu0 %v11194_v12 }
 0x4cb   : > { %10855 = vmatprep.subr.bf16.mxu0 %v13428_v34  ;;  %v8273_v34 = vsub.s32 0, %v8272_v53 }
 0x4ce   : > { %10856 = vmatpush3.bf16.msra.mxu0 %v11195_v18 }
 0x551   : > { %v9622_v0 = vpop.f32.mrf.mxu0  ;;  %v9644_v16 = vpop.f32.mrf.mxu1 }
 0x553   : > { %v9623_v47 = vpop.f32.mrf.mxu0  ;;  %v9645_v6 = vpop.f32.mrf.mxu1 }
 0x554   : > { %v9624_v40 = vadd.f32 %v9623_v47, %v9622_v0  ;;  %v9646_v28 = vadd.f32 %v9645_v6, %v9644_v16 }
 0x555   : > { %v9625_v17 = vpop.f32.mrf.mxu0  ;;  %v9647_v14 = vpop.f32.mrf.mxu1 }
 0x556   : > { %v7972_v54 = vadd.f32 %v9624_v40, %v7696_v8 }
 0x557   : > { %v9626_v62 = vpop.f32.mrf.mxu0  ;;  %v9648_v21 = vpop.f32.mrf.mxu1 }
 0x558   : > { %v8012_v35 = vadd.f32 %v9646_v28, %v7972_v54 }
 0x571   : > { %v8051_v58 = vpop.f32.mrf.mxu0 }
 0x572   : > { %v8052_v46 = vadd.f32 %v8051_v58, %v8012_v35 }
 0x573   : > { %v10819_v25 = vpop.f32.mrf.mxu0 }
 0x574   : > { %v8057_v32 = vmax.f32 %v8052_v46, 0.0 }
 0x575   : > { %v8054_v60 = vpop.f32.mrf.mxu0 }
 0x576   : > { %v8058_v1 = vpack.c.bf16 %v8057_v32, %v8057_v32 }
 0x577   : > { %v10820_v10 = vpop.f32.mrf.mxu0 }
 0x578   : > { %10838 = vmatmul.mubr.bf16.vlgmr.msra.gmra.mxu1 %v8058_v1 }
 0x638   : > { %v8158_v61 = vpop.f32.mrf.mxu1 }
 0x639   : > { %v8159_v5 = vadd.f32 %v8158_v61, %v8075_v15 }
 0x63a   : > { %v10839_v41 = vpop.f32.mrf.mxu1 }
 0x63b   : > { %v8164_v4 = vmax.f32 %v8159_v5, 0.0 }
 0x63c   : > { %v8161_v52 = vpop.f32.mrf.mxu1 }
 0x63d   : > { %v8165_v45 = vpack.c.bf16 %v8164_v4, %v8164_v4 }
 0x63e   : > { %v10840_v55 = vpop.f32.mrf.mxu1 }
 0x63f   : > { %10858 = vmatmul.mubr.bf16.vlgmr.msra.gmra.mxu0 %v8165_v45 }
 0x6ff   : > { %v8265_v48 = vpop.f32.mrf.mxu0 }
 0x700   : > { %v8266_v24 = vadd.f32 %v8265_v48, %v8182_v31 }
 0x701   : > { %v10859_v42 = vpop.f32.mrf.mxu0 }
 0x702   : > { %v8274_v51 = vrot.slane %v8266_v24, %v8273_v34 }
 0x703   : > { %v8268_v37 = vpop.f32.mrf.mxu0 }
 0x704   : > { %8275 = vst [vmem:[%s384_s25] sm:$0xff] %v8274_v51 }
 0x705   : > { %v10860_v43 = vpop.f32.mrf.mxu0 }
 0x706 PF: > { %s21_s17 = sadd.s32 1, %s11203_s17  }
 0x707   : > { %p18_p4 = scmp.ge.s32.totalorder %s21_s17, 4  }
 0x709   :  { %20 = sbr.rel (!%p18_p4) target bundleno = 1 (0x1), region = 118 }

</bundles_post_ra>
